<compile_context>
chip_gen: v6e
topology: v6e:2x2x1
jax: 0.10.0
libtpu: 0.0.40
codegen_flags: <defaults>
</compile_context>

<pallas_src>
import functools

import jax
import jax.numpy as jnp
from jax.experimental import pallas as pl
from jax.experimental.pallas import tpu as pltpu


def _round_up(x, m):
    return ((x + m - 1) // m) * m


def _grid_sample_kernel(cnt_ref, tbl_ref, src_ref, idx_ref, frac_ref,
                        out_ref, acc_ref, cidx_ref, cw_ref,
                        *, TS, TP, num_p, max_active, in_dims):
    # cnt_ref : SMEM (N*num_p,)            int32  -- # active S-tiles per (n,p)
    # tbl_ref : SMEM (N*num_p*max_active,) int32  -- active S-tile ids (tail repeats last)
    # src_ref : (1, C, TS)   idx_ref/frac_ref : (1, 3, TP)   out_ref : (1, C, TP)
    # acc_ref : VMEM (C,TP) f32   cidx_ref : VMEM (8,TP) i32   cw_ref : VMEM (8,TP) f32
    D_in, H_in, W_in = in_dims
    n = pl.program_id(0)
    p = pl.program_id(1)
    k = pl.program_id(2)
    off = n * num_p + p

    @pl.when(k == 0)
    def _():
        acc_ref[...] = jnp.zeros_like(acc_ref)
        # Reconstruct the 8 trilinear corners (flat source index, weight) for
        # this P-tile once; reused unchanged by every active S-tile step.
        x0 = idx_ref[0, 0:1, :]            # (1, TP) int32
        y0 = idx_ref[0, 1:2, :]
        z0 = idx_ref[0, 2:3, :]
        fx = frac_ref[0, 0:1, :]           # (1, TP) f32
        fy = frac_ref[0, 1:2, :]
        fz = frac_ref[0, 2:3, :]
        cc = jax.lax.broadcasted_iota(jnp.int32, (8, TP), 0)
        dx = cc & 1
        dy = (cc >> 1) & 1
        dz = (cc >> 2) & 1
        xf = x0 + dx
        yf = y0 + dy
        zf = z0 + dz
        inb = ((xf >= 0) & (xf < W_in) & (yf >= 0) & (yf < H_in) &
               (zf >= 0) & (zf < D_in))
        flat = zf * (H_in * W_in) + yf * W_in + xf
        # zeros padding: out-of-bounds corners are tagged -1 so the select
        # chain below can never pick them up.  This (plus the fact that valid
        # corners of one point never share a flat index) makes the select
        # chain equal to a sum of weighted one-hots.  It relies on
        # padding_mode='zeros'; border/reflection padding would need a sum.
        cidx_ref[...] = jnp.where(inb, flat, -1)
        wx = jnp.where(dx == 1, fx, 1.0 - fx)
        wy = jnp.where(dy == 1, fy, 1.0 - fy)
        wz = jnp.where(dz == 1, fz, 1.0 - fz)
        cw_ref[...] = wx * wy * wz

    # Only the first cnt_ref[off] steps carry real S-tiles; the padded tail
    # repeats the last tile id (already resident, no re-DMA) and is skipped.
    @pl.when(k < cnt_ref[off])
    def _():
        base = tbl_ref[off * max_active + k] * TS
        src = src_ref[0]                                            # (C, TS)
        iota_s = jax.lax.broadcasted_iota(jnp.int32, (TS, TP), 0)   # base-free
        m = jnp.where(iota_s == (cidx_ref[0:1, :] - base), cw_ref[0:1, :], 0.0)
        for c in range(1, 8):
            m = jnp.where(iota_s == (cidx_ref[c:c + 1, :] - base),
                          cw_ref[c:c + 1, :], m)
        acc_ref[...] += jnp.dot(src, m, preferred_element_type=jnp.float32)

    @pl.when(k == pl.num_programs(2) - 1)
    def _():
        out_ref[0] = acc_ref[...].astype(out_ref.dtype)


def _precompute_sideband(grid, in_dims):
    """Base integer corner coords (x0,y0,z0) and trilinear fractions (fx,fy,fz)
    matching torch.grid_sample (trilinear, zeros, align_corners=False).
    Returns idx3 (N,3,P) int32 and frac3 (N,3,P) f32 -- 24 B/point sideband."""
    D_in, H_in, W_in = in_dims
    N, Do, Ho, Wo, _ = grid.shape
    P = Do * Ho * Wo
    g = grid.reshape(N, P, 3).astype(jnp.float32)
    gx, gy, gz = g[..., 0], g[..., 1], g[..., 2]   # x -> W, y -> H, z -> D

    ix = ((gx + 1.0) * W_in - 1.0) * 0.5
    iy = ((gy + 1.0) * H_in - 1.0) * 0.5
    iz = ((gz + 1.0) * D_in - 1.0) * 0.5

    x0f = jnp.floor(ix); y0f = jnp.floor(iy); z0f = jnp.floor(iz)
    fx = ix - x0f; fy = iy - y0f; fz = iz - z0f
    # Clamp to a narrow band before the int cast: anything outside it already
    # has both corners out of bounds along that axis (zero weight), and the
    # clamp prevents float->int overflow for wildly out-of-range grid values.
    x0 = jnp.clip(x0f, -2.0, float(W_in)).astype(jnp.int32)
    y0 = jnp.clip(y0f, -2.0, float(H_in)).astype(jnp.int32)
    z0 = jnp.clip(z0f, -2.0, float(D_in)).astype(jnp.int32)
    idx3 = jnp.stack([x0, y0, z0], axis=1)                     # (N, 3, P) int32
    frac3 = jnp.stack([fx, fy, fz], axis=1)                    # (N, 3, P) f32
    return idx3, frac3


def _active_tile_table(idx3, in_dims, TS, num_s, num_p, TP):
    """Per-(batch, P-tile) list of S-tile ids holding at least one needed
    trilinear corner.  Returns counts (N*num_p,) i32, tiles
    (N*num_p*max_active,) i32 (tail = repeat of last active id) and the static
    max_active (host-synced when not under a trace)."""
    D_in, H_in, W_in = in_dims
    N = idx3.shape[0]

    x0 = idx3[:, 0:1, :]; y0 = idx3[:, 1:2, :]; z0 = idx3[:, 2:3, :]  # (N,1,Pp)
    c8 = jnp.arange(8, dtype=jnp.int32).reshape(1, 8, 1)
    dx = c8 & 1; dy = (c8 >> 1) & 1; dz = (c8 >> 2) & 1
    xf = x0 + dx; yf = y0 + dy; zf = z0 + dz                           # (N,8,Pp)
    inb = ((xf >= 0) & (xf < W_in) & (yf >= 0) & (yf < H_in) &
           (zf >= 0) & (zf < D_in))
    flat = jnp.where(inb, zf * (H_in * W_in) + yf * W_in + xf, -1)

    flat_t = flat.reshape(N, 8, num_p, TP)
    tile_of = jnp.where(flat_t >= 0, flat_t // TS, 0)
    valid = (flat_t >= 0).astype(jnp.int32)
    active = jnp.zeros((N, num_p, num_s), jnp.int32)
    n_ix = jnp.arange(N).reshape(N, 1, 1, 1)
    p_ix = jnp.arange(num_p).reshape(1, 1, num_p, 1)
    active = active.at[n_ix, p_ix, tile_of].max(valid)                 # (N,num_p,num_s)
    counts = jnp.sum(active, axis=-1).astype(jnp.int32)                # (N,num_p)

    try:
        max_active = max(1, int(jnp.max(counts)))                      # host sync
    except jax.errors.ConcretizationTypeError:
        max_active = num_s                                             # under jit: safe fallback

    order = jnp.argsort(-active, axis=-1, stable=True).astype(jnp.int32)
    tiles = order[..., :max_active]                                    # (N,num_p,max_active)
    last = jnp.maximum(counts - 1, 0)
    last_tile = jnp.take_along_axis(tiles, last[..., None], axis=-1)   # (N,num_p,1)
    k_ix = jnp.arange(max_active, dtype=jnp.int32).reshape(1, 1, max_active)
    tiles = jnp.where(k_ix < counts[..., None], tiles, last_tile)
    return counts.reshape(-1), tiles.reshape(-1), max_active


def _default_vmem_limit():
    # ~3/4 of physical VMEM, capped at 96 MiB: ~96 MiB on 128 MiB parts
    # (v5e/v6e), ~48 MiB on v7x's 64 MiB-per-TensorCore VMEM.
    try:
        cap = int(pltpu.get_tpu_info().vmem_capacity_bytes)
        return min(cap * 3 // 4, 96 * 1024 * 1024)
    except Exception:
        return 48 * 1024 * 1024


def _grid_sample_3d_flat(src_flat, in_dims, grid, *, ts=256, tp=1024):
    """grid_sample with a pre-flattened source (N, C, S), returning (N, C, P)
    flattened in (D_out, H_out, W_out) row-major order."""
    N, C, S = src_flat.shape
    D_in, H_in, W_in = in_dims
    assert S == D_in * H_in * W_in
    _, Do, Ho, Wo, _ = grid.shape
    P = Do * Ho * Wo

    idx3, frac3 = _precompute_sideband(grid, in_dims)

    TS = min(ts, _round_up(S, 128))
    TP = min(tp, _round_up(P, 128))
    S_pad = _round_up(S, TS)
    P_pad = _round_up(P, TP)
    num_s = S_pad // TS
    num_p = P_pad // TP

    if S_pad != S:
        src_flat = jnp.pad(src_flat, ((0, 0), (0, 0), (0, S_pad - S)))
    if P_pad != P:
        # Padded output points: base coords far out of bounds -> every corner
        # is masked in-kernel, so they contribute nothing and produce zeros.
        idx3 = jnp.pad(idx3, ((0, 0), (0, 0), (0, P_pad - P)), constant_values=-2)
        frac3 = jnp.pad(frac3, ((0, 0), (0, 0), (0, P_pad - P)))

    counts, tiles, max_active = _active_tile_table(
        idx3, in_dims, TS, num_s, num_p, TP)

    kernel = functools.partial(_grid_sample_kernel, TS=TS, TP=TP, num_p=num_p,
                               max_active=max_active,
                               in_dims=(D_in, H_in, W_in))

    itemsize = jnp.dtype(src_flat.dtype).itemsize
    cost = pl.CostEstimate(
        flops=int(2 * C * TS * TP * N * num_p * max_active),
        transcendentals=0,
        bytes_accessed=int(N * num_p * max_active * C * TS * itemsize
                           + N * 6 * P_pad * 4
                           + N * C * P_pad * itemsize),
    )

    out = pl.pallas_call(
        kernel,
        out_shape=jax.ShapeDtypeStruct((N, C, P_pad), src_flat.dtype),
        grid_spec=pltpu.PrefetchScalarGridSpec(
            num_scalar_prefetch=2,
            grid=(N, num_p, max_active),
            in_specs=[
                # Source S-tile chosen by the prefetched active-tile table;
                # padded tail repeats the previous id so no new DMA is issued.
                pl.BlockSpec((1, C, TS),
                             lambda n, p, k, cnt, tbl:
                             (n, 0, tbl[(n * num_p + p) * max_active + k])),
                pl.BlockSpec((1, 3, TP), lambda n, p, k, cnt, tbl: (n, 0, p)),
                pl.BlockSpec((1, 3, TP), lambda n, p, k, cnt, tbl: (n, 0, p)),
            ],
            out_specs=pl.BlockSpec((1, C, TP),
                                   lambda n, p, k, cnt, tbl: (n, 0, p)),
            scratch_shapes=[pltpu.VMEM((C, TP), jnp.float32),
                            pltpu.VMEM((8, TP), jnp.int32),
                            pltpu.VMEM((8, TP), jnp.float32)],
        ),
        compiler_params=pltpu.CompilerParams(
            dimension_semantics=("parallel", "parallel", "arbitrary"),
            vmem_limit_bytes=_default_vmem_limit(),
        ),
        cost_estimate=cost,
    )(counts, tiles, src_flat, idx3, frac3)

    if P_pad != P:
        out = out[:, :, :P]
    return out


def grid_sample_3d(source, grid, *, ts=256, tp=1024):
    """Pallas equivalent of F.grid_sample for 5-D inputs (trilinear, zeros
    padding, align_corners=False)."""
    N, C, D_in, H_in, W_in = source.shape
    _, Do, Ho, Wo, _ = grid.shape
    out = _grid_sample_3d_flat(source.reshape(N, C, D_in * H_in * W_in),
                               (D_in, H_in, W_in), grid, ts=ts, tp=tp)
    return out.reshape(N, C, Do, Ho, Wo)


def transformer3d(source, grad_grid, affine_grid=None):
    """Forward pass of Transformer3d: grid_sample, optionally chained twice.
    The intermediate stays in the flattened (N, C, P) layout between the two
    sampling passes (no extra HBM reshape/transpose traffic)."""
    N, C, D, H, W = source.shape
    x = _grid_sample_3d_flat(source.reshape(N, C, D * H * W), (D, H, W), grad_grid)
    d, h, w = grad_grid.shape[1:4]
    if affine_grid is not None:
        x = _grid_sample_3d_flat(x, (d, h, w), affine_grid)
        d, h, w = affine_grid.shape[1:4]
    return x.reshape(N, C, d, h, w)


# ----------------------- pure-JAX reference (for checking) -----------------------
def _grid_sample_3d_ref(source, grid):
    N, C, D_in, H_in, W_in = source.shape
    _, Do, Ho, Wo, _ = grid.shape
    P = Do * Ho * Wo
    src_flat = source.reshape(N, C, D_in * H_in * W_in)
    g = grid.reshape(N, P, 3)
    gx, gy, gz = g[..., 0], g[..., 1], g[..., 2]
    ix = ((gx + 1.0) * W_in - 1.0) * 0.5
    iy = ((gy + 1.0) * H_in - 1.0) * 0.5
    iz = ((gz + 1.0) * D_in - 1.0) * 0.5
    x0 = jnp.floor(ix); y0 = jnp.floor(iy); z0 = jnp.floor(iz)
    x1, y1, z1 = x0 + 1, y0 + 1, z0 + 1
    wx1 = ix - x0; wx0 = 1 - wx1
    wy1 = iy - y0; wy0 = 1 - wy1
    wz1 = iz - z0; wz0 = 1 - wz1

    def corner(xf, yf, zf, w):
        inb = ((xf >= 0) & (xf <= W_in - 1) & (yf >= 0) & (yf <= H_in - 1) &
               (zf >= 0) & (zf <= D_in - 1))
        xi = jnp.clip(xf, 0, W_in - 1).astype(jnp.int32)
        yi = jnp.clip(yf, 0, H_in - 1).astype(jnp.int32)
        zi = jnp.clip(zf, 0, D_in - 1).astype(jnp.int32)
        flat = zi * (H_in * W_in) + yi * W_in + xi
        vals = jnp.take_along_axis(
            src_flat, flat[:, None, :].repeat(C, axis=1), axis=2)
        return vals * jnp.where(inb, w, 0.0)[:, None, :]

    out = (corner(x0, y0, z0, wx0 * wy0 * wz0) + corner(x1, y0, z0, wx1 * wy0 * wz0) +
           corner(x0, y1, z0, wx0 * wy1 * wz0) + corner(x1, y1, z0, wx1 * wy1 * wz0) +
           corner(x0, y0, z1, wx0 * wy0 * wz1) + corner(x1, y0, z1, wx1 * wy0 * wz1) +
           corner(x0, y1, z1, wx0 * wy1 * wz1) + corner(x1, y1, z1, wx1 * wy1 * wz1))
    return out.reshape(N, C, Do, Ho, Wo)


def _transformer3d_ref(source, grad_grid, affine_grid=None):
    x = _grid_sample_3d_ref(source, grad_grid)
    if affine_grid is not None:
        x = _grid_sample_3d_ref(x, affine_grid)
    return x
# ---------------------------------------------------------------------------------


if __name__ == "__main__":
    key = jax.random.PRNGKey(0)
    k1, k2, k3 = jax.random.split(key, 3)

    N, C, D, H, W = 2, 4, 8, 8, 8
    source = jax.random.normal(k1, (N, C, D, H, W), dtype=jnp.float32)
    grad_grid = jax.random.uniform(k2, (N, D, H, W, 3), dtype=jnp.float32,
                                   minval=-1.0, maxval=1.0)
    affine_grid = jax.random.uniform(k3, (N, D, H, W, 3), dtype=jnp.float32,
                                     minval=-1.0, maxval=1.0)

    out = transformer3d(source, grad_grid, affine_grid)
    out = jax.block_until_ready(out)

    ref = _transformer3d_ref(source, grad_grid, affine_grid)
    assert out.shape == (N, C, D, H, W)
    assert jnp.allclose(out, ref, rtol=1e-4, atol=1e-4), \
        f"max err {jnp.max(jnp.abs(out - ref))}"

    print("KERNEL_OK")
</pallas_src>

<mosaic_0001>
module attributes {stable_mosaic.version = 11 : i64} {
  func.func @_grid_sample_kernel(%arg0: i32, %arg1: i32, %arg2: i32, %arg3: memref<2xi32, #tpu.memory_space<smem>>, %arg4: memref<4xi32, #tpu.memory_space<smem>>, %arg5: memref<1x4x256xf32, #tpu.memory_space<vmem>>, %arg6: memref<1x3x512xi32, #tpu.memory_space<vmem>>, %arg7: memref<1x3x512xf32, #tpu.memory_space<vmem>>, %arg8: memref<1x4x512xf32, #tpu.memory_space<vmem>>, %arg9: memref<4x512xf32, #tpu.memory_space<vmem>>, %arg10: memref<8x512xi32, #tpu.memory_space<vmem>>, %arg11: memref<8x512xf32, #tpu.memory_space<vmem>>) attributes {dimension_semantics = [#tpu.dimension_semantics<parallel>, #tpu.dimension_semantics<parallel>, #tpu.dimension_semantics<arbitrary>], iteration_bounds = array<i64: 2, 1, 2>, scalar_prefetch = 2 : i64, scratch_operands = 3 : i64, tpu.core_type = #tpu.core_type<tc>, window_params = [{transform_indices = @transform_0, window_bounds = array<i64: 1, 4, 256>}, {transform_indices = @transform_1, window_bounds = array<i64: 1, 3, 512>}, {transform_indices = @transform_2, window_bounds = array<i64: 1, 3, 512>}, {transform_indices = @transform_3, window_bounds = array<i64: 1, 4, 512>}]} {
    %c1_i32 = arith.constant 1 : i32
    %0 = arith.muli %arg0, %c1_i32 : i32
    %1 = arith.addi %0, %arg1 : i32
    %c0_i32 = arith.constant 0 : i32
    %2 = arith.cmpi eq, %arg2, %c0_i32 : i32
    %3 = arith.extui %2 : i1 to i32
    %c0_i32_0 = arith.constant 0 : i32
    %4 = arith.cmpi ne, %3, %c0_i32_0 : i32
    scf.if %4 {
      %cst = arith.constant 0.000000e+00 : f32
      %13 = vector.broadcast %cst : f32 to vector<4x512xf32>
      %c0 = arith.constant 0 : index
      %c0_4 = arith.constant 0 : index
      %14 = vector.load %arg9[%c0, %c0_4] : memref<4x512xf32, #tpu.memory_space<vmem>>, vector<4x512xf32>
      tpu.vector_store %arg9[%c0, %c0_4], %13 {strides = array<i32>} : memref<4x512xf32, #tpu.memory_space<vmem>>, vector<4x512xf32>,
      %c0_5 = arith.constant 0 : index
      %c0_6 = arith.constant 0 : index
      %c0_7 = arith.constant 0 : index
      %15 = vector.load %arg6[%c0_5, %c0_6, %c0_7] : memref<1x3x512xi32, #tpu.memory_space<vmem>>, vector<1x1x512xi32>
      %16 = vector.shape_cast %15 : vector<1x1x512xi32> to vector<1x512xi32>
      %c0_8 = arith.constant 0 : index
      %c1 = arith.constant 1 : index
      %c0_9 = arith.constant 0 : index
      %17 = vector.load %arg6[%c0_8, %c1, %c0_9] : memref<1x3x512xi32, #tpu.memory_space<vmem>>, vector<1x1x512xi32>
      %18 = vector.shape_cast %17 : vector<1x1x512xi32> to vector<1x512xi32>
      %c0_10 = arith.constant 0 : index
      %c2 = arith.constant 2 : index
      %c0_11 = arith.constant 0 : index
      %19 = vector.load %arg6[%c0_10, %c2, %c0_11] : memref<1x3x512xi32, #tpu.memory_space<vmem>>, vector<1x1x512xi32>
      %20 = vector.shape_cast %19 : vector<1x1x512xi32> to vector<1x512xi32>
      %c0_12 = arith.constant 0 : index
      %c0_13 = arith.constant 0 : index
      %c0_14 = arith.constant 0 : index
      %21 = vector.load %arg7[%c0_12, %c0_13, %c0_14] : memref<1x3x512xf32, #tpu.memory_space<vmem>>, vector<1x1x512xf32>
      %22 = vector.shape_cast %21 : vector<1x1x512xf32> to vector<1x512xf32>
      %c0_15 = arith.constant 0 : index
      %c1_16 = arith.constant 1 : index
      %c0_17 = arith.constant 0 : index
      %23 = vector.load %arg7[%c0_15, %c1_16, %c0_17] : memref<1x3x512xf32, #tpu.memory_space<vmem>>, vector<1x1x512xf32>
      %24 = vector.shape_cast %23 : vector<1x1x512xf32> to vector<1x512xf32>
      %c0_18 = arith.constant 0 : index
      %c2_19 = arith.constant 2 : index
      %c0_20 = arith.constant 0 : index
      %25 = vector.load %arg7[%c0_18, %c2_19, %c0_20] : memref<1x3x512xf32, #tpu.memory_space<vmem>>, vector<1x1x512xf32>
      %26 = vector.shape_cast %25 : vector<1x1x512xf32> to vector<1x512xf32>
      %27 = tpu.iota {dimensions = array<i32: 0>} : vector<8x512xi32>
      %c1_i32_21 = arith.constant 1 : i32
      %28 = vector.broadcast %c1_i32_21 : i32 to vector<8x512xi32>
      %29 = arith.andi %27, %28 : vector<8x512xi32>
      %c1_i32_22 = arith.constant 1 : i32
      %30 = vector.broadcast %c1_i32_22 : i32 to vector<8x512xi32>
      %31 = arith.shrsi %27, %30 : vector<8x512xi32>
      %c1_i32_23 = arith.constant 1 : i32
      %32 = vector.broadcast %c1_i32_23 : i32 to vector<8x512xi32>
      %33 = arith.andi %31, %32 : vector<8x512xi32>
      %c2_i32 = arith.constant 2 : i32
      %34 = vector.broadcast %c2_i32 : i32 to vector<8x512xi32>
      %35 = arith.shrsi %27, %34 : vector<8x512xi32>
      %c1_i32_24 = arith.constant 1 : i32
      %36 = vector.broadcast %c1_i32_24 : i32 to vector<8x512xi32>
      %37 = arith.andi %35, %36 : vector<8x512xi32>
      %38 = vector.broadcast %16 : vector<1x512xi32> to vector<8x512xi32>
      %39 = arith.addi %38, %29 : vector<8x512xi32>
      %40 = vector.broadcast %18 : vector<1x512xi32> to vector<8x512xi32>
      %41 = arith.addi %40, %33 : vector<8x512xi32>
      %42 = vector.broadcast %20 : vector<1x512xi32> to vector<8x512xi32>
      %43 = arith.addi %42, %37 : vector<8x512xi32>
      %c0_i32_25 = arith.constant 0 : i32
      %44 = vector.broadcast %c0_i32_25 : i32 to vector<8x512xi32>
      %45 = arith.cmpi sge, %39, %44 : vector<8x512xi32>
      %c8_i32 = arith.constant 8 : i32
      %46 = vector.broadcast %c8_i32 : i32 to vector<8x512xi32>
      %47 = arith.cmpi slt, %39, %46 : vector<8x512xi32>
      %48 = arith.andi %45, %47 : vector<8x512xi1>
      %c0_i32_26 = arith.constant 0 : i32
      %49 = vector.broadcast %c0_i32_26 : i32 to vector<8x512xi32>
      %50 = arith.cmpi sge, %41, %49 : vector<8x512xi32>
      %51 = arith.andi %48, %50 : vector<8x512xi1>
      %c8_i32_27 = arith.constant 8 : i32
      %52 = vector.broadcast %c8_i32_27 : i32 to vector<8x512xi32>
      %53 = arith.cmpi slt, %41, %52 : vector<8x512xi32>
      %54 = arith.andi %51, %53 : vector<8x512xi1>
      %c0_i32_28 = arith.constant 0 : i32
      %55 = vector.broadcast %c0_i32_28 : i32 to vector<8x512xi32>
      %56 = arith.cmpi sge, %43, %55 : vector<8x512xi32>
      %57 = arith.andi %54, %56 : vector<8x512xi1>
      %c8_i32_29 = arith.constant 8 : i32
      %58 = vector.broadcast %c8_i32_29 : i32 to vector<8x512xi32>
      %59 = arith.cmpi slt, %43, %58 : vector<8x512xi32>
      %60 = arith.andi %57, %59 : vector<8x512xi1>
      %c64_i32 = arith.constant 64 : i32
      %61 = vector.broadcast %c64_i32 : i32 to vector<8x512xi32>
      %62 = arith.muli %43, %61 : vector<8x512xi32>
      %c8_i32_30 = arith.constant 8 : i32
      %63 = vector.broadcast %c8_i32_30 : i32 to vector<8x512xi32>
      %64 = arith.muli %41, %63 : vector<8x512xi32>
      %65 = arith.addi %62, %64 : vector<8x512xi32>
      %66 = arith.addi %65, %39 : vector<8x512xi32>
      %c-1_i32 = arith.constant -1 : i32
      %67 = vector.broadcast %c-1_i32 : i32 to vector<8x512xi32>
      %68 = arith.select %60, %66, %67 : vector<8x512xi1>, vector<8x512xi32>
      %c0_31 = arith.constant 0 : index
      %c0_32 = arith.constant 0 : index
      %69 = vector.load %arg10[%c0_31, %c0_32] : memref<8x512xi32, #tpu.memory_space<vmem>>, vector<8x512xi32>
      tpu.vector_store %arg10[%c0_31, %c0_32], %68 {strides = array<i32>} : memref<8x512xi32, #tpu.memory_space<vmem>>, vector<8x512xi32>,
      %c1_i32_33 = arith.constant 1 : i32
      %70 = vector.broadcast %c1_i32_33 : i32 to vector<8x512xi32>
      %71 = arith.cmpi eq, %29, %70 : vector<8x512xi32>
      %cst_34 = arith.constant 1.000000e+00 : f32
      %72 = vector.broadcast %cst_34 : f32 to vector<1x512xf32>
      %73 = arith.subf %72, %22 : vector<1x512xf32>
      %74 = vector.shape_cast %22 : vector<1x512xf32> to vector<1x512xf32>
      %75 = vector.broadcast %74 : vector<1x512xf32> to vector<8x512xf32>
      %76 = vector.shape_cast %73 : vector<1x512xf32> to vector<1x512xf32>
      %77 = vector.broadcast %76 : vector<1x512xf32> to vector<8x512xf32>
      %78 = arith.select %71, %75, %77 : vector<8x512xi1>, vector<8x512xf32>
      %c1_i32_35 = arith.constant 1 : i32
      %79 = vector.broadcast %c1_i32_35 : i32 to vector<8x512xi32>
      %80 = arith.cmpi eq, %33, %79 : vector<8x512xi32>
      %cst_36 = arith.constant 1.000000e+00 : f32
      %81 = vector.broadcast %cst_36 : f32 to vector<1x512xf32>
      %82 = arith.subf %81, %24 : vector<1x512xf32>
      %83 = vector.shape_cast %24 : vector<1x512xf32> to vector<1x512xf32>
      %84 = vector.broadcast %83 : vector<1x512xf32> to vector<8x512xf32>
      %85 = vector.shape_cast %82 : vector<1x512xf32> to vector<1x512xf32>
      %86 = vector.broadcast %85 : vector<1x512xf32> to vector<8x512xf32>
      %87 = arith.select %80, %84, %86 : vector<8x512xi1>, vector<8x512xf32>
      %c1_i32_37 = arith.constant 1 : i32
      %88 = vector.broadcast %c1_i32_37 : i32 to vector<8x512xi32>
      %89 = arith.cmpi eq, %37, %88 : vector<8x512xi32>
      %cst_38 = arith.constant 1.000000e+00 : f32
      %90 = vector.broadcast %cst_38 : f32 to vector<1x512xf32>
      %91 = arith.subf %90, %26 : vector<1x512xf32>
      %92 = vector.shape_cast %26 : vector<1x512xf32> to vector<1x512xf32>
      %93 = vector.broadcast %92 : vector<1x512xf32> to vector<8x512xf32>
      %94 = vector.shape_cast %91 : vector<1x512xf32> to vector<1x512xf32>
      %95 = vector.broadcast %94 : vector<1x512xf32> to vector<8x512xf32>
      %96 = arith.select %89, %93, %95 : vector<8x512xi1>, vector<8x512xf32>
      %97 = arith.mulf %78, %87 : vector<8x512xf32>
      %98 = arith.mulf %97, %96 : vector<8x512xf32>
      %c0_39 = arith.constant 0 : index
      %c0_40 = arith.constant 0 : index
      %99 = vector.load %arg11[%c0_39, %c0_40] : memref<8x512xf32, #tpu.memory_space<vmem>>, vector<8x512xf32>
      tpu.vector_store %arg11[%c0_39, %c0_40], %98 {strides = array<i32>} : memref<8x512xf32, #tpu.memory_space<vmem>>, vector<8x512xf32>,
    } else {
    }
    %5 = arith.index_cast %1 : i32 to index
    %6 = memref.load %arg3[%5] : memref<2xi32, #tpu.memory_space<smem>>
    %7 = arith.cmpi slt, %arg2, %6 : i32
    %8 = arith.extui %7 : i1 to i32
    %c0_i32_1 = arith.constant 0 : i32
    %9 = arith.cmpi ne, %8, %c0_i32_1 : i32
    scf.if %9 {
      %c2_i32 = arith.constant 2 : i32
      %13 = arith.muli %1, %c2_i32 : i32
      %14 = arith.addi %13, %arg2 : i32
      %15 = arith.index_cast %14 : i32 to index
      %16 = memref.load %arg4[%15] : memref<4xi32, #tpu.memory_space<smem>>
      %c256_i32 = arith.constant 256 : i32
      %17 = arith.muli %16, %c256_i32 : i32
      %c0 = arith.constant 0 : index
      %c0_4 = arith.constant 0 : index
      %c0_5 = arith.constant 0 : index
      %18 = vector.load %arg5[%c0, %c0_4, %c0_5] : memref<1x4x256xf32, #tpu.memory_space<vmem>>, vector<1x4x256xf32>
      %19 = vector.shape_cast %18 : vector<1x4x256xf32> to vector<4x256xf32>
      %20 = tpu.iota {dimensions = array<i32: 0>} : vector<256x512xi32>
      %c0_6 = arith.constant 0 : index
      %c0_7 = arith.constant 0 : index
      %21 = vector.load %arg10[%c0_6, %c0_7] : memref<8x512xi32, #tpu.memory_space<vmem>>, vector<1x512xi32>
      %22 = vector.broadcast %17 : i32 to vector<1x512xi32>
      %23 = arith.subi %21, %22 : vector<1x512xi32>
      %24 = vector.broadcast %23 : vector<1x512xi32> to vector<256x512xi32>
      %25 = arith.cmpi eq, %20, %24 : vector<256x512xi32>
      %c0_8 = arith.constant 0 : index
      %c0_9 = arith.constant 0 : index
      %26 = vector.load %arg11[%c0_8, %c0_9] : memref<8x512xf32, #tpu.memory_space<vmem>>, vector<1x512xf32>
      %cst = arith.constant 0.000000e+00 : f32
      %27 = vector.shape_cast %26 : vector<1x512xf32> to vector<1x512xf32>
      %28 = vector.broadcast %27 : vector<1x512xf32> to vector<256x512xf32>
      %29 = vector.broadcast %cst : f32 to vector<256x512xf32>
      %30 = arith.select %25, %28, %29 : vector<256x512xi1>, vector<256x512xf32>
      %c1 = arith.constant 1 : index
      %c0_10 = arith.constant 0 : index
      %31 = vector.load %arg10[%c1, %c0_10] : memref<8x512xi32, #tpu.memory_space<vmem>>, vector<1x512xi32>
      %32 = vector.broadcast %17 : i32 to vector<1x512xi32>
      %33 = arith.subi %31, %32 : vector<1x512xi32>
      %34 = vector.broadcast %33 : vector<1x512xi32> to vector<256x512xi32>
      %35 = arith.cmpi eq, %20, %34 : vector<256x512xi32>
      %c1_11 = arith.constant 1 : index
      %c0_12 = arith.constant 0 : index
      %36 = vector.load %arg11[%c1_11, %c0_12] : memref<8x512xf32, #tpu.memory_space<vmem>>, vector<1x512xf32>
      %37 = vector.shape_cast %36 : vector<1x512xf32> to vector<1x512xf32>
      %38 = vector.broadcast %37 : vector<1x512xf32> to vector<256x512xf32>
      %39 = arith.select %35, %38, %30 : vector<256x512xi1>, vector<256x512xf32>
      %c2 = arith.constant 2 : index
      %c0_13 = arith.constant 0 : index
      %40 = vector.load %arg10[%c2, %c0_13] : memref<8x512xi32, #tpu.memory_space<vmem>>, vector<1x512xi32>
      %41 = vector.broadcast %17 : i32 to vector<1x512xi32>
      %42 = arith.subi %40, %41 : vector<1x512xi32>
      %43 = vector.broadcast %42 : vector<1x512xi32> to vector<256x512xi32>
      %44 = arith.cmpi eq, %20, %43 : vector<256x512xi32>
      %c2_14 = arith.constant 2 : index
      %c0_15 = arith.constant 0 : index
      %45 = vector.load %arg11[%c2_14, %c0_15] : memref<8x512xf32, #tpu.memory_space<vmem>>, vector<1x512xf32>
      %46 = vector.shape_cast %45 : vector<1x512xf32> to vector<1x512xf32>
      %47 = vector.broadcast %46 : vector<1x512xf32> to vector<256x512xf32>
      %48 = arith.select %44, %47, %39 : vector<256x512xi1>, vector<256x512xf32>
      %c3 = arith.constant 3 : index
      %c0_16 = arith.constant 0 : index
      %49 = vector.load %arg10[%c3, %c0_16] : memref<8x512xi32, #tpu.memory_space<vmem>>, vector<1x512xi32>
      %50 = vector.broadcast %17 : i32 to vector<1x512xi32>
      %51 = arith.subi %49, %50 : vector<1x512xi32>
      %52 = vector.broadcast %51 : vector<1x512xi32> to vector<256x512xi32>
      %53 = arith.cmpi eq, %20, %52 : vector<256x512xi32>
      %c3_17 = arith.constant 3 : index
      %c0_18 = arith.constant 0 : index
      %54 = vector.load %arg11[%c3_17, %c0_18] : memref<8x512xf32, #tpu.memory_space<vmem>>, vector<1x512xf32>
      %55 = vector.shape_cast %54 : vector<1x512xf32> to vector<1x512xf32>
      %56 = vector.broadcast %55 : vector<1x512xf32> to vector<256x512xf32>
      %57 = arith.select %53, %56, %48 : vector<256x512xi1>, vector<256x512xf32>
      %c4 = arith.constant 4 : index
      %c0_19 = arith.constant 0 : index
      %58 = vector.load %arg10[%c4, %c0_19] : memref<8x512xi32, #tpu.memory_space<vmem>>, vector<1x512xi32>
      %59 = vector.broadcast %17 : i32 to vector<1x512xi32>
      %60 = arith.subi %58, %59 : vector<1x512xi32>
      %61 = vector.broadcast %60 : vector<1x512xi32> to vector<256x512xi32>
      %62 = arith.cmpi eq, %20, %61 : vector<256x512xi32>
      %c4_20 = arith.constant 4 : index
      %c0_21 = arith.constant 0 : index
      %63 = vector.load %arg11[%c4_20, %c0_21] : memref<8x512xf32, #tpu.memory_space<vmem>>, vector<1x512xf32>
      %64 = vector.shape_cast %63 : vector<1x512xf32> to vector<1x512xf32>
      %65 = vector.broadcast %64 : vector<1x512xf32> to vector<256x512xf32>
      %66 = arith.select %62, %65, %57 : vector<256x512xi1>, vector<256x512xf32>
      %c5 = arith.constant 5 : index
      %c0_22 = arith.constant 0 : index
      %67 = vector.load %arg10[%c5, %c0_22] : memref<8x512xi32, #tpu.memory_space<vmem>>, vector<1x512xi32>
      %68 = vector.broadcast %17 : i32 to vector<1x512xi32>
      %69 = arith.subi %67, %68 : vector<1x512xi32>
      %70 = vector.broadcast %69 : vector<1x512xi32> to vector<256x512xi32>
      %71 = arith.cmpi eq, %20, %70 : vector<256x512xi32>
      %c5_23 = arith.constant 5 : index
      %c0_24 = arith.constant 0 : index
      %72 = vector.load %arg11[%c5_23, %c0_24] : memref<8x512xf32, #tpu.memory_space<vmem>>, vector<1x512xf32>
      %73 = vector.shape_cast %72 : vector<1x512xf32> to vector<1x512xf32>
      %74 = vector.broadcast %73 : vector<1x512xf32> to vector<256x512xf32>
      %75 = arith.select %71, %74, %66 : vector<256x512xi1>, vector<256x512xf32>
      %c6 = arith.constant 6 : index
      %c0_25 = arith.constant 0 : index
      %76 = vector.load %arg10[%c6, %c0_25] : memref<8x512xi32, #tpu.memory_space<vmem>>, vector<1x512xi32>
      %77 = vector.broadcast %17 : i32 to vector<1x512xi32>
      %78 = arith.subi %76, %77 : vector<1x512xi32>
      %79 = vector.broadcast %78 : vector<1x512xi32> to vector<256x512xi32>
      %80 = arith.cmpi eq, %20, %79 : vector<256x512xi32>
      %c6_26 = arith.constant 6 : index
      %c0_27 = arith.constant 0 : index
      %81 = vector.load %arg11[%c6_26, %c0_27] : memref<8x512xf32, #tpu.memory_space<vmem>>, vector<1x512xf32>
      %82 = vector.shape_cast %81 : vector<1x512xf32> to vector<1x512xf32>
      %83 = vector.broadcast %82 : vector<1x512xf32> to vector<256x512xf32>
      %84 = arith.select %80, %83, %75 : vector<256x512xi1>, vector<256x512xf32>
      %c7 = arith.constant 7 : index
      %c0_28 = arith.constant 0 : index
      %85 = vector.load %arg10[%c7, %c0_28] : memref<8x512xi32, #tpu.memory_space<vmem>>, vector<1x512xi32>
      %86 = vector.broadcast %17 : i32 to vector<1x512xi32>
      %87 = arith.subi %85, %86 : vector<1x512xi32>
      %88 = vector.broadcast %87 : vector<1x512xi32> to vector<256x512xi32>
      %89 = arith.cmpi eq, %20, %88 : vector<256x512xi32>
      %c7_29 = arith.constant 7 : index
      %c0_30 = arith.constant 0 : index
      %90 = vector.load %arg11[%c7_29, %c0_30] : memref<8x512xf32, #tpu.memory_space<vmem>>, vector<1x512xf32>
      %91 = vector.shape_cast %90 : vector<1x512xf32> to vector<1x512xf32>
      %92 = vector.broadcast %91 : vector<1x512xf32> to vector<256x512xf32>
      %93 = arith.select %89, %92, %84 : vector<256x512xi1>, vector<256x512xf32>
      %c0_31 = arith.constant 0 : index
      %c0_32 = arith.constant 0 : index
      %94 = vector.load %arg9[%c0_31, %c0_32] : memref<4x512xf32, #tpu.memory_space<vmem>>, vector<4x512xf32>
      %cst_33 = arith.constant dense<0.000000e+00> : vector<4x512xf32>
      %95 = tpu.matmul %19, %93, %cst_33 {dimension_numbers = #tpu.dot_dimension_numbers<[1], [0], [0], [1], [0, 0, 1, 1], [], []>} : vector<4x256xf32>, vector<256x512xf32>, vector<4x512xf32> -> vector<4x512xf32>
      %96 = arith.addf %94, %95 : vector<4x512xf32>
      %c0_34 = arith.constant 0 : index
      %c0_35 = arith.constant 0 : index
      %97 = vector.load %arg9[%c0_34, %c0_35] : memref<4x512xf32, #tpu.memory_space<vmem>>, vector<4x512xf32>
      tpu.vector_store %arg9[%c0_34, %c0_35], %96 {strides = array<i32>} : memref<4x512xf32, #tpu.memory_space<vmem>>, vector<4x512xf32>,
    } else {
    }
    %c1_i32_2 = arith.constant 1 : i32
    %10 = arith.cmpi eq, %arg2, %c1_i32_2 : i32
    %11 = arith.extui %10 : i1 to i32
    %c0_i32_3 = arith.constant 0 : i32
    %12 = arith.cmpi ne, %11, %c0_i32_3 : i32
    scf.if %12 {
      %c0 = arith.constant 0 : index
      %c0_4 = arith.constant 0 : index
      %13 = vector.load %arg9[%c0, %c0_4] : memref<4x512xf32, #tpu.memory_space<vmem>>, vector<4x512xf32>
      %c0_5 = arith.constant 0 : index
      %c0_6 = arith.constant 0 : index
      %c0_7 = arith.constant 0 : index
      %14 = vector.load %arg8[%c0_5, %c0_6, %c0_7] : memref<1x4x512xf32, #tpu.memory_space<vmem>>, vector<1x4x512xf32>
      %15 = vector.shape_cast %14 : vector<1x4x512xf32> to vector<4x512xf32>
      %16 = vector.shape_cast %13 : vector<4x512xf32> to vector<1x4x512xf32>
      tpu.vector_store %arg8[%c0_5, %c0_6, %c0_7], %16 {strides = array<i32>} : memref<1x4x512xf32, #tpu.memory_space<vmem>>, vector<1x4x512xf32>,
    } else {
    }
    return
  }
  func.func @transform_0(%arg0: i32, %arg1: i32, %arg2: i32, %arg3: memref<2xi32, #tpu.memory_space<smem>>, %arg4: memref<4xi32, #tpu.memory_space<smem>>) -> (i32, i32, i32) {
    %c1_i32 = arith.constant 1 : i32
    %0 = arith.muli %arg0, %c1_i32 : i32
    %1 = arith.addi %0, %arg1 : i32
    %c2_i32 = arith.constant 2 : i32
    %2 = arith.muli %1, %c2_i32 : i32
    %3 = arith.addi %2, %arg2 : i32
    %4 = arith.index_cast %3 : i32 to index
    %5 = memref.load %arg4[%4] : memref<4xi32, #tpu.memory_space<smem>>
    %c0_i32 = arith.constant 0 : i32
    %c0_i32_0 = arith.constant 0 : i32
    return %arg0, %c0_i32, %5 : i32, i32, i32
  }
  func.func @transform_1(%arg0: i32, %arg1: i32, %arg2: i32, %arg3: memref<2xi32, #tpu.memory_space<smem>>, %arg4: memref<4xi32, #tpu.memory_space<smem>>) -> (i32, i32, i32) {
    %c0_i32 = arith.constant 0 : i32
    %c0_i32_0 = arith.constant 0 : i32
    return %arg0, %c0_i32, %arg1 : i32, i32, i32
  }
  func.func @transform_2(%arg0: i32, %arg1: i32, %arg2: i32, %arg3: memref<2xi32, #tpu.memory_space<smem>>, %arg4: memref<4xi32, #tpu.memory_space<smem>>) -> (i32, i32, i32) {
    %c0_i32 = arith.constant 0 : i32
    %c0_i32_0 = arith.constant 0 : i32
    return %arg0, %c0_i32, %arg1 : i32, i32, i32
  }
  func.func @transform_3(%arg0: i32, %arg1: i32, %arg2: i32, %arg3: memref<2xi32, #tpu.memory_space<smem>>, %arg4: memref<4xi32, #tpu.memory_space<smem>>) -> (i32, i32, i32) {
    %c0_i32 = arith.constant 0 : i32
    %c0_i32_0 = arith.constant 0 : i32
    return %arg0, %c0_i32, %arg1 : i32, i32, i32
  }
}

</mosaic_0001>

<bundles_post_ra>
// kernel: tpu_custom_call.1
= control target key start
LH: loop header
LB: loop body
LE: loop exit
PB: predicated region body
PF: predicated region fallthrough
CT: control target
= control target key end

     0   :  { %s7611_s0 = inlined_call_operand.vmem [shape: s32[2], index: 0, kind: input, shape index: {}]   ;;  %s7612_s2 = inlined_call_operand.vmem [shape: f32[2,4,512], index: 2, kind: input, shape index: {}]   ;;  %s7613_s3 = inlined_call_operand.vmem [shape: s32[2,3,512], index: 3, kind: input, shape index: {}]   ;;  %s7614_s4 = inlined_call_operand.vmem [shape: f32[2,3,512], index: 4, kind: input, shape index: {}]   ;;  %s7615_s5 = inlined_call_operand.hbm [shape: f32[2,4,512], index: 5, kind: output, shape index: {}]   ;;  %s7616_s1 = inlined_call_operand.vmem [shape: s32[4], index: 1, kind: input, shape index: {}]  }
   0x1   :  { %s10_s20 = sshll.u32 %s7611_s0, 4  ;;  %s14_s23 = sshll.u32 %s7616_s1, 4  ;;  %s11_s20 = int_to_ptr.vmem [resolvable:$true] %s10_s20  ;;  %s15_s23 = int_to_ptr.vmem [resolvable:$true] %s14_s23 }
   0x2   :  { %s3463_s24 = scalar_lea.vmem %s11_s20, 16  ;;  %p3468_p1 = scmp.lt.s32.totalorder %s11_s20, %s11_s20 }
   0x3   :  { %p3464_p0 = scmp.ne.s32.totalorder %s11_s20, %s3463_s24  ;;  %p3469_p2 = scmp.lt.s32.totalorder %s3463_s24, %s3463_s24 }
   0x5   :  { %p3470_p3 = por %p3469_p2, %p3468_p1 }
   0x7   :  { %p3471_p4 = pnand %p3470_p3, %p3464_p0 }
   0x9   :  { %3474 = shalt.err (!%p3471_p4)  }
   0xa   :  { %s3583_s25 = smov [#allocation6]   ;;  %s3475_s26 = scalar_lea.vmem %s15_s23, 16 }
   0xb   :  { %13 = dma.vmem_to_smem %s11_s20, 16, %s3583_s25, [#allocation5] }
   0xc   :  { %p3476_p5 = scmp.ne.s32.totalorder %s15_s23, %s3475_s26  ;;  %p3480_p6 = scmp.lt.s32.totalorder %s15_s23, %s15_s23 }
   0xd   :  { %p3481_p7 = scmp.lt.s32.totalorder %s3475_s26, %s3475_s26 }
   0xf   :  { %p3482_p8 = por %p3481_p7, %p3480_p6 }
  0x11   :  { %p3483_p9 = pnand %p3482_p8, %p3476_p5 }
  0x13   :  { %3486 = shalt.err (!%p3483_p9)  }
  0x14   :  { %s3584_s0 = smov [#allocation7]  }
  0x15   :  { %17 = dma.vmem_to_smem %s15_s23, 16, %s3584_s0, [#allocation5] }
  0x16   :  { %3545 = dma.done.wait [#allocation5], 32 }
  0x17   :  { %3546 = vsyncadd [#allocation5], 4294967264 }
  0x18   :  { %19 = sfence }
  0x19   :  { %20 = vsyncpa [#allocation9], 0 }
  0x1a   :  { %22 = vsyncpa [#allocation9 + $0x1], 0  ;;  %s3623_s1 = smov 0   ;;  %s3625_s27 = smov 0  }
  0x1b   :  { %s3627_s28 = smov 0   ;;  %s3629_s29 = smov 0  }
  0x1c   :  { %s3631_s30 = smov 0   ;;  %s3633_s6 = smov 0  }
  0x1d   :  { %s3635_s7 = smov 0   ;;  %s3637_s8 = smov 0  }
  0x1e LB: > { %7916 = sst [smem:[#allocation12_spill]] %s3573_s6  ;;  %s3355_s9 = sadd.s32 4294967295, %s3581_s8   ;;  %s3581_s8 = sphi %s3637_s8, %s28_s8   ;;  %s3577_s7 = sphi %s3635_s7, %s8298_s7   ;;  %s3573_s6 = sphi %s3633_s6, %s8297_s6   ;;  %s3569_s30 = sphi %s3631_s30, %s8296_s30   ;;  %s3565_s29 = sphi %s3629_s29, %s8295_s29   ;;  %s3561_s28 = sphi %s3627_s28, %s8301_s28   ;;  %s3557_s27 = sphi %s3625_s27, %s8300_s27   ;;  %s3553_s1 = sphi %s3623_s1, %s8299_s1  }
  0x1f   : > { %7917 = sst [smem:[#allocation13_spill]] %s3577_s7  ;;  %s3356_s10 = sadd.s32 4294967294, %s3581_s8  }
  0x20   : > { %s40_s11 = sadd.s32 1, %s3573_s6  ;;  %s47_s12 = sadd.s32 1, %s3577_s7 }
  0x21   : > { %p41_p10 = scmp.ge.s32.totalorder %s40_s11, 2  ;;  %p158_p11 = scmp.ne.s32.totalorder %s3561_s28, %s3557_s27 }
  0x22   : > { %p159_p12 = scmp.eq.s32.totalorder %s3355_s9, 3  ;;  %p164_p0 = scmp.ne.s32.totalorder %s3557_s27, %s3553_s1 }
  0x23   : > { %s8303_s11 = smov (%p41_p10, %s40_s11), 0  ;;  %s8305_s12 = smov (!%p41_p10, %s47_s12), %s3577_s7 }
  0x24   : > { %7918 = sst [smem:[#allocation14_spill]] %s8303_s11  ;;  %p3672_p13 = por %p159_p12, %p158_p11 }
  0x25   : > { %p49_p1 = scmp.ge.s32.totalorder %s8305_s12, 2  ;;  %p165_p2 = scmp.eq.s32.totalorder %s3356_s10, 3 }
  0x26   : > { %p3361_p3 = scmp.ge.s32.totalorder %s3581_s8, 1  ;;  %p230_p4 = scmp.lt.s32.totalorder %s3581_s8, 5 }
  0x27   : > { %s8307_s12 = smov (%p49_p1, %s8305_s12), 0  ;;  %p3682_p5 = por %p165_p2, %p164_p0 }
  0x28   : > { %7920 = sst [smem:[#allocation15_spill]] %s8307_s12  ;;  %p231_p6 = pnand %p3361_p3, %p230_p4 }
  0x29   : > { %s143_s15 = ssub.s32 %s3577_s7, %s8307_s12  ;;  %s148_s16 = sadd.s32 1, %s3561_s28 }
  0x2a   : > { %p146_p7 = scmp.eq.s32.totalorder %s143_s15, 0  ;;  %234 = sbr.rel (%p231_p6) target bundleno = 900 (0x384), region = 32 }
  0x2b   : > { %s7618_s18 = sand.u32 (!%p231_p6), 1, %s3557_s27   ;;  %s3363_s19 = sshll.u32 (!%p231_p6), %s3569_s30, 1 }
  0x2c   : > { %s3690_s17 = scalar_select %p146_p7, %s3561_s28, %s148_s16  }
  0x2d   : > { %s3362_s20 = sshll.u32 (!%p231_p6), %s7618_s18, 4  ;;  %s3697_s21 = sadd.s32 (!%p231_p6), %s3565_s29, %s3363_s19 }
  0x2e   : > { %s283_s22 = sld [smem:[#allocation7 + %s3697_s21]] (!%p231_p6)  ;;  %p285_p8 = scmp.lt.s32.totalorder (!%p231_p6), %s3569_s30, 1 }
  0x2f   : > { %p3371_p10 = scmp.ne.s32.totalorder %s3565_s29, 0 }
  0x30   : > { %s286_s23 = scalar_select %p285_p8, %s3569_s30, 1 }
  0x32   : > { %s3385_s24 = sshll.u32 %s286_s23, 4  ;;  %s3365_s12 = sshll.u32 %s286_s23, 2 }
  0x33   : > { %s306_s9 = scalar_lea.vmem %s7613_s3, %s3385_s24  ;;  %s3708_s16 = scalar_lea.vmem %s7614_s4, %s3385_s24 }
  0x34   : > { %s3364_s25 = sshll.u32 %s283_s22, 1  ;;  %s3715_s22 = scalar_lea.vmem [#allocation8], %s3362_s20 }
  0x35   : > { %p287_p9 = scmp.lt.s32.totalorder %s3364_s25, 3 }
  0x36   : > { %323 = sbr.rel (%p3371_p10) target bundleno = 100 (0x64), region = 36 }
  0x37   : > { %s8309_s25 = smov (!%p287_p9, %s3364_s25), 3 }
  0x38   : > { %s290_s19 = sadd.s32 %s3365_s12, %s8309_s25 }
  0x39   : > { %s3366_s18 = sshll.u32 %s290_s19, 2 }
  0x3a   : > { %s3713_s6 = scalar_lea.vmem %s7612_s2, %s3366_s18 }
  0x3b   : > { %v336_v0 = vlaneseq  ;;  %v3585_v1 = vmov 0.0   ;;  %v3718_v2 = vld [vmem:[%s306_s9] ss:$4 sm:$0xf] }
  0x3c   : > { %324 = vst [vmem:[#allocation2] sm:$0xff] %v3585_v1  ;;  %325 = vst [vmem:[#allocation2 + $0x8] sm:$0xff] %v3585_v1  ;;  %v3721_v4 = vld [vmem:[%s3708_s16] ss:$4 sm:$0xf] }
  0x3d   : > { %v337_v3 = vshrl.u32 %v336_v0, 7  ;;  %v3723_v5 = vld [vmem:[%s306_s9 + $0x1] ss:$4 sm:$0xf]  ;;  %v3738_v14 = vsub.f32 1.0, %v3721_v4 }
  0x3e   : > { %v3725_v6 = vld [vmem:[%s306_s9 + $0x2] ss:$4 sm:$0xf]  ;;  %v3787_v52 = vld [vmem:[%s3708_s16 + $0x1] ss:$4 sm:$0xf] }
  0x3f   : > { %v3727_v7 = vand.u32 1, %v337_v3  ;;  %v339_v8 = vshra.s32 %v337_v3, 1  ;;  %v341_v9 = vshra.s32 %v337_v3, 2  ;;  %v3729_v10 = vsub.s32 0, %v337_v3 }
  0x40   : > { %v3731_v11 = vsub.s32 1, %v337_v3  ;;  %v3733_v12 = vsub.s32 2, %v337_v3  ;;  %v3735_v13 = vsub.s32 3, %v337_v3  ;;  %v3792_v54 = vld [vmem:[%s3708_s16 + $0x2] ss:$4 sm:$0xf] }
  0x41   : > { %v3740_v15 = vand.u32 1, %v339_v8  ;;  %v3742_v16 = vand.u32 1, %v341_v9  ;;  %v346_v17 = vrot.slane %v3718_v2, %v3729_v10  ;;  %v366_v18 = vrot.slane %v3723_v5, %v3729_v10 }
  0x42   : > { %v386_v19 = vrot.slane %v3725_v6, %v3729_v10  ;;  %v350_v20 = vrot.slane %v3718_v2, %v3731_v11  ;;  %v370_v21 = vrot.slane %v3723_v5, %v3731_v11  ;;  %v390_v22 = vrot.slane %v3725_v6, %v3731_v11 }
  0x43   : > { %v359_v23 = vadd.s32 %v346_v17, %v3727_v7  ;;  %v379_v24 = vadd.s32 %v366_v18, %v3740_v15  ;;  %v354_v25 = vrot.slane %v3718_v2, %v3733_v12  ;;  %v374_v26 = vrot.slane %v3723_v5, %v3733_v12 }
  0x44   : > { %v399_v27 = vadd.s32 %v386_v19, %v3742_v16  ;;  %v360_v28 = vadd.s32 %v350_v20, %v3727_v7  ;;  %v380_v29 = vadd.s32 %v370_v21, %v3740_v15  ;;  %v400_v30 = vadd.s32 %v390_v22, %v3742_v16 }
  0x45   : > { %vm403_vm0 = vcmp.ge.s32.totalorder %v359_v23, 0  ;;  %vm407_vm1 = vcmp.lt.s32.totalorder %v359_v23, 8  ;;  %vm415_vm2 = vcmp.ge.s32.totalorder %v379_v24, 0  ;;  %vm423_vm3 = vcmp.lt.s32.totalorder %v379_v24, 8 }
  0x46   : > { %vm411_vm4 = vmand %vm403_vm0, %vm407_vm1  ;;  %vm431_vm5 = vcmp.ge.s32.totalorder %v399_v27, 0  ;;  %vm439_vm6 = vcmp.lt.s32.totalorder %v399_v27, 8  ;;  %v447_v31 = vmul.u32 64, %v399_v27  ;;  %v451_v32 = vmul.u32 8, %v379_v24 }
  0x47   : > { %vm419_vm7 = vmand %vm411_vm4, %vm415_vm2  ;;  %vm404_vm8 = vcmp.ge.s32.totalorder %v360_v28, 0  ;;  %vm408_vm9 = vcmp.lt.s32.totalorder %v360_v28, 8  ;;  %vm416_vm10 = vcmp.ge.s32.totalorder %v380_v29, 0  ;;  %vm424_vm11 = vcmp.lt.s32.totalorder %v380_v29, 8 }
  0x48   : > { %vm427_vm12 = vmand %vm419_vm7, %vm423_vm3  ;;  %v455_v33 = vadd.s32 %v451_v32, %v447_v31  ;;  %vm432_vm13 = vcmp.ge.s32.totalorder %v400_v30, 0  ;;  %vm440_vm14 = vcmp.lt.s32.totalorder %v400_v30, 8  ;;  %v448_v34 = vmul.u32 64, %v400_v30 }
  0x49   : > { %vm435_vm15 = vmand %vm427_vm12, %vm431_vm5  ;;  %v452_v35 = vmul.u32 8, %v380_v29  ;;  %v361_v36 = vadd.s32 %v354_v25, %v3727_v7  ;;  %v381_v37 = vadd.s32 %v374_v26, %v3740_v15  ;;  %v394_v38 = vrot.slane %v3725_v6, %v3733_v12 }
  0x4a   : > { %vm443_vm0 = vmand %vm435_vm15, %vm439_vm6  ;;  %v459_v39 = vadd.s32 %v455_v33, %v359_v23  ;;  %v358_v40 = vrot.slane %v3718_v2, %v3735_v13  ;;  %v378_v41 = vrot.slane %v3723_v5, %v3735_v13  ;;  %v398_v42 = vrot.slane %v3725_v6, %v3735_v13 }
  0x4b   : > { %vm412_vm1 = vmand %vm404_vm8, %vm408_vm9  ;;  %v456_v43 = vadd.s32 %v452_v35, %v448_v34  ;;  %v401_v44 = vadd.s32 %v394_v38, %v3742_v16  ;;  %vm405_vm2 = vcmp.ge.s32.totalorder %v361_v36, 0  ;;  %vm409_vm3 = vcmp.lt.s32.totalorder %v361_v36, 8 }
  0x4c   : > { %v463_v45 = vsel %vm443_vm0, %v459_v39, 4294967295  ;;  %vm420_vm4 = vmand %vm412_vm1, %vm416_vm10  ;;  %vm417_vm5 = vcmp.ge.s32.totalorder %v381_v37, 0  ;;  %vm425_vm6 = vcmp.lt.s32.totalorder %v381_v37, 8  ;;  %v453_v46 = vmul.u32 8, %v381_v37 }
  0x4d   : > { %467 = vst [vmem:[#allocation3] sm:$0xff] %v463_v45  ;;  %vm428_vm7 = vmand %vm420_vm4, %vm424_vm11  ;;  %v460_v47 = vadd.s32 %v456_v43, %v360_v28  ;;  %v449_v48 = vmul.u32 64, %v401_v44  ;;  %v362_v49 = vadd.s32 %v358_v40, %v3727_v7  ;;  %v382_v50 = vadd.s32 %v378_v41, %v3740_v15 }
  0x4e   : > { %vm436_vm8 = vmand %vm428_vm7, %vm432_vm13  ;;  %v402_v51 = vadd.s32 %v398_v42, %v3742_v16  ;;  %vm471_vm9 = vcmp.eq.s32.totalorder %v3727_v7, 1  ;;  %v477_v55 = vrot.slane %v3721_v4, %v3729_v10  ;;  %v498_v56 = vrot.slane %v3738_v14, %v3729_v10 }
  0x4f   : > { %vm444_vm10 = vmand %vm436_vm8, %vm440_vm14  ;;  %v457_v53 = vadd.s32 %v453_v46, %v449_v48  ;;  %vm519_vm11 = vcmp.eq.s32.totalorder %v3740_v15, 1  ;;  %vm406_vm0 = vcmp.ge.s32.totalorder %v362_v49, 0  ;;  %vm410_vm1 = vcmp.lt.s32.totalorder %v362_v49, 8 }
  0x50   : > { %v464_v57 = vsel %vm444_vm10, %v460_v47, 4294967295  ;;  %vm413_vm13 = vmand %vm405_vm2, %vm409_vm3  ;;  %vm418_vm4 = vcmp.ge.s32.totalorder %v382_v50, 0  ;;  %vm426_vm7 = vcmp.lt.s32.totalorder %v382_v50, 8  ;;  %vm434_vm8 = vcmp.ge.s32.totalorder %v402_v51, 0 }
  0x51   : > { %468 = vst [vmem:[#allocation3 + $0x8] sm:$0xff] %v464_v57  ;;  %vm421_vm14 = vmand %vm413_vm13, %vm417_vm5  ;;  %v461_v58 = vadd.s32 %v457_v53, %v361_v36  ;;  %vm442_vm15 = vcmp.lt.s32.totalorder %v402_v51, 8  ;;  %v450_v59 = vmul.u32 64, %v402_v51  ;;  %v454_v60 = vmul.u32 8, %v382_v50 }
  0x52   : > { %vm429_vm12 = vmand %vm421_vm14, %vm425_vm6  ;;  %v515_v61 = vsel %vm471_vm9, %v477_v55, %v498_v56  ;;  %v520_v62 = vsub.f32 1.0, %v3787_v52  ;;  %vm7922_vm2 = vcmp.ge.s32.totalorder %v401_v44, 0  ;;  %v525_v63 = vrot.slane %v3787_v52, %v3729_v10 }
  0x53   : > { %vm437_vm3 = vmand %vm429_vm12, %vm7922_vm2  ;;  %vm567_vm5 = vcmp.eq.s32.totalorder %v3742_v16, 1  ;;  %v568_v0 = vsub.f32 1.0, %v3792_v54  ;;  %v573_v1 = vrot.slane %v3792_v54, %v3729_v10  ;;  %vm7923_vm6 = vcmp.lt.s32.totalorder %v401_v44, 8 }
  0x54   : > { %vm445_vm10 = vmand %vm437_vm3, %vm7923_vm6  ;;  %v458_v2 = vadd.s32 %v454_v60, %v450_v59  ;;  %v546_v3 = vrot.slane %v520_v62, %v3729_v10  ;;  %v481_v5 = vrot.slane %v3721_v4, %v3731_v11  ;;  %v502_v6 = vrot.slane %v3738_v14, %v3731_v11 }
  0x55   : > { %v465_v8 = vsel %vm445_vm10, %v461_v58, 4294967295  ;;  %vm414_vm12 = vmand %vm406_vm0, %vm410_vm1  ;;  %v594_v9 = vrot.slane %v568_v0, %v3729_v10  ;;  %v529_v17 = vrot.slane %v3787_v52, %v3731_v11  ;;  %v550_v18 = vrot.slane %v520_v62, %v3731_v11 }
  0x56   : > { %469 = vst [vmem:[#allocation3 + $0x10] sm:$0xff] %v465_v8  ;;  %vm422_vm13 = vmand %vm414_vm12, %vm418_vm4  ;;  %v462_v19 = vadd.s32 %v458_v2, %v362_v49  ;;  %v563_v20 = vsel %vm519_vm11, %v525_v63, %v546_v3  ;;  %v516_v21 = vsel %vm471_vm9, %v481_v5, %v502_v6  ;;  %v577_v22 = vrot.slane %v3792_v54, %v3731_v11 }
  0x57   : > { %vm430_vm0 = vmand %vm422_vm13, %vm426_vm7  ;;  %v611_v10 = vsel %vm567_vm5, %v573_v1, %v594_v9  ;;  %v615_v23 = vmul.f32 %v563_v20, %v515_v61  ;;  %v564_v24 = vsel %vm519_vm11, %v529_v17, %v550_v18  ;;  %v598_v25 = vrot.slane %v568_v0, %v3731_v11 }
  0x58   : > { %vm438_vm1 = vmand %vm430_vm0, %vm434_vm8  ;;  %v616_v26 = vmul.f32 %v564_v24, %v516_v21  ;;  %v485_v27 = vrot.slane %v3721_v4, %v3733_v12  ;;  %v506_v28 = vrot.slane %v3738_v14, %v3733_v12  ;;  %v533_v29 = vrot.slane %v3787_v52, %v3733_v12 }
  0x59   : > { %vm446_vm4 = vmand %vm438_vm1, %vm442_vm15  ;;  %v619_v30 = vmul.f32 %v615_v23, %v611_v10  ;;  %v612_v31 = vsel %vm567_vm5, %v577_v22, %v598_v25  ;;  %v554_v11 = vrot.slane %v520_v62, %v3733_v12  ;;  %v581_v32 = vrot.slane %v3792_v54, %v3733_v12 }
  0x5a   : > { %v466_v33 = vsel %vm446_vm4, %v462_v19, 4294967295  ;;  %v620_v34 = vmul.f32 %v616_v26, %v612_v31  ;;  %v517_v35 = vsel %vm471_vm9, %v485_v27, %v506_v28  ;;  %v602_v36 = vrot.slane %v568_v0, %v3733_v12 }
  0x5b   : > { %470 = vst [vmem:[#allocation3 + $0x18] sm:$0xff] %v466_v33  ;;  %623 = vst [vmem:[#allocation4] sm:$0xff] %v619_v30  ;;  %v565_v37 = vsel %vm519_vm11, %v533_v29, %v554_v11  ;;  %v489_v38 = vrot.slane %v3721_v4, %v3735_v13  ;;  %v510_v39 = vrot.slane %v3738_v14, %v3735_v13 }
  0x5c   : > { %v537_v40 = vrot.slane %v3787_v52, %v3735_v13  ;;  %624 = vst [vmem:[#allocation4 + $0x8] sm:$0xff] %v620_v34  ;;  %v613_v41 = vsel %vm567_vm5, %v581_v32, %v602_v36  ;;  %v617_v42 = vmul.f32 %v565_v37, %v517_v35  ;;  %v558_v12 = vrot.slane %v520_v62, %v3735_v13 }
  0x5d   : > { %v585_v43 = vrot.slane %v3792_v54, %v3735_v13  ;;  %v518_v44 = vsel %vm471_vm9, %v489_v38, %v510_v39  ;;  %v606_v4 = vrot.slane %v568_v0, %v3735_v13 }
  0x5e   : > { %v621_v45 = vmul.f32 %v617_v42, %v613_v41  ;;  %v566_v14 = vsel %vm519_vm11, %v537_v40, %v558_v12 }
  0x5f   : > { %v614_v46 = vsel %vm567_vm5, %v585_v43, %v606_v4  ;;  %v618_v47 = vmul.f32 %v566_v14, %v518_v44 }
  0x60   : > { %625 = vst [vmem:[#allocation4 + $0x10] sm:$0xff] %v621_v45 }
  0x61   : > { %v622_v48 = vmul.f32 %v618_v47, %v614_v46 }
  0x63   : > { %626 = vst [vmem:[#allocation4 + $0x18] sm:$0xff] %v622_v48 }
  0x64 PF: > { %s627_s7 = sld [smem:[#allocation6 + %s3569_s30]] }
  0x6a   : > { %p3376_p11 = scmp.ge.s32.totalorder %s3565_s29, %s627_s7 }
  0x6c   : > { %631 = sbr.rel (%p3376_p11) target bundleno = 867 (0x363), region = 40 }
  0x71   : > { %s634_s11 = sld [smem:[#allocation7 + %s3697_s21]]  ;;  %v637_v7 = vlaneseq  ;;  %v3877_v13 = vld [vmem:[#allocation4] ss:$8 sm:$0xf] }
  0x72   : > { %v3881_v49 = vld [vmem:[#allocation4 + $0x1] ss:$8 sm:$0xf]  ;;  %v670_v16 = vld [vmem:[#allocation3] ss:$8 sm:$0xf] }
  0x73   : > { %v3879_v15 = vshrl.u32 %v637_v7, 7  ;;  %v968_v50 = vld [vmem:[#allocation3 + $0x1] ss:$8 sm:$0xf] }
  0x74   : > { %v1266_v51 = vld [vmem:[#allocation3 + $0x2] ss:$8 sm:$0xf]  ;;  %v1564_v55 = vld [vmem:[#allocation3 + $0x3] ss:$8 sm:$0xf] }
  0x75   : > { %7924 = vst [vmem:[#allocation16_spill] sm:$0xff] %v3879_v15  ;;  %v3883_v52 = vld [vmem:[#allocation4 + $0x2] ss:$8 sm:$0xf]  ;;  %v3886_v53 = vadd.s32 120, %v3879_v15  ;;  %v679_v54 = vsub.s32 1, %v3879_v15 }
  0x76   : > { %v3890_v56 = vsub.s32 3, %v3879_v15  ;;  %v3892_v57 = vld [vmem:[#allocation4 + $0x3] ss:$8 sm:$0xf] }
  0x77   : > { %v1862_v58 = vld [vmem:[#allocation3 + $0x4] ss:$8 sm:$0xf]  ;;  %s3378_s12 = sshll.u32 %s634_s11, 8  ;;  %v3895_v59 = vrot.slane %v3877_v13, %v679_v54  ;;  %v3898_v60 = vrot.slane %v3881_v49, %v679_v54  ;;  %v3901_v61 = vrot.slane %v3883_v52, %v679_v54  ;;  %v3904_v62 = vrot.slane %v3892_v57, %v679_v54 }
  0x78   : > { %v3906_v63 = vld [vmem:[#allocation4 + $0x4] ss:$8 sm:$0xf]  ;;  %v671_v0 = vstv %s3378_s12  ;;  %v2160_v2 = vld [vmem:[#allocation3 + $0x5] ss:$8 sm:$0xf]  ;;  %v3915_v5 = vrot.slane %v3877_v13, %v3890_v56  ;;  %v3919_v6 = vrot.slane %v3881_v49, %v3890_v56  ;;  %v4002_v41 = vrot.slane %v3883_v52, %v3890_v56 }
  0x79   : > { %7925 = vst [vmem:[#allocation17_spill] sm:$0xff] %v3895_v59  ;;  %7926 = vst [vmem:[#allocation18_spill] sm:$0xff] %v3898_v60  ;;  %v3909_v1 = vrot.slane %v3906_v63, %v679_v54  ;;  %v3911_v3 = vld [vmem:[#allocation4 + $0x5] ss:$8 sm:$0xf]  ;;  %v3921_v8 = vsub.s32 %v670_v16, %v671_v0  ;;  %v3923_v9 = vsub.s32 %v968_v50, %v671_v0 }
  0x7a   : > { %7927 = vst [vmem:[#allocation19_spill] sm:$0xff] %v3901_v61  ;;  %7928 = vst [vmem:[#allocation20_spill] sm:$0xff] %v3904_v62  ;;  %v3925_v17 = vsub.s32 %v1266_v51, %v671_v0  ;;  %v3927_v18 = vsub.s32 %v1564_v55, %v671_v0  ;;  %v2458_v19 = vld [vmem:[#allocation3 + $0x6] ss:$8 sm:$0xf]  ;;  %v3931_v21 = vsub.s32 %v1862_v58, %v671_v0 }
  0x7b   : > { %7929 = vst [vmem:[#allocation21_spill] sm:$0xff] %v3909_v1  ;;  %7930 = vst [vmem:[#allocation22_spill] sm:$0xff] %v3915_v5  ;;  %v3929_v20 = vld [vmem:[#allocation4 + $0x6] ss:$8 sm:$0xf]  ;;  %v3933_v22 = vsub.s32 %v2160_v2, %v671_v0  ;;  %v3936_v10 = vrot.slane %v3911_v3, %v679_v54  ;;  %v3938_v23 = vsub.s32 %v2458_v19, %v671_v0 }
  0x7c   : > { %7931 = vst [vmem:[#allocation23_spill] sm:$0xff] %v3919_v6  ;;  %v3941_v24 = vrot.slane %v3921_v8, %v679_v54  ;;  %v3944_v25 = vrot.slane %v3923_v9, %v679_v54  ;;  %v3947_v26 = vrot.slane %v3925_v17, %v679_v54  ;;  %v3950_v27 = vrot.slane %v3927_v18, %v679_v54  ;;  %v2756_v11 = vld [vmem:[#allocation3 + $0x7] ss:$8 sm:$0xf] }
  0x7d   : > { %7932 = vst [vmem:[#allocation24_spill] sm:$0xff] %v3936_v10  ;;  %v3953_v28 = vrot.slane %v3931_v21, %v679_v54  ;;  %v3956_v29 = vrot.slane %v3933_v22, %v679_v54  ;;  %v3959_v30 = vrot.slane %v3938_v23, %v679_v54  ;;  %v3962_v31 = vrot.slane %v3929_v20, %v679_v54  ;;  %v3964_v32 = vld [vmem:[#allocation4 + $0x7] ss:$8 sm:$0xf] }
  0x7e   : > { %vm750_vm15 = vcmp.eq.s32.totalorder %v3886_v53, %v3941_v24  ;;  %vm1047_vm9 = vcmp.eq.s32.totalorder %v3886_v53, %v3944_v25  ;;  %vm1345_vm11 = vcmp.eq.s32.totalorder %v3886_v53, %v3947_v26  ;;  %vm1643_vm14 = vcmp.eq.s32.totalorder %v3886_v53, %v3950_v27  ;;  %7941 = vst [vmem:[#allocation33_spill] sm:$0xff] %v4002_v41 }
  0x7f   : > { %7933 = vst [vmem:[#allocation25_spill] sm:$0xff] %v3953_v28  ;;  %7934 = vst [vmem:[#allocation26_spill] sm:$0xff] %v3956_v29  ;;  %v900_v33 = vsel %vm750_vm15, %v3895_v59, 0.0  ;;  %vm1941_vm7 = vcmp.eq.s32.totalorder %v3886_v53, %v3953_v28  ;;  %vm2239_vm8 = vcmp.eq.s32.totalorder %v3886_v53, %v3956_v29  ;;  %vm2537_vm2 = vcmp.eq.s32.totalorder %v3886_v53, %v3959_v30 }
  0x80   : > { %7935 = vst [vmem:[#allocation27_spill] sm:$0xff] %v3959_v30  ;;  %7936 = vst [vmem:[#allocation28_spill] sm:$0xff] %v3962_v31  ;;  %v1198_v34 = vsel %vm1047_vm9, %v3898_v60, %v900_v33  ;;  %v3982_v35 = vsub.s32 %v2756_v11, %v671_v0  ;;  %v3985_v36 = vrot.slane %v3964_v32, %v679_v54 }
  0x81   : > { %v3989_v37 = vrot.slane %v3921_v8, %v3890_v56  ;;  %v1496_v38 = vsel %vm1345_vm11, %v3901_v61, %v1198_v34  ;;  %v3994_v39 = vrot.slane %v3923_v9, %v3890_v56  ;;  %v3998_v40 = vrot.slane %v3925_v17, %v3890_v56 }
  0x82   : > { %7937 = vst [vmem:[#allocation29_spill] sm:$0xff] %v3985_v36  ;;  %v1794_v42 = vsel %vm1643_vm14, %v3904_v62, %v1496_v38  ;;  %v4006_v12 = vrot.slane %v3982_v35, %v679_v54  ;;  %v4012_v43 = vrot.slane %v3927_v18, %v3890_v56  ;;  %v4036_v48 = vrot.slane %v3892_v57, %v3890_v56 }
  0x83   : > { %7938 = vst [vmem:[#allocation30_spill] sm:$0xff] %v3989_v37  ;;  %7939 = vst [vmem:[#allocation31_spill] sm:$0xff] %v3994_v39  ;;  %vm752_vm3 = vcmp.eq.s32.totalorder %v3886_v53, %v3989_v37  ;;  %v2092_v44 = vsel %vm1941_vm7, %v3909_v1, %v1794_v42  ;;  %vm1049_vm5 = vcmp.eq.s32.totalorder %v3886_v53, %v3994_v39  ;;  %v675_v34 = vsub.s32 0, %v3879_v15 }
  0x84   : > { %7940 = vst [vmem:[#allocation32_spill] sm:$0xff] %v3998_v40  ;;  %7942 = vst [vmem:[#allocation34_spill] sm:$0xff] %v4012_v43  ;;  %v902_v4 = vsel %vm752_vm3, %v3915_v5, 0.0  ;;  %vm1347_vm6 = vcmp.eq.s32.totalorder %v3886_v53, %v3998_v40  ;;  %v2390_v45 = vsel %vm2239_vm8, %v3936_v10, %v2092_v44  ;;  %vm2835_vm10 = vcmp.eq.s32.totalorder %v3886_v53, %v4006_v12 }
  0x85   : > { %v1200_v14 = vsel %vm1049_vm5, %v3919_v6, %v902_v4  ;;  %vm1645_vm12 = vcmp.eq.s32.totalorder %v3886_v53, %v4012_v43  ;;  %v2688_v46 = vsel %vm2537_vm2, %v3962_v31, %v2390_v45  ;;  %7943 = vst [vmem:[#allocation35_spill] sm:$0xff] %v4036_v48  ;;  %v4040_v7 = vrot.slane %v3931_v21, %v3890_v56 }
  0x86   : > { %v1498_v47 = vsel %vm1347_vm6, %v4002_v41, %v1200_v14  ;;  %v2986_v16 = vsel %vm2835_vm10, %v3985_v36, %v2688_v46  ;;  %v4045_v50 = vrot.slane %v3906_v63, %v3890_v56  ;;  %v4049_v51 = vrot.slane %v3933_v22, %v3890_v56 }
  0x87   : > { %7944 = vst [vmem:[#allocation36_spill] sm:$0xff] %v4040_v7  ;;  %v4053_v54 = vrot.slane %v3911_v3, %v3890_v56  ;;  %3058 = vmatprep.subr.mxu0 %v2986_v16  ;;  %v1796_v55 = vsel %vm1645_vm12, %v4036_v48, %v1498_v47  ;;  %vm1943_vm13 = vcmp.eq.s32.totalorder %v3886_v53, %v4040_v7  ;;  %v4082_v38 = vsub.s32 2, %v3879_v15 }
  0x88   : > { %7945 = vst [vmem:[#allocation37_spill] sm:$0xff] %v4045_v50  ;;  %7946 = vst [vmem:[#allocation38_spill] sm:$0xff] %v4049_v51  ;;  %v4060_v58 = vrot.slane %v3938_v23, %v3890_v56  ;;  %v4064_v0 = vrot.slane %v3929_v20, %v3890_v56  ;;  %v2094_v2 = vsel %vm1943_vm13, %v4045_v50, %v1796_v55  ;;  %v4088_v44 = vadd.s32 112, %v3879_v15 }
  0x89   : > { %7947 = vst [vmem:[#allocation39_spill] sm:$0xff] %v4053_v54  ;;  %vm2241_vm0 = vcmp.eq.s32.totalorder %v3886_v53, %v4049_v51  ;;  %v4071_v19 = vrot.slane %v3982_v35, %v3890_v56  ;;  %v4075_v11 = vrot.slane %v3964_v32, %v3890_v56  ;;  %v4091_v56 = vadd.s32 104, %v3879_v15 }
  0x8a   : > { %7948 = vst [vmem:[#allocation40_spill] sm:$0xff] %v4060_v58  ;;  %7949 = vst [vmem:[#allocation41_spill] sm:$0xff] %v4064_v0  ;;  %v2392_v33 = vsel %vm2241_vm0, %v4053_v54, %v2094_v2  ;;  %vm2539_vm1 = vcmp.eq.s32.totalorder %v3886_v53, %v4060_v58  ;;  %v4095_v45 = vrot.slane %v3921_v8, %v675_v34 }
  0x8b   : > { %7950 = vst [vmem:[#allocation42_spill] sm:$0xff] %v4071_v19  ;;  %7951 = vst [vmem:[#allocation43_spill] sm:$0xff] %v4075_v11  ;;  %v2690_v42 = vsel %vm2539_vm1, %v4064_v0, %v2392_v33  ;;  %vm2837_vm4 = vcmp.eq.s32.totalorder %v3886_v53, %v4071_v19  ;;  %v4098_v14 = vrot.slane %v3877_v13, %v675_v34 }
  0x8c   : > { %7952 = vst [vmem:[#allocation44_spill] sm:$0xff] %v4091_v56  ;;  %v2988_v4 = vsel %vm2837_vm4, %v4075_v11, %v2690_v42  ;;  %7953 = vst [vmem:[#allocation45_spill] sm:$0xff] %v4095_v45  ;;  %v4101_v46 = vrot.slane %v3923_v9, %v675_v34  ;;  %v4104_v47 = vrot.slane %v3881_v49, %v675_v34 }
  0x8d   : > { %7954 = vst [vmem:[#allocation46_spill] sm:$0xff] %v4098_v14  ;;  %3129 = vmatprep.subr.mxu1 %v2988_v4  ;;  %v4107_v16 = vrot.slane %v3925_v17, %v675_v34  ;;  %v4110_v55 = vrot.slane %v3883_v52, %v675_v34  ;;  %v4113_v2 = vrot.slane %v3927_v18, %v675_v34 }
  0x8e   : > { %7955 = vst [vmem:[#allocation47_spill] sm:$0xff] %v4101_v46  ;;  %7956 = vst [vmem:[#allocation48_spill] sm:$0xff] %v4104_v47  ;;  %vm749_vm15 = vcmp.eq.s32.totalorder %v3886_v53, %v4095_v45  ;;  %vm1046_vm9 = vcmp.eq.s32.totalorder %v3886_v53, %v4101_v46  ;;  %v4120_v33 = vrot.slane %v3892_v57, %v675_v34 }
  0x8f   : > { %7957 = vst [vmem:[#allocation49_spill] sm:$0xff] %v4107_v16  ;;  %7958 = vst [vmem:[#allocation50_spill] sm:$0xff] %v4110_v55  ;;  %v4123_v42 = vrot.slane %v3931_v21, %v675_v34  ;;  %v899_v4 = vsel %vm749_vm15, %v4098_v14, 0.0  ;;  %vm1344_vm11 = vcmp.eq.s32.totalorder %v3886_v53, %v4107_v16  ;;  %vm1642_vm14 = vcmp.eq.s32.totalorder %v3886_v53, %v4113_v2 }
  0x90   : > { %7959 = vst [vmem:[#allocation51_spill] sm:$0xff] %v4113_v2  ;;  %7960 = vst [vmem:[#allocation52_spill] sm:$0xff] %v4120_v33  ;;  %v4131_v15 = vrot.slane %v3906_v63, %v675_v34  ;;  %v1197_v56 = vsel %vm1046_vm9, %v4104_v47, %v899_v4  ;;  %v4137_v11 = vrot.slane %v3933_v22, %v675_v34 }
  0x91   : > { %7961 = vst [vmem:[#allocation53_spill] sm:$0xff] %v4123_v42  ;;  %vm1940_vm7 = vcmp.eq.s32.totalorder %v3886_v53, %v4123_v42  ;;  %v4140_v0 = vrot.slane %v3911_v3, %v675_v34  ;;  %v1495_v54 = vsel %vm1344_vm11, %v4110_v55, %v1197_v56  ;;  %v4144_v16 = vrot.slane %v3938_v23, %v675_v34 }
  0x92   : > { %7962 = vst [vmem:[#allocation54_spill] sm:$0xff] %v4131_v15  ;;  %7963 = vst [vmem:[#allocation55_spill] sm:$0xff] %v4137_v11  ;;  %v4147_v2 = vrot.slane %v3929_v20, %v675_v34  ;;  %v4150_v50 = vrot.slane %v3982_v35, %v675_v34  ;;  %v1793_v4 = vsel %vm1642_vm14, %v4120_v33, %v1495_v54 }
  0x93   : > { %7964 = vst [vmem:[#allocation56_spill] sm:$0xff] %v4140_v0  ;;  %7965 = vst [vmem:[#allocation57_spill] sm:$0xff] %v4144_v16  ;;  %vm2238_vm8 = vcmp.eq.s32.totalorder %v3886_v53, %v4137_v11  ;;  %v4156_v42 = vrot.slane %v3964_v32, %v675_v34  ;;  %v4160_v56 = vrot.slane %v3921_v8, %v4082_v38 }
  0x94   : > { %7966 = vst [vmem:[#allocation58_spill] sm:$0xff] %v4147_v2  ;;  %7967 = vst [vmem:[#allocation59_spill] sm:$0xff] %v4150_v50  ;;  %v2091_v55 = vsel %vm1940_vm7, %v4131_v15, %v1793_v4  ;;  %vm2536_vm2 = vcmp.eq.s32.totalorder %v3886_v53, %v4144_v16  ;;  %vm2834_vm3 = vcmp.eq.s32.totalorder %v3886_v53, %v4150_v50 }
  0x95   : > { %v4169_v54 = vrot.slane %v3877_v13, %v4082_v38  ;;  %v2389_v33 = vsel %vm2238_vm8, %v4140_v0, %v2091_v55  ;;  %vm751_vm5 = vcmp.eq.s32.totalorder %v3886_v53, %v4160_v56  ;;  %v4176_v8 = vrot.slane %v3923_v9, %v4082_v38 }
  0x96   : > { %v4180_v34 = vrot.slane %v3881_v49, %v4082_v38  ;;  %v2687_v4 = vsel %vm2536_vm2, %v4147_v2, %v2389_v33  ;;  %v4186_v13 = vrot.slane %v3925_v17, %v4082_v38  ;;  %v4190_v55 = vrot.slane %v3883_v52, %v4082_v38 }
  0x97   : > { %7968 = vst [vmem:[#allocation60_spill] sm:$0xff] %v4169_v54  ;;  %7969 = vst [vmem:[#allocation61_spill] sm:$0xff] %v4176_v8  ;;  %v901_v15 = vsel %vm751_vm5, %v4169_v54, 0.0  ;;  %v2985_v0 = vsel %vm2834_vm3, %v4156_v42, %v2687_v4  ;;  %vm1048_vm6 = vcmp.eq.s32.totalorder %v3886_v53, %v4176_v8  ;;  %v4197_v49 = vrot.slane %v3927_v18, %v4082_v38 }
  0x98   : > { %7970 = vst [vmem:[#allocation62_spill] sm:$0xff] %v4180_v34  ;;  %7971 = vst [vmem:[#allocation63_spill] sm:$0xff] %v4186_v13  ;;  %v4201_v9 = vrot.slane %v3892_v57, %v4082_v38  ;;  %3059 = vmatpush1.msra.mxu0 %v2985_v0  ;;  %v1199_v17 = vsel %vm1048_vm6, %v4180_v34, %v901_v15  ;;  %vm1346_vm10 = vcmp.eq.s32.totalorder %v3886_v53, %v4186_v13 }
  0x99   : > { %7972 = vst [vmem:[#allocation64_spill] sm:$0xff] %v4190_v55  ;;  %7973 = vst [vmem:[#allocation65_spill] sm:$0xff] %v4197_v49  ;;  %v4208_v52 = vrot.slane %v3931_v21, %v4082_v38  ;;  %v4212_v33 = vrot.slane %v3906_v63, %v4082_v38  ;;  %v1497_v18 = vsel %vm1346_vm10, %v4190_v55, %v1199_v17 }
  0x9a   : > { %7974 = vst [vmem:[#allocation66_spill] sm:$0xff] %v4201_v9  ;;  %vm1644_vm12 = vcmp.eq.s32.totalorder %v3886_v53, %v4197_v49  ;;  %v4219_v57 = vrot.slane %v3933_v22, %v4082_v38  ;;  %v4223_v15 = vrot.slane %v3911_v3, %v4082_v38  ;;  %v4230_v63 = vrot.slane %v3938_v23, %v4082_v38 }
  0x9b   : > { %7975 = vst [vmem:[#allocation67_spill] sm:$0xff] %v4208_v52  ;;  %v1795_v21 = vsel %vm1644_vm12, %v4201_v9, %v1497_v18  ;;  %vm1942_vm13 = vcmp.eq.s32.totalorder %v3886_v53, %v4208_v52  ;;  %v4234_v0 = vrot.slane %v3929_v20, %v4082_v38  ;;  %v4241_v3 = vrot.slane %v3982_v35, %v4082_v38 }
  0x9c   : > { %7976 = vst [vmem:[#allocation68_spill] sm:$0xff] %v4219_v57  ;;  %7977 = vst [vmem:[#allocation69_spill] sm:$0xff] %v4230_v63  ;;  %v2093_v22 = vsel %vm1942_vm13, %v4212_v33, %v1795_v21  ;;  %vm2240_vm0 = vcmp.eq.s32.totalorder %v3886_v53, %v4219_v57  ;;  %v4245_v4 = vrot.slane %v3964_v32, %v4082_v38 }
  0x9d   : > { %7978 = vst [vmem:[#allocation70_spill] sm:$0xff] %v4234_v0  ;;  %7979 = vst [vmem:[#allocation71_spill] sm:$0xff] %v4241_v3  ;;  %v2391_v23 = vsel %vm2240_vm0, %v4223_v15, %v2093_v22  ;;  %vm2538_vm1 = vcmp.eq.s32.totalorder %v3886_v53, %v4230_v63  ;;  %vm746_vm4 = vcmp.eq.s32.totalorder %v4088_v44, %v3941_v24 }
  0x9e   : > { %7980 = vst [vmem:[#allocation72_spill] sm:$0xff] %v4245_v4  ;;  %vm1043_vm15 = vcmp.eq.s32.totalorder %v4088_v44, %v3944_v25  ;;  %v2689_v20 = vsel %vm2538_vm1, %v4234_v0, %v2391_v23  ;;  %vm2836_vm9 = vcmp.eq.s32.totalorder %v3886_v53, %v4241_v3  ;;  %v896_v35 = vsel %vm746_vm4, %v3895_v59, 0.0 }
  0x9f   : > { %vm1341_vm11 = vcmp.eq.s32.totalorder %v4088_v44, %v3947_v26  ;;  %v2987_v32 = vsel %vm2836_vm9, %v4245_v4, %v2689_v20  ;;  %v1194_v38 = vsel %vm1043_vm15, %v3898_v60, %v896_v35  ;;  %vm1639_vm14 = vcmp.eq.s32.totalorder %v4088_v44, %v3950_v27 }
  0xa0   : > { %vm1937_vm7 = vcmp.eq.s32.totalorder %v4088_v44, %v3953_v28  ;;  %3130 = vmatpush1.msra.mxu1 %v2987_v32  ;;  %v1492_v17 = vsel %vm1341_vm11, %v3901_v61, %v1194_v38  ;;  %vm2235_vm8 = vcmp.eq.s32.totalorder %v4088_v44, %v3956_v29  ;;  %vm2533_vm2 = vcmp.eq.s32.totalorder %v4088_v44, %v3959_v30 }
  0xa1   : > { %vm2831_vm3 = vcmp.eq.s32.totalorder %v4088_v44, %v4006_v12  ;;  %v1790_v53 = vsel %vm1639_vm14, %v3904_v62, %v1492_v17  ;;  %vm748_vm5 = vcmp.eq.s32.totalorder %v4088_v44, %v3989_v37  ;;  %vm1045_vm6 = vcmp.eq.s32.totalorder %v4088_v44, %v3994_v39 }
  0xa2   : > { %vm1343_vm10 = vcmp.eq.s32.totalorder %v4088_v44, %v3998_v40  ;;  %v2088_v18 = vsel %vm1937_vm7, %v3909_v1, %v1790_v53  ;;  %v898_v21 = vsel %vm748_vm5, %v3915_v5, 0.0  ;;  %vm1641_vm12 = vcmp.eq.s32.totalorder %v4088_v44, %v4012_v43  ;;  %v7981_v53 = vld [vmem:[#allocation37_spill] sm:$0xff] }
  0xa3   : > { %vm1939_vm13 = vcmp.eq.s32.totalorder %v4088_v44, %v4040_v7  ;;  %v2386_v22 = vsel %vm2235_vm8, %v3936_v10, %v2088_v18  ;;  %v1196_v23 = vsel %vm1045_vm6, %v3919_v6, %v898_v21  ;;  %vm2237_vm0 = vcmp.eq.s32.totalorder %v4088_v44, %v4049_v51 }
  0xa4   : > { %vm2535_vm1 = vcmp.eq.s32.totalorder %v4088_v44, %v4060_v58  ;;  %v2684_v20 = vsel %vm2533_vm2, %v3962_v31, %v2386_v22  ;;  %v1494_v35 = vsel %vm1343_vm10, %v4002_v41, %v1196_v23  ;;  %vm2833_vm4 = vcmp.eq.s32.totalorder %v4088_v44, %v4071_v19  ;;  %v7982_v22 = vld [vmem:[#allocation49_spill] sm:$0xff]  ;;  %v7983_v23 = vld [vmem:[#allocation51_spill] sm:$0xff] }
  0xa5   : > { %vm745_vm15 = vcmp.eq.s32.totalorder %v4088_v44, %v4095_v45  ;;  %v2982_v32 = vsel %vm2831_vm3, %v3985_v36, %v2684_v20  ;;  %v1792_v38 = vsel %vm1641_vm12, %v4036_v48, %v1494_v35  ;;  %vm1042_vm9 = vcmp.eq.s32.totalorder %v4088_v44, %v4101_v46  ;;  %v7984_v45 = vld [vmem:[#allocation39_spill] sm:$0xff]  ;;  %v7985_v36 = vld [vmem:[#allocation50_spill] sm:$0xff]  ;;  %v7986_v48 = vld [vmem:[#allocation53_spill] sm:$0xff] }
  0xa6   : > { %v895_v17 = vsel %vm745_vm15, %v4098_v14, 0.0  ;;  %3060 = vmatprep.subr.mxu0 %v2982_v32  ;;  %v2090_v18 = vsel %vm1939_vm13, %v7981_v53, %v1792_v38  ;;  %vm1340_vm11 = vcmp.eq.s32.totalorder %v4088_v44, %v7982_v22  ;;  %vm1638_vm14 = vcmp.eq.s32.totalorder %v4088_v44, %v7983_v23  ;;  %v7987_v32 = vld [vmem:[#allocation41_spill] sm:$0xff] }
  0xa7   : > { %v1193_v21 = vsel %vm1042_vm9, %v4104_v47, %v895_v17  ;;  %v2388_v20 = vsel %vm2237_vm0, %v7984_v45, %v2090_v18  ;;  %vm1936_vm7 = vcmp.eq.s32.totalorder %v4088_v44, %v7986_v48  ;;  %vm2234_vm8 = vcmp.eq.s32.totalorder %v4088_v44, %v4137_v11  ;;  %v7988_v17 = vld [vmem:[#allocation52_spill] sm:$0xff]  ;;  %v7989_v18 = vld [vmem:[#allocation43_spill] sm:$0xff] }
  0xa8   : > { %v1491_v35 = vsel %vm1340_vm11, %v7985_v36, %v1193_v21  ;;  %v2686_v38 = vsel %vm2535_vm1, %v7987_v32, %v2388_v20  ;;  %vm2532_vm2 = vcmp.eq.s32.totalorder %v4088_v44, %v4144_v16  ;;  %vm2830_vm3 = vcmp.eq.s32.totalorder %v4088_v44, %v4150_v50  ;;  %v7990_v36 = vld [vmem:[#allocation54_spill] sm:$0xff]  ;;  %v7991_v20 = vld [vmem:[#allocation56_spill] sm:$0xff] }
  0xa9   : > { %v1789_v47 = vsel %vm1638_vm14, %v7988_v17, %v1491_v35  ;;  %v2984_v21 = vsel %vm2833_vm4, %v7989_v18, %v2686_v38  ;;  %vm747_vm5 = vcmp.eq.s32.totalorder %v4088_v44, %v4160_v56  ;;  %vm1044_vm6 = vcmp.eq.s32.totalorder %v4088_v44, %v4176_v8 }
  0xaa   : > { %v2087_v11 = vsel %vm1936_vm7, %v7990_v36, %v1789_v47  ;;  %3131 = vmatprep.subr.mxu1 %v2984_v21  ;;  %v897_v17 = vsel %vm747_vm5, %v4169_v54, 0.0  ;;  %vm1342_vm10 = vcmp.eq.s32.totalorder %v4088_v44, %v4186_v13  ;;  %vm1640_vm12 = vcmp.eq.s32.totalorder %v4088_v44, %v4197_v49 }
  0xab   : > { %v2385_v35 = vsel %vm2234_vm8, %v7991_v20, %v2087_v11  ;;  %v1195_v47 = vsel %vm1044_vm6, %v4180_v34, %v897_v17  ;;  %vm1938_vm13 = vcmp.eq.s32.totalorder %v4088_v44, %v4208_v52  ;;  %vm2236_vm0 = vcmp.eq.s32.totalorder %v4088_v44, %v4219_v57  ;;  %v7992_v17 = vld [vmem:[#allocation44_spill] sm:$0xff] }
  0xac   : > { %v2683_v38 = vsel %vm2532_vm2, %v4147_v2, %v2385_v35  ;;  %v1493_v21 = vsel %vm1342_vm10, %v4190_v55, %v1195_v47  ;;  %vm2534_vm1 = vcmp.eq.s32.totalorder %v4088_v44, %v4230_v63  ;;  %vm2832_vm4 = vcmp.eq.s32.totalorder %v4088_v44, %v4241_v3 }
  0xad   : > { %v2981_v11 = vsel %vm2830_vm3, %v4156_v42, %v2683_v38  ;;  %v1791_v35 = vsel %vm1640_vm12, %v4201_v9, %v1493_v21  ;;  %vm742_vm15 = vcmp.eq.s32.totalorder %v7992_v17, %v3941_v24  ;;  %vm1039_vm9 = vcmp.eq.s32.totalorder %v7992_v17, %v3944_v25 }
  0xae   : > { %3061 = vmatpush1.msra.mxu0 %v2981_v11  ;;  %vm1337_vm11 = vcmp.eq.s32.totalorder %v7992_v17, %v3947_v26  ;;  %v2089_v38 = vsel %vm1938_vm13, %v4212_v33, %v1791_v35  ;;  %v892_v47 = vsel %vm742_vm15, %v3895_v59, 0.0  ;;  %vm1635_vm14 = vcmp.eq.s32.totalorder %v7992_v17, %v3950_v27 }
  0xaf   : > { %vm1933_vm7 = vcmp.eq.s32.totalorder %v7992_v17, %v3953_v28  ;;  %v2387_v11 = vsel %vm2236_vm0, %v4223_v15, %v2089_v38  ;;  %v1190_v21 = vsel %vm1039_vm9, %v3898_v60, %v892_v47  ;;  %vm2231_vm8 = vcmp.eq.s32.totalorder %v7992_v17, %v3956_v29 }
  0xb0   : > { %vm2529_vm2 = vcmp.eq.s32.totalorder %v7992_v17, %v3959_v30  ;;  %v2685_v35 = vsel %vm2534_vm1, %v4234_v0, %v2387_v11  ;;  %v1488_v59 = vsel %vm1337_vm11, %v3901_v61, %v1190_v21  ;;  %vm2827_vm3 = vcmp.eq.s32.totalorder %v7992_v17, %v4006_v12 }
  0xb1   : > { %vm744_vm5 = vcmp.eq.s32.totalorder %v7992_v17, %v3989_v37  ;;  %v2983_v38 = vsel %vm2832_vm4, %v4245_v4, %v2685_v35  ;;  %v1786_v47 = vsel %vm1635_vm14, %v3904_v62, %v1488_v59  ;;  %vm1041_vm6 = vcmp.eq.s32.totalorder %v7992_v17, %v3994_v39  ;;  %v7993_v35 = vld [vmem:[#allocation35_spill] sm:$0xff] }
  0xb2   : > { %v894_v29 = vsel %vm744_vm5, %v3915_v5, 0.0  ;;  %3132 = vmatpush1.msra.mxu1 %v2983_v38  ;;  %v2084_v11 = vsel %vm1933_vm7, %v3909_v1, %v1786_v47  ;;  %vm1339_vm10 = vcmp.eq.s32.totalorder %v7992_v17, %v3998_v40  ;;  %vm1637_vm12 = vcmp.eq.s32.totalorder %v7992_v17, %v4012_v43  ;;  %v7994_v47 = vld [vmem:[#allocation29_spill] sm:$0xff] }
  0xb3   : > { %v1192_v21 = vsel %vm1041_vm6, %v3919_v6, %v894_v29  ;;  %v2382_v44 = vsel %vm2231_vm8, %v3936_v10, %v2084_v11  ;;  %vm1935_vm13 = vcmp.eq.s32.totalorder %v7992_v17, %v4040_v7  ;;  %vm2233_vm0 = vcmp.eq.s32.totalorder %v7992_v17, %v4049_v51  ;;  %v7995_v51 = vld [vmem:[#allocation45_spill] sm:$0xff] }
  0xb4   : > { %v1490_v59 = vsel %vm1339_vm10, %v4002_v41, %v1192_v21  ;;  %v2680_v29 = vsel %vm2529_vm2, %v3962_v31, %v2382_v44  ;;  %vm2531_vm1 = vcmp.eq.s32.totalorder %v7992_v17, %v4060_v58  ;;  %vm2829_vm4 = vcmp.eq.s32.totalorder %v7992_v17, %v4071_v19 }
  0xb5   : > { %v1788_v38 = vsel %vm1637_vm12, %v7993_v35, %v1490_v59  ;;  %v2978_v11 = vsel %vm2827_vm3, %v7994_v47, %v2680_v29  ;;  %vm741_vm15 = vcmp.eq.s32.totalorder %v7992_v17, %v7995_v51  ;;  %vm1038_vm9 = vcmp.eq.s32.totalorder %v7992_v17, %v4101_v46  ;;  %v7997_v47 = vld [vmem:[#allocation55_spill] sm:$0xff] }
  0xb6   : > { %v2086_v21 = vsel %vm1935_vm13, %v7981_v53, %v1788_v38  ;;  %3062 = vmatprep.subr.mxu0 %v2978_v11  ;;  %v891_v59 = vsel %vm741_vm15, %v4098_v14, 0.0  ;;  %vm1336_vm11 = vcmp.eq.s32.totalorder %v7992_v17, %v7982_v22  ;;  %vm1634_vm14 = vcmp.eq.s32.totalorder %v7992_v17, %v7983_v23  ;;  %v7996_v38 = vld [vmem:[#allocation48_spill] sm:$0xff] }
  0xb7   : > { %v2384_v44 = vsel %vm2233_vm0, %v7984_v45, %v2086_v21  ;;  %v1189_v53 = vsel %vm1038_vm9, %v7996_v38, %v891_v59  ;;  %vm1932_vm7 = vcmp.eq.s32.totalorder %v7992_v17, %v7986_v48  ;;  %vm2230_vm8 = vcmp.eq.s32.totalorder %v7992_v17, %v7997_v47  ;;  %v7998_v21 = vld [vmem:[#allocation50_spill] sm:$0xff] }
  0xb8   : > { %v2682_v29 = vsel %vm2531_vm1, %v7987_v32, %v2384_v44  ;;  %v1487_v45 = vsel %vm1336_vm11, %v7998_v21, %v1189_v53  ;;  %vm2528_vm2 = vcmp.eq.s32.totalorder %v7992_v17, %v4144_v16  ;;  %vm2826_vm3 = vcmp.eq.s32.totalorder %v7992_v17, %v4150_v50  ;;  %v7999_v44 = vld [vmem:[#allocation52_spill] sm:$0xff] }
  0xb9   : > { %v2980_v11 = vsel %vm2829_vm4, %v7989_v18, %v2682_v29  ;;  %v1785_v32 = vsel %vm1634_vm14, %v7999_v44, %v1487_v45  ;;  %vm743_vm5 = vcmp.eq.s32.totalorder %v7992_v17, %v4160_v56  ;;  %vm1040_vm6 = vcmp.eq.s32.totalorder %v7992_v17, %v4176_v8 }
  0xba   : > { %3133 = vmatprep.subr.mxu1 %v2980_v11  ;;  %vm1338_vm10 = vcmp.eq.s32.totalorder %v7992_v17, %v4186_v13  ;;  %v2083_v53 = vsel %vm1932_vm7, %v7990_v36, %v1785_v32  ;;  %v893_v59 = vsel %vm743_vm5, %v4169_v54, 0.0  ;;  %vm1636_vm12 = vcmp.eq.s32.totalorder %v7992_v17, %v4197_v49  ;;  %v8000_v49 = vld [vmem:[#allocation16_spill] sm:$0xff] }
  0xbb   : > { %vm1934_vm13 = vcmp.eq.s32.totalorder %v7992_v17, %v4208_v52  ;;  %v2381_v45 = vsel %vm2230_vm8, %v7991_v20, %v2083_v53  ;;  %v1191_v29 = vsel %vm1040_vm6, %v4180_v34, %v893_v59  ;;  %vm2232_vm0 = vcmp.eq.s32.totalorder %v7992_v17, %v4219_v57 }
  0xbc   : > { %vm2530_vm1 = vcmp.eq.s32.totalorder %v7992_v17, %v4230_v63  ;;  %v2679_v32 = vsel %vm2528_vm2, %v4147_v2, %v2381_v45  ;;  %v1489_v11 = vsel %vm1338_vm10, %v4190_v55, %v1191_v29  ;;  %vm2828_vm4 = vcmp.eq.s32.totalorder %v7992_v17, %v4241_v3 }
  0xbd   : > { %v4459_v54 = vadd.s32 96, %v8000_v49  ;;  %v2977_v53 = vsel %vm2826_vm3, %v4156_v42, %v2679_v32  ;;  %v1787_v59 = vsel %vm1636_vm12, %v4201_v9, %v1489_v11  ;;  %v4467_v57 = vadd.s32 88, %v8000_v49  ;;  %v8002_v11 = vld [vmem:[#allocation17_spill] sm:$0xff] }
  0xbe   : > { %v4470_v45 = vadd.s32 80, %v8000_v49  ;;  %3063 = vmatpush1.msra.mxu0 %v2977_v53  ;;  %v2085_v29 = vsel %vm1934_vm13, %v4212_v33, %v1787_v59  ;;  %v8003_v49 = vld [vmem:[#allocation26_spill] sm:$0xff] }
  0xbf   : > { %vm738_vm15 = vcmp.eq.s32.totalorder %v4459_v54, %v3941_v24  ;;  %vm1035_vm9 = vcmp.eq.s32.totalorder %v4459_v54, %v3944_v25  ;;  %vm1333_vm11 = vcmp.eq.s32.totalorder %v4459_v54, %v3947_v26  ;;  %v2383_v32 = vsel %vm2232_vm0, %v4223_v15, %v2085_v29 }
  0xc0   : > { %8001 = vst [vmem:[#allocation44_spill] sm:$0xff] %v4470_v45  ;;  %v888_v9 = vsel %vm738_vm15, %v8002_v11, 0.0  ;;  %vm1631_vm14 = vcmp.eq.s32.totalorder %v4459_v54, %v3950_v27  ;;  %vm1929_vm7 = vcmp.eq.s32.totalorder %v4459_v54, %v3953_v28  ;;  %v2681_v53 = vsel %vm2530_vm1, %v4234_v0, %v2383_v32 }
  0xc1   : > { %v1186_v59 = vsel %vm1035_vm9, %v3898_v60, %v888_v9  ;;  %vm2227_vm8 = vcmp.eq.s32.totalorder %v4459_v54, %v8003_v49  ;;  %vm2525_vm2 = vcmp.eq.s32.totalorder %v4459_v54, %v3959_v30  ;;  %v2979_v29 = vsel %vm2828_vm4, %v4245_v4, %v2681_v53 }
  0xc2   : > { %v1484_v45 = vsel %vm1333_vm11, %v3901_v61, %v1186_v59  ;;  %vm2823_vm3 = vcmp.eq.s32.totalorder %v4459_v54, %v4006_v12  ;;  %vm740_vm5 = vcmp.eq.s32.totalorder %v4459_v54, %v3989_v37  ;;  %3134 = vmatpush1.msra.mxu1 %v2979_v29  ;;  %vm1037_vm6 = vcmp.eq.s32.totalorder %v4459_v54, %v3994_v39  ;;  %v8004_v29 = vld [vmem:[#allocation38_spill] sm:$0xff] }
  0xc3   : > { %v1782_v9 = vsel %vm1631_vm14, %v3904_v62, %v1484_v45  ;;  %v890_v32 = vsel %vm740_vm5, %v3915_v5, 0.0  ;;  %vm1335_vm10 = vcmp.eq.s32.totalorder %v4459_v54, %v3998_v40  ;;  %vm1633_vm12 = vcmp.eq.s32.totalorder %v4459_v54, %v4012_v43 }
  0xc4   : > { %v2080_v17 = vsel %vm1929_vm7, %v3909_v1, %v1782_v9  ;;  %v1188_v53 = vsel %vm1037_vm6, %v3919_v6, %v890_v32  ;;  %vm1931_vm13 = vcmp.eq.s32.totalorder %v4459_v54, %v4040_v7  ;;  %vm2229_vm0 = vcmp.eq.s32.totalorder %v4459_v54, %v8004_v29  ;;  %v8006_v29 = vld [vmem:[#allocation37_spill] sm:$0xff] }
  0xc5   : > { %v2378_v45 = vsel %vm2227_vm8, %v3936_v10, %v2080_v17  ;;  %v1486_v59 = vsel %vm1335_vm10, %v4002_v41, %v1188_v53  ;;  %vm2527_vm1 = vcmp.eq.s32.totalorder %v4459_v54, %v4060_v58  ;;  %vm2825_vm4 = vcmp.eq.s32.totalorder %v4459_v54, %v4071_v19  ;;  %v8005_v17 = vld [vmem:[#allocation29_spill] sm:$0xff] }
  0xc6   : > { %v2676_v9 = vsel %vm2525_vm2, %v3962_v31, %v2378_v45  ;;  %v1784_v32 = vsel %vm1633_vm12, %v7993_v35, %v1486_v59  ;;  %vm737_vm15 = vcmp.eq.s32.totalorder %v4459_v54, %v7995_v51  ;;  %vm1034_vm9 = vcmp.eq.s32.totalorder %v4459_v54, %v4101_v46  ;;  %v8007_v45 = vld [vmem:[#allocation39_spill] sm:$0xff]  ;;  %v8008_v51 = vld [vmem:[#allocation41_spill] sm:$0xff] }
  0xc7   : > { %v2974_v53 = vsel %vm2823_vm3, %v8005_v17, %v2676_v9  ;;  %v2082_v58 = vsel %vm1931_vm13, %v8006_v29, %v1784_v32  ;;  %v887_v7 = vsel %vm737_vm15, %v4098_v14, 0.0  ;;  %vm1332_vm11 = vcmp.eq.s32.totalorder %v4459_v54, %v7982_v22 }
  0xc8   : > { %3064 = vmatprep.subr.mxu0 %v2974_v53  ;;  %v2380_v59 = vsel %vm2229_vm0, %v8007_v45, %v2082_v58  ;;  %v1185_v19 = vsel %vm1034_vm9, %v7996_v38, %v887_v7  ;;  %vm1630_vm14 = vcmp.eq.s32.totalorder %v4459_v54, %v7983_v23  ;;  %vm1928_vm7 = vcmp.eq.s32.totalorder %v4459_v54, %v7986_v48 }
  0xc9   : > { %v2678_v9 = vsel %vm2527_vm1, %v8008_v51, %v2380_v59  ;;  %v1483_v32 = vsel %vm1332_vm11, %v7998_v21, %v1185_v19  ;;  %vm2226_vm8 = vcmp.eq.s32.totalorder %v4459_v54, %v7997_v47  ;;  %vm2524_vm2 = vcmp.eq.s32.totalorder %v4459_v54, %v4144_v16  ;;  %v8009_v59 = vld [vmem:[#allocation60_spill] sm:$0xff] }
  0xca   : > { %v2976_v58 = vsel %vm2825_vm4, %v7989_v18, %v2678_v9  ;;  %v1781_v7 = vsel %vm1630_vm14, %v7999_v44, %v1483_v32  ;;  %vm2822_vm3 = vcmp.eq.s32.totalorder %v4459_v54, %v4150_v50  ;;  %vm739_vm5 = vcmp.eq.s32.totalorder %v4459_v54, %v4160_v56  ;;  %v8010_v32 = vld [vmem:[#allocation65_spill] sm:$0xff] }
  0xcb   : > { %3135 = vmatprep.subr.mxu1 %v2976_v58  ;;  %v2079_v53 = vsel %vm1928_vm7, %v7990_v36, %v1781_v7  ;;  %vm1036_vm6 = vcmp.eq.s32.totalorder %v4459_v54, %v4176_v8  ;;  %vm1334_vm10 = vcmp.eq.s32.totalorder %v4459_v54, %v4186_v13  ;;  %v889_v9 = vsel %vm739_vm5, %v8009_v59, 0.0  ;;  %v8011_v36 = vld [vmem:[#allocation68_spill] sm:$0xff] }
  0xcc   : > { %v2377_v19 = vsel %vm2226_vm8, %v7991_v20, %v2079_v53  ;;  %vm1632_vm12 = vcmp.eq.s32.totalorder %v4459_v54, %v8010_v32  ;;  %vm1930_vm13 = vcmp.eq.s32.totalorder %v4459_v54, %v4208_v52  ;;  %v1187_v7 = vsel %vm1036_vm6, %v4180_v34, %v889_v9 }
  0xcd   : > { %v2675_v58 = vsel %vm2524_vm2, %v4147_v2, %v2377_v19  ;;  %vm2228_vm0 = vcmp.eq.s32.totalorder %v4459_v54, %v8011_v36  ;;  %vm2526_vm1 = vcmp.eq.s32.totalorder %v4459_v54, %v4230_v63  ;;  %v1485_v20 = vsel %vm1334_vm10, %v4190_v55, %v1187_v7  ;;  %v8012_v19 = vld [vmem:[#allocation66_spill] sm:$0xff] }
  0xce   : > { %v2973_v53 = vsel %vm2822_vm3, %v4156_v42, %v2675_v58  ;;  %vm2824_vm4 = vcmp.eq.s32.totalorder %v4459_v54, %v4241_v3  ;;  %vm734_vm15 = vcmp.eq.s32.totalorder %v4467_v57, %v3941_v24  ;;  %v1783_v2 = vsel %vm1632_vm12, %v8012_v19, %v1485_v20 }
  0xcf   : > { %3065 = vmatpush1.msra.mxu0 %v2973_v53  ;;  %v884_v9 = vsel %vm734_vm15, %v8002_v11, 0.0  ;;  %vm1031_vm9 = vcmp.eq.s32.totalorder %v4467_v57, %v3944_v25  ;;  %vm1329_vm11 = vcmp.eq.s32.totalorder %v4467_v57, %v3947_v26  ;;  %v2081_v58 = vsel %vm1930_vm13, %v4212_v33, %v1783_v2 }
  0xd0   : > { %v1182_v7 = vsel %vm1031_vm9, %v3898_v60, %v884_v9  ;;  %vm1627_vm14 = vcmp.eq.s32.totalorder %v4467_v57, %v3950_v27  ;;  %vm1925_vm7 = vcmp.eq.s32.totalorder %v4467_v57, %v3953_v28  ;;  %v2379_v20 = vsel %vm2228_vm0, %v4223_v15, %v2081_v58 }
  0xd1   : > { %v1480_v53 = vsel %vm1329_vm11, %v3901_v61, %v1182_v7  ;;  %vm2223_vm8 = vcmp.eq.s32.totalorder %v4467_v57, %v8003_v49  ;;  %vm2521_vm2 = vcmp.eq.s32.totalorder %v4467_v57, %v3959_v30  ;;  %v2677_v2 = vsel %vm2526_vm1, %v4234_v0, %v2379_v20 }
  0xd2   : > { %v1778_v9 = vsel %vm1627_vm14, %v3904_v62, %v1480_v53  ;;  %vm2819_vm3 = vcmp.eq.s32.totalorder %v4467_v57, %v4006_v12  ;;  %vm736_vm5 = vcmp.eq.s32.totalorder %v4467_v57, %v3989_v37  ;;  %v2975_v58 = vsel %vm2824_vm4, %v4245_v4, %v2677_v2 }
  0xd3   : > { %v2076_v7 = vsel %vm1925_vm7, %v3909_v1, %v1778_v9  ;;  %v886_v30 = vsel %vm736_vm5, %v3915_v5, 0.0  ;;  %vm1033_vm6 = vcmp.eq.s32.totalorder %v4467_v57, %v3994_v39  ;;  %3136 = vmatpush1.msra.mxu1 %v2975_v58  ;;  %vm1331_vm10 = vcmp.eq.s32.totalorder %v4467_v57, %v3998_v40  ;;  %v8013_v9 = vld [vmem:[#allocation36_spill] sm:$0xff]  ;;  %v8014_v5 = vld [vmem:[#allocation38_spill] sm:$0xff] }
  0xd4   : > { %v2374_v20 = vsel %vm2223_vm8, %v3936_v10, %v2076_v7  ;;  %v1184_v53 = vsel %vm1033_vm6, %v3919_v6, %v886_v30  ;;  %vm1629_vm12 = vcmp.eq.s32.totalorder %v4467_v57, %v4012_v43  ;;  %vm1927_vm13 = vcmp.eq.s32.totalorder %v4467_v57, %v8013_v9  ;;  %v8015_v7 = vld [vmem:[#allocation40_spill] sm:$0xff]  ;;  %v8016_v6 = vld [vmem:[#allocation42_spill] sm:$0xff] }
  0xd5   : > { %v2672_v54 = vsel %vm2521_vm2, %v3962_v31, %v2374_v20  ;;  %v1482_v2 = vsel %vm1331_vm10, %v4002_v41, %v1184_v53  ;;  %vm2225_vm0 = vcmp.eq.s32.totalorder %v4467_v57, %v8014_v5  ;;  %vm2523_vm1 = vcmp.eq.s32.totalorder %v4467_v57, %v8015_v7  ;;  %v8017_v53 = vld [vmem:[#allocation45_spill] sm:$0xff] }
  0xd6   : > { %v2970_v58 = vsel %vm2819_vm3, %v8005_v17, %v2672_v54  ;;  %v1780_v30 = vsel %vm1629_vm12, %v7993_v35, %v1482_v2  ;;  %vm2821_vm4 = vcmp.eq.s32.totalorder %v4467_v57, %v8016_v6  ;;  %vm733_vm15 = vcmp.eq.s32.totalorder %v4467_v57, %v8017_v53 }
  0xd7   : > { %3066 = vmatprep.subr.mxu0 %v2970_v58  ;;  %v2078_v20 = vsel %vm1927_vm13, %v8006_v29, %v1780_v30  ;;  %vm1030_vm9 = vcmp.eq.s32.totalorder %v4467_v57, %v4101_v46  ;;  %vm1328_vm11 = vcmp.eq.s32.totalorder %v4467_v57, %v7982_v22  ;;  %v883_v2 = vsel %vm733_vm15, %v4098_v14, 0.0 }
  0xd8   : > { %v2376_v54 = vsel %vm2225_vm0, %v8007_v45, %v2078_v20  ;;  %vm1626_vm14 = vcmp.eq.s32.totalorder %v4467_v57, %v7983_v23  ;;  %vm1924_vm7 = vcmp.eq.s32.totalorder %v4467_v57, %v7986_v48  ;;  %v1181_v30 = vsel %vm1030_vm9, %v7996_v38, %v883_v2 }
  0xd9   : > { %v2674_v58 = vsel %vm2523_vm1, %v8008_v51, %v2376_v54  ;;  %vm2222_vm8 = vcmp.eq.s32.totalorder %v4467_v57, %v7997_v47  ;;  %vm2520_vm2 = vcmp.eq.s32.totalorder %v4467_v57, %v4144_v16  ;;  %v1479_v45 = vsel %vm1328_vm11, %v7998_v21, %v1181_v30 }
  0xda   : > { %v2972_v20 = vsel %vm2821_vm4, %v7989_v18, %v2674_v58  ;;  %vm2818_vm3 = vcmp.eq.s32.totalorder %v4467_v57, %v4150_v50  ;;  %vm735_vm5 = vcmp.eq.s32.totalorder %v4467_v57, %v4160_v56  ;;  %v1777_v54 = vsel %vm1626_vm14, %v7999_v44, %v1479_v45  ;;  %v8018_v58 = vld [vmem:[#allocation54_spill] sm:$0xff] }
  0xdb   : > { %3137 = vmatprep.subr.mxu1 %v2972_v20  ;;  %v885_v2 = vsel %vm735_vm5, %v8009_v59, 0.0  ;;  %vm1032_vm6 = vcmp.eq.s32.totalorder %v4467_v57, %v4176_v8  ;;  %vm1330_vm10 = vcmp.eq.s32.totalorder %v4467_v57, %v4186_v13  ;;  %v2075_v18 = vsel %vm1924_vm7, %v8018_v58, %v1777_v54  ;;  %v8019_v20 = vld [vmem:[#allocation56_spill] sm:$0xff]  ;;  %v8020_v13 = vld [vmem:[#allocation58_spill] sm:$0xff] }
  0xdc   : > { %v1183_v30 = vsel %vm1032_vm6, %v4180_v34, %v885_v2  ;;  %vm1628_vm12 = vcmp.eq.s32.totalorder %v4467_v57, %v8010_v32  ;;  %vm1926_vm13 = vcmp.eq.s32.totalorder %v4467_v57, %v4208_v52  ;;  %v2373_v45 = vsel %vm2222_vm8, %v8019_v20, %v2075_v18  ;;  %v8021_v18 = vld [vmem:[#allocation44_spill] sm:$0xff] }
  0xdd   : > { %v1481_v59 = vsel %vm1330_vm10, %v4190_v55, %v1183_v30  ;;  %vm2224_vm0 = vcmp.eq.s32.totalorder %v4467_v57, %v8011_v36  ;;  %vm2522_vm1 = vcmp.eq.s32.totalorder %v4467_v57, %v4230_v63  ;;  %v2671_v54 = vsel %vm2520_vm2, %v8020_v13, %v2373_v45 }
  0xde   : > { %v1779_v2 = vsel %vm1628_vm12, %v8012_v19, %v1481_v59  ;;  %vm2820_vm4 = vcmp.eq.s32.totalorder %v4467_v57, %v4241_v3  ;;  %vm730_vm15 = vcmp.eq.s32.totalorder %v8021_v18, %v3941_v24  ;;  %v2969_v30 = vsel %vm2818_vm3, %v4156_v42, %v2671_v54 }
  0xdf   : > { %v2077_v63 = vsel %vm1926_vm13, %v4212_v33, %v1779_v2  ;;  %v880_v36 = vsel %vm730_vm15, %v8002_v11, 0.0  ;;  %vm1027_vm9 = vcmp.eq.s32.totalorder %v8021_v18, %v3944_v25  ;;  %3067 = vmatpush1.msra.mxu0 %v2969_v30  ;;  %vm1325_vm11 = vcmp.eq.s32.totalorder %v8021_v18, %v3947_v26  ;;  %v8022_v2 = vld [vmem:[#allocation27_spill] sm:$0xff] }
  0xe0   : > { %v2375_v59 = vsel %vm2224_vm0, %v4223_v15, %v2077_v63  ;;  %v1178_v45 = vsel %vm1027_vm9, %v3898_v60, %v880_v36  ;;  %vm1623_vm14 = vcmp.eq.s32.totalorder %v8021_v18, %v3950_v27  ;;  %vm1921_vm7 = vcmp.eq.s32.totalorder %v8021_v18, %v3953_v28 }
  0xe1   : > { %v2673_v57 = vsel %vm2522_vm1, %v4234_v0, %v2375_v59  ;;  %v1476_v54 = vsel %vm1325_vm11, %v3901_v61, %v1178_v45  ;;  %vm2219_vm8 = vcmp.eq.s32.totalorder %v8021_v18, %v8003_v49  ;;  %vm2517_vm2 = vcmp.eq.s32.totalorder %v8021_v18, %v8022_v2  ;;  %v8023_v45 = vld [vmem:[#allocation22_spill] sm:$0xff] }
  0xe2   : > { %v2971_v63 = vsel %vm2820_vm4, %v4245_v4, %v2673_v57  ;;  %v1774_v36 = vsel %vm1623_vm14, %v3904_v62, %v1476_v54  ;;  %vm2815_vm3 = vcmp.eq.s32.totalorder %v8021_v18, %v4006_v12  ;;  %vm732_vm5 = vcmp.eq.s32.totalorder %v8021_v18, %v3989_v37 }
  0xe3   : > { %3138 = vmatpush1.msra.mxu1 %v2971_v63  ;;  %v2072_v30 = vsel %vm1921_vm7, %v3909_v1, %v1774_v36  ;;  %vm1029_vm6 = vcmp.eq.s32.totalorder %v8021_v18, %v3994_v39  ;;  %vm1327_vm10 = vcmp.eq.s32.totalorder %v8021_v18, %v3998_v40  ;;  %v882_v57 = vsel %vm732_vm5, %v8023_v45, 0.0  ;;  %v8024_v63 = vld [vmem:[#allocation23_spill] sm:$0xff] }
  0xe4   : > { %v2370_v59 = vsel %vm2219_vm8, %v3936_v10, %v2072_v30  ;;  %vm1625_vm12 = vcmp.eq.s32.totalorder %v8021_v18, %v4012_v43  ;;  %vm1923_vm13 = vcmp.eq.s32.totalorder %v8021_v18, %v8013_v9  ;;  %v1180_v36 = vsel %vm1029_vm6, %v8024_v63, %v882_v57 }
  0xe5   : > { %v2668_v54 = vsel %vm2517_vm2, %v3962_v31, %v2370_v59  ;;  %vm2221_vm0 = vcmp.eq.s32.totalorder %v8021_v18, %v8014_v5  ;;  %vm2519_vm1 = vcmp.eq.s32.totalorder %v8021_v18, %v8015_v7  ;;  %v1478_v10 = vsel %vm1327_vm10, %v4002_v41, %v1180_v36 }
  0xe6   : > { %v2966_v30 = vsel %vm2815_vm3, %v8005_v17, %v2668_v54  ;;  %vm2817_vm4 = vcmp.eq.s32.totalorder %v8021_v18, %v8016_v6  ;;  %vm729_vm15 = vcmp.eq.s32.totalorder %v8021_v18, %v8017_v53  ;;  %v1776_v59 = vsel %vm1625_vm12, %v7993_v35, %v1478_v10 }
  0xe7   : > { %3068 = vmatprep.subr.mxu0 %v2966_v30  ;;  %v879_v57 = vsel %vm729_vm15, %v4098_v14, 0.0  ;;  %vm1026_vm9 = vcmp.eq.s32.totalorder %v8021_v18, %v4101_v46  ;;  %vm1324_vm11 = vcmp.eq.s32.totalorder %v8021_v18, %v7982_v22  ;;  %v2074_v54 = vsel %vm1923_vm13, %v8006_v29, %v1776_v59  ;;  %v8025_v30 = vld [vmem:[#allocation39_spill] sm:$0xff] }
  0xe8   : > { %v1177_v36 = vsel %vm1026_vm9, %v7996_v38, %v879_v57  ;;  %vm1622_vm14 = vcmp.eq.s32.totalorder %v8021_v18, %v7983_v23  ;;  %vm1920_vm7 = vcmp.eq.s32.totalorder %v8021_v18, %v7986_v48  ;;  %v2372_v10 = vsel %vm2221_vm0, %v8025_v30, %v2074_v54  ;;  %v8026_v54 = vld [vmem:[#allocation43_spill] sm:$0xff] }
  0xe9   : > { %v1475_v17 = vsel %vm1324_vm11, %v7998_v21, %v1177_v36  ;;  %vm2218_vm8 = vcmp.eq.s32.totalorder %v8021_v18, %v7997_v47  ;;  %vm2516_vm2 = vcmp.eq.s32.totalorder %v8021_v18, %v4144_v16  ;;  %v2670_v59 = vsel %vm2519_vm1, %v8008_v51, %v2372_v10  ;;  %v8027_v47 = vld [vmem:[#allocation60_spill] sm:$0xff] }
  0xea   : > { %v1773_v57 = vsel %vm1622_vm14, %v7999_v44, %v1475_v17  ;;  %vm2814_vm3 = vcmp.eq.s32.totalorder %v8021_v18, %v4150_v50  ;;  %vm731_vm5 = vcmp.eq.s32.totalorder %v8021_v18, %v4160_v56  ;;  %v2968_v36 = vsel %vm2817_vm4, %v8026_v54, %v2670_v59  ;;  %v8028_v50 = vld [vmem:[#allocation63_spill] sm:$0xff] }
  0xeb   : > { %v2071_v16 = vsel %vm1920_vm7, %v8018_v58, %v1773_v57  ;;  %v881_v48 = vsel %vm731_vm5, %v8027_v47, 0.0  ;;  %vm1028_vm6 = vcmp.eq.s32.totalorder %v8021_v18, %v4176_v8  ;;  %3139 = vmatprep.subr.mxu1 %v2968_v36  ;;  %vm1326_vm10 = vcmp.eq.s32.totalorder %v8021_v18, %v8028_v50  ;;  %v8029_v47 = vld [vmem:[#allocation68_spill] sm:$0xff]  ;;  %v8030_v36 = vld [vmem:[#allocation69_spill] sm:$0xff] }
  0xec   : > { %v2369_v17 = vsel %vm2218_vm8, %v8019_v20, %v2071_v16  ;;  %v1179_v10 = vsel %vm1028_vm6, %v4180_v34, %v881_v48  ;;  %vm1624_vm12 = vcmp.eq.s32.totalorder %v8021_v18, %v8010_v32  ;;  %vm1922_vm13 = vcmp.eq.s32.totalorder %v8021_v18, %v4208_v52 }
  0xed   : > { %v2667_v59 = vsel %vm2516_vm2, %v8020_v13, %v2369_v17  ;;  %v1477_v57 = vsel %vm1326_vm10, %v4190_v55, %v1179_v10  ;;  %vm2220_vm0 = vcmp.eq.s32.totalorder %v8021_v18, %v8029_v47  ;;  %vm2518_vm1 = vcmp.eq.s32.totalorder %v8021_v18, %v8030_v36  ;;  %v8031_v10 = vld [vmem:[#allocation16_spill] sm:$0xff] }
  0xee   : > { %v2965_v16 = vsel %vm2814_vm3, %v4156_v42, %v2667_v59  ;;  %v1775_v48 = vsel %vm1624_vm12, %v8012_v19, %v1477_v57  ;;  %vm2816_vm4 = vcmp.eq.s32.totalorder %v8021_v18, %v4241_v3  ;;  %v4792_v55 = vadd.s32 72, %v8031_v10 }
  0xef   : > { %3069 = vmatpush1.msra.mxu0 %v2965_v16  ;;  %v2073_v17 = vsel %vm1922_vm13, %v4212_v33, %v1775_v48  ;;  %v4795_v52 = vadd.s32 64, %v8031_v10  ;;  %v4798_v47 = vadd.s32 56, %v8031_v10  ;;  %v4802_v57 = vadd.s32 48, %v8031_v10 }
  0xf0   : > { %v2371_v59 = vsel %vm2220_vm0, %v4223_v15, %v2073_v17  ;;  %v4805_v19 = vadd.s32 40, %v8031_v10  ;;  %v4808_v18 = vadd.s32 32, %v8031_v10  ;;  %vm726_vm15 = vcmp.eq.s32.totalorder %v4792_v55, %v3941_v24 }
  0xf1   : > { %8032 = vst [vmem:[#allocation44_spill] sm:$0xff] %v4798_v47  ;;  %8033 = vst [vmem:[#allocation73_spill] sm:$0xff] %v4802_v57  ;;  %v2669_v16 = vsel %vm2518_vm1, %v4234_v0, %v2371_v59  ;;  %vm1023_vm9 = vcmp.eq.s32.totalorder %v4792_v55, %v3944_v25  ;;  %vm1321_vm11 = vcmp.eq.s32.totalorder %v4792_v55, %v3947_v26  ;;  %v876_v17 = vsel %vm726_vm15, %v8002_v11, 0.0 }
  0xf2   : > { %8034 = vst [vmem:[#allocation74_spill] sm:$0xff] %v4805_v19  ;;  %8035 = vst [vmem:[#allocation75_spill] sm:$0xff] %v4808_v18  ;;  %v2967_v48 = vsel %vm2816_vm4, %v4245_v4, %v2669_v16  ;;  %vm1619_vm14 = vcmp.eq.s32.totalorder %v4792_v55, %v3950_v27  ;;  %vm1917_vm7 = vcmp.eq.s32.totalorder %v4792_v55, %v3953_v28  ;;  %v8036_v18 = vld [vmem:[#allocation24_spill] sm:$0xff] }
  0xf3   : > { %3140 = vmatpush1.msra.mxu1 %v2967_v48  ;;  %v1174_v59 = vsel %vm1023_vm9, %v3898_v60, %v876_v17  ;;  %vm2215_vm8 = vcmp.eq.s32.totalorder %v4792_v55, %v8003_v49  ;;  %vm2513_vm2 = vcmp.eq.s32.totalorder %v4792_v55, %v8022_v2  ;;  %vm2811_vm3 = vcmp.eq.s32.totalorder %v4792_v55, %v4006_v12 }
  0xf4   : > { %v1472_v16 = vsel %vm1321_vm11, %v3901_v61, %v1174_v59  ;;  %vm728_vm5 = vcmp.eq.s32.totalorder %v4792_v55, %v3989_v37  ;;  %vm1025_vm6 = vcmp.eq.s32.totalorder %v4792_v55, %v3994_v39  ;;  %vm1323_vm10 = vcmp.eq.s32.totalorder %v4792_v55, %v3998_v40 }
  0xf5   : > { %v1770_v48 = vsel %vm1619_vm14, %v3904_v62, %v1472_v16  ;;  %v878_v17 = vsel %vm728_vm5, %v8023_v45, 0.0  ;;  %vm1621_vm12 = vcmp.eq.s32.totalorder %v4792_v55, %v4012_v43  ;;  %vm1919_vm13 = vcmp.eq.s32.totalorder %v4792_v55, %v8013_v9 }
  0xf6   : > { %v2068_v59 = vsel %vm1917_vm7, %v3909_v1, %v1770_v48  ;;  %v1176_v10 = vsel %vm1025_vm6, %v8024_v63, %v878_v17  ;;  %vm2217_vm0 = vcmp.eq.s32.totalorder %v4792_v55, %v8014_v5  ;;  %vm2515_vm1 = vcmp.eq.s32.totalorder %v4792_v55, %v8015_v7 }
  0xf7   : > { %v2366_v16 = vsel %vm2215_vm8, %v8036_v18, %v2068_v59  ;;  %v1474_v19 = vsel %vm1323_vm10, %v4002_v41, %v1176_v10  ;;  %vm2813_vm4 = vcmp.eq.s32.totalorder %v4792_v55, %v8016_v6  ;;  %vm725_vm15 = vcmp.eq.s32.totalorder %v4792_v55, %v8017_v53  ;;  %v8037_v59 = vld [vmem:[#allocation29_spill] sm:$0xff] }
  0xf8   : > { %v2664_v48 = vsel %vm2513_vm2, %v3962_v31, %v2366_v16  ;;  %v1772_v17 = vsel %vm1621_vm12, %v7993_v35, %v1474_v19  ;;  %v875_v57 = vsel %vm725_vm15, %v4098_v14, 0.0  ;;  %vm1022_vm9 = vcmp.eq.s32.totalorder %v4792_v55, %v4101_v46  ;;  %v8038_v14 = vld [vmem:[#allocation53_spill] sm:$0xff] }
  0xf9   : > { %v2962_v10 = vsel %vm2811_vm3, %v8037_v59, %v2664_v48  ;;  %v2070_v47 = vsel %vm1919_vm13, %v8006_v29, %v1772_v17  ;;  %v1173_v53 = vsel %vm1022_vm9, %v7996_v38, %v875_v57  ;;  %vm1320_vm11 = vcmp.eq.s32.totalorder %v4792_v55, %v7982_v22  ;;  %v8039_v17 = vld [vmem:[#allocation55_spill] sm:$0xff] }
  0xfa   : > { %3070 = vmatprep.subr.mxu0 %v2962_v10  ;;  %v2368_v19 = vsel %vm2217_vm0, %v8025_v30, %v2070_v47  ;;  %v1471_v16 = vsel %vm1320_vm11, %v7998_v21, %v1173_v53  ;;  %vm1618_vm14 = vcmp.eq.s32.totalorder %v4792_v55, %v7983_v23  ;;  %vm1916_vm7 = vcmp.eq.s32.totalorder %v4792_v55, %v8038_v14  ;;  %v8040_v10 = vld [vmem:[#allocation57_spill] sm:$0xff]  ;;  %v8041_v21 = vld [vmem:[#allocation59_spill] sm:$0xff] }
  0xfb   : > { %v2666_v48 = vsel %vm2515_vm1, %v8008_v51, %v2368_v19  ;;  %v1769_v57 = vsel %vm1618_vm14, %v7999_v44, %v1471_v16  ;;  %vm2214_vm8 = vcmp.eq.s32.totalorder %v4792_v55, %v8039_v17  ;;  %vm2512_vm2 = vcmp.eq.s32.totalorder %v4792_v55, %v8040_v10  ;;  %v8042_v16 = vld [vmem:[#allocation60_spill] sm:$0xff] }
  0xfc   : > { %v2964_v47 = vsel %vm2813_vm4, %v8026_v54, %v2666_v48  ;;  %v2067_v53 = vsel %vm1916_vm7, %v8018_v58, %v1769_v57  ;;  %vm2810_vm3 = vcmp.eq.s32.totalorder %v4792_v55, %v8041_v21  ;;  %vm727_vm5 = vcmp.eq.s32.totalorder %v4792_v55, %v4160_v56  ;;  %v8043_v58 = vld [vmem:[#allocation67_spill] sm:$0xff] }
  0xfd   : > { %3141 = vmatprep.subr.mxu1 %v2964_v47  ;;  %v2365_v19 = vsel %vm2214_vm8, %v8019_v20, %v2067_v53  ;;  %v877_v44 = vsel %vm727_vm5, %v8042_v16, 0.0  ;;  %vm1024_vm6 = vcmp.eq.s32.totalorder %v4792_v55, %v4176_v8  ;;  %vm1322_vm10 = vcmp.eq.s32.totalorder %v4792_v55, %v8028_v50  ;;  %v8044_v53 = vld [vmem:[#allocation64_spill] sm:$0xff] }
  0xfe   : > { %v2663_v48 = vsel %vm2512_vm2, %v8020_v13, %v2365_v19  ;;  %v1175_v57 = vsel %vm1024_vm6, %v4180_v34, %v877_v44  ;;  %vm1620_vm12 = vcmp.eq.s32.totalorder %v4792_v55, %v8010_v32  ;;  %vm1918_vm13 = vcmp.eq.s32.totalorder %v4792_v55, %v8043_v58  ;;  %v8045_v16 = vld [vmem:[#allocation68_spill] sm:$0xff]  ;;  %v8046_v19 = vld [vmem:[#allocation66_spill] sm:$0xff] }
  0xff   : > { %v2961_v47 = vsel %vm2810_vm3, %v4156_v42, %v2663_v48  ;;  %v1473_v20 = vsel %vm1322_vm10, %v8044_v53, %v1175_v57  ;;  %vm2216_vm0 = vcmp.eq.s32.totalorder %v4792_v55, %v8045_v16  ;;  %vm2514_vm1 = vcmp.eq.s32.totalorder %v4792_v55, %v8030_v36 }
 0x100   : > { %3071 = vmatpush1.msra.mxu0 %v2961_v47  ;;  %v1771_v13 = vsel %vm1620_vm12, %v8046_v19, %v1473_v20  ;;  %vm2812_vm4 = vcmp.eq.s32.totalorder %v4792_v55, %v4241_v3  ;;  %vm722_vm15 = vcmp.eq.s32.totalorder %v4795_v52, %v3941_v24  ;;  %vm1019_vm9 = vcmp.eq.s32.totalorder %v4795_v52, %v3944_v25 }
 0x101   : > { %v2069_v44 = vsel %vm1918_vm13, %v4212_v33, %v1771_v13  ;;  %v872_v48 = vsel %vm722_vm15, %v8002_v11, 0.0  ;;  %vm1317_vm11 = vcmp.eq.s32.totalorder %v4795_v52, %v3947_v26  ;;  %vm1615_vm14 = vcmp.eq.s32.totalorder %v4795_v52, %v3950_v27 }
 0x102   : > { %v2367_v20 = vsel %vm2216_vm0, %v4223_v15, %v2069_v44  ;;  %v1170_v55 = vsel %vm1019_vm9, %v3898_v60, %v872_v48  ;;  %vm1913_vm7 = vcmp.eq.s32.totalorder %v4795_v52, %v3953_v28  ;;  %vm2211_vm8 = vcmp.eq.s32.totalorder %v4795_v52, %v8003_v49 }
 0x103   : > { %v2665_v13 = vsel %vm2514_vm1, %v4234_v0, %v2367_v20  ;;  %v1468_v57 = vsel %vm1317_vm11, %v3901_v61, %v1170_v55  ;;  %vm2509_vm2 = vcmp.eq.s32.totalorder %v4795_v52, %v8022_v2  ;;  %vm2807_vm3 = vcmp.eq.s32.totalorder %v4795_v52, %v4006_v12 }
 0x104   : > { %v2963_v47 = vsel %vm2812_vm4, %v4245_v4, %v2665_v13  ;;  %v1766_v44 = vsel %vm1615_vm14, %v3904_v62, %v1468_v57  ;;  %vm724_vm5 = vcmp.eq.s32.totalorder %v4795_v52, %v3989_v37  ;;  %vm1021_vm6 = vcmp.eq.s32.totalorder %v4795_v52, %v3994_v39 }
 0x105   : > { %3142 = vmatpush1.msra.mxu1 %v2963_v47  ;;  %v2064_v48 = vsel %vm1913_vm7, %v3909_v1, %v1766_v44  ;;  %v874_v20 = vsel %vm724_vm5, %v8023_v45, 0.0  ;;  %vm1319_vm10 = vcmp.eq.s32.totalorder %v4795_v52, %v3998_v40  ;;  %vm1617_vm12 = vcmp.eq.s32.totalorder %v4795_v52, %v4012_v43 }
 0x106   : > { %v2362_v55 = vsel %vm2211_vm8, %v8036_v18, %v2064_v48  ;;  %v1172_v13 = vsel %vm1021_vm6, %v8024_v63, %v874_v20  ;;  %vm1915_vm13 = vcmp.eq.s32.totalorder %v4795_v52, %v8013_v9  ;;  %vm2213_vm0 = vcmp.eq.s32.totalorder %v4795_v52, %v8014_v5  ;;  %v8047_v20 = vld [vmem:[#allocation45_spill] sm:$0xff] }
 0x107   : > { %v2660_v57 = vsel %vm2509_vm2, %v3962_v31, %v2362_v55  ;;  %v1470_v47 = vsel %vm1319_vm10, %v4002_v41, %v1172_v13  ;;  %vm2511_vm1 = vcmp.eq.s32.totalorder %v4795_v52, %v8015_v7  ;;  %vm2809_vm4 = vcmp.eq.s32.totalorder %v4795_v52, %v8016_v6  ;;  %v8048_v13 = vld [vmem:[#allocation46_spill] sm:$0xff] }
 0x108   : > { %v2958_v44 = vsel %vm2807_vm3, %v8037_v59, %v2660_v57  ;;  %v1768_v48 = vsel %vm1617_vm12, %v7993_v35, %v1470_v47  ;;  %vm721_vm15 = vcmp.eq.s32.totalorder %v4795_v52, %v8047_v20  ;;  %vm1018_vm9 = vcmp.eq.s32.totalorder %v4795_v52, %v4101_v46 }
 0x109   : > { %3072 = vmatprep.subr.mxu0 %v2958_v44  ;;  %v2066_v55 = vsel %vm1915_vm13, %v8006_v29, %v1768_v48  ;;  %v871_v7 = vsel %vm721_vm15, %v8048_v13, 0.0  ;;  %vm1316_vm11 = vcmp.eq.s32.totalorder %v4795_v52, %v7982_v22  ;;  %vm1614_vm14 = vcmp.eq.s32.totalorder %v4795_v52, %v7983_v23  ;;  %v8049_v48 = vld [vmem:[#allocation50_spill] sm:$0xff] }
 0x10a   : > { %v2364_v57 = vsel %vm2213_vm0, %v8025_v30, %v2066_v55  ;;  %v1169_v47 = vsel %vm1018_vm9, %v7996_v38, %v871_v7  ;;  %vm1912_vm7 = vcmp.eq.s32.totalorder %v4795_v52, %v8038_v14  ;;  %vm2210_vm8 = vcmp.eq.s32.totalorder %v4795_v52, %v8039_v17  ;;  %v8050_v55 = vld [vmem:[#allocation52_spill] sm:$0xff] }
 0x10b   : > { %v2662_v44 = vsel %vm2511_vm1, %v8008_v51, %v2364_v57  ;;  %v1467_v13 = vsel %vm1316_vm11, %v8049_v48, %v1169_v47  ;;  %vm2508_vm2 = vcmp.eq.s32.totalorder %v4795_v52, %v8040_v10  ;;  %vm2806_vm3 = vcmp.eq.s32.totalorder %v4795_v52, %v8041_v21  ;;  %v8051_v57 = vld [vmem:[#allocation54_spill] sm:$0xff]  ;;  %v8052_v10 = vld [vmem:[#allocation60_spill] sm:$0xff] }
 0x10c   : > { %v2960_v7 = vsel %vm2809_vm4, %v8026_v54, %v2662_v44  ;;  %v1765_v14 = vsel %vm1614_vm14, %v8050_v55, %v1467_v13  ;;  %vm723_vm5 = vcmp.eq.s32.totalorder %v4795_v52, %v4160_v56  ;;  %vm1020_vm6 = vcmp.eq.s32.totalorder %v4795_v52, %v4176_v8  ;;  %v8053_v44 = vld [vmem:[#allocation56_spill] sm:$0xff] }
 0x10d   : > { %3143 = vmatprep.subr.mxu1 %v2960_v7  ;;  %v2063_v47 = vsel %vm1912_vm7, %v8051_v57, %v1765_v14  ;;  %v873_v48 = vsel %vm723_vm5, %v8052_v10, 0.0  ;;  %vm1318_vm10 = vcmp.eq.s32.totalorder %v4795_v52, %v8028_v50  ;;  %vm1616_vm12 = vcmp.eq.s32.totalorder %v4795_v52, %v8010_v32  ;;  %v8054_v7 = vld [vmem:[#allocation58_spill] sm:$0xff] }
 0x10e   : > { %v2361_v54 = vsel %vm2210_vm8, %v8053_v44, %v2063_v47  ;;  %v1171_v13 = vsel %vm1020_vm6, %v4180_v34, %v873_v48  ;;  %vm1914_vm13 = vcmp.eq.s32.totalorder %v4795_v52, %v8043_v58  ;;  %vm2212_vm0 = vcmp.eq.s32.totalorder %v4795_v52, %v8045_v16  ;;  %v8055_v58 = vld [vmem:[#allocation44_spill] sm:$0xff] }
 0x10f   : > { %v2659_v14 = vsel %vm2508_vm2, %v8054_v7, %v2361_v54  ;;  %v1469_v10 = vsel %vm1318_vm10, %v8044_v53, %v1171_v13  ;;  %vm2510_vm1 = vcmp.eq.s32.totalorder %v4795_v52, %v8030_v36  ;;  %vm2808_vm4 = vcmp.eq.s32.totalorder %v4795_v52, %v4241_v3 }
 0x110   : > { %v2957_v48 = vsel %vm2806_vm3, %v4156_v42, %v2659_v14  ;;  %v1767_v47 = vsel %vm1616_vm12, %v8046_v19, %v1469_v10  ;;  %vm718_vm15 = vcmp.eq.s32.totalorder %v8055_v58, %v3941_v24  ;;  %vm1015_vm9 = vcmp.eq.s32.totalorder %v8055_v58, %v3944_v25 }
 0x111   : > { %3073 = vmatpush1.msra.mxu0 %v2957_v48  ;;  %v2065_v54 = vsel %vm1914_vm13, %v4212_v33, %v1767_v47  ;;  %v868_v13 = vsel %vm718_vm15, %v8002_v11, 0.0  ;;  %vm1313_vm11 = vcmp.eq.s32.totalorder %v8055_v58, %v3947_v26  ;;  %vm1611_vm14 = vcmp.eq.s32.totalorder %v8055_v58, %v3950_v27 }
 0x112   : > { %v2363_v14 = vsel %vm2212_vm0, %v4223_v15, %v2065_v54  ;;  %v1166_v10 = vsel %vm1015_vm9, %v3898_v60, %v868_v13  ;;  %vm1909_vm7 = vcmp.eq.s32.totalorder %v8055_v58, %v3953_v28  ;;  %vm2207_vm8 = vcmp.eq.s32.totalorder %v8055_v58, %v8003_v49 }
 0x113   : > { %v2661_v48 = vsel %vm2510_vm1, %v4234_v0, %v2363_v14  ;;  %v1464_v47 = vsel %vm1313_vm11, %v3901_v61, %v1166_v10  ;;  %vm2505_vm2 = vcmp.eq.s32.totalorder %v8055_v58, %v8022_v2  ;;  %vm2803_vm3 = vcmp.eq.s32.totalorder %v8055_v58, %v4006_v12 }
 0x114   : > { %v2959_v54 = vsel %vm2808_vm4, %v4245_v4, %v2661_v48  ;;  %v1762_v13 = vsel %vm1611_vm14, %v3904_v62, %v1464_v47  ;;  %vm720_vm5 = vcmp.eq.s32.totalorder %v8055_v58, %v3989_v37  ;;  %vm1017_vm6 = vcmp.eq.s32.totalorder %v8055_v58, %v3994_v39 }
 0x115   : > { %3144 = vmatpush1.msra.mxu1 %v2959_v54  ;;  %v2060_v14 = vsel %vm1909_vm7, %v3909_v1, %v1762_v13  ;;  %v870_v10 = vsel %vm720_vm5, %v8023_v45, 0.0  ;;  %vm1315_vm10 = vcmp.eq.s32.totalorder %v8055_v58, %v3998_v40  ;;  %vm1613_vm12 = vcmp.eq.s32.totalorder %v8055_v58, %v4012_v43  ;;  %v8056_v13 = vld [vmem:[#allocation40_spill] sm:$0xff] }
 0x116   : > { %v2358_v52 = vsel %vm2207_vm8, %v8036_v18, %v2060_v14  ;;  %v1168_v48 = vsel %vm1017_vm6, %v8024_v63, %v870_v10  ;;  %vm1911_vm13 = vcmp.eq.s32.totalorder %v8055_v58, %v8013_v9  ;;  %vm2209_vm0 = vcmp.eq.s32.totalorder %v8055_v58, %v8014_v5 }
 0x117   : > { %v2656_v47 = vsel %vm2505_vm2, %v3962_v31, %v2358_v52  ;;  %v1466_v54 = vsel %vm1315_vm10, %v4002_v41, %v1168_v48  ;;  %vm2507_vm1 = vcmp.eq.s32.totalorder %v8055_v58, %v8056_v13  ;;  %vm2805_vm4 = vcmp.eq.s32.totalorder %v8055_v58, %v8016_v6  ;;  %v8057_v48 = vld [vmem:[#allocation46_spill] sm:$0xff] }
 0x118   : > { %v2954_v14 = vsel %vm2803_vm3, %v8037_v59, %v2656_v47  ;;  %v1764_v10 = vsel %vm1613_vm12, %v7993_v35, %v1466_v54  ;;  %vm717_vm15 = vcmp.eq.s32.totalorder %v8055_v58, %v8047_v20  ;;  %vm1014_vm9 = vcmp.eq.s32.totalorder %v8055_v58, %v4101_v46  ;;  %v8058_v35 = vld [vmem:[#allocation53_spill] sm:$0xff] }
 0x119   : > { %3074 = vmatprep.subr.mxu0 %v2954_v14  ;;  %v2062_v52 = vsel %vm1911_vm13, %v8006_v29, %v1764_v10  ;;  %v867_v13 = vsel %vm717_vm15, %v8057_v48, 0.0  ;;  %vm1312_vm11 = vcmp.eq.s32.totalorder %v8055_v58, %v7982_v22  ;;  %vm1610_vm14 = vcmp.eq.s32.totalorder %v8055_v58, %v7983_v23  ;;  %v8059_v10 = vld [vmem:[#allocation50_spill] sm:$0xff]  ;;  %v8060_v29 = vld [vmem:[#allocation57_spill] sm:$0xff]  ;;  %v8061_v23 = vld [vmem:[#allocation43_spill] sm:$0xff] }
 0x11a   : > { %v2360_v47 = vsel %vm2209_vm0, %v8025_v30, %v2062_v52  ;;  %v1165_v54 = vsel %vm1014_vm9, %v7996_v38, %v867_v13  ;;  %vm1908_vm7 = vcmp.eq.s32.totalorder %v8055_v58, %v8058_v35  ;;  %vm2206_vm8 = vcmp.eq.s32.totalorder %v8055_v58, %v8039_v17 }
 0x11b   : > { %v2658_v14 = vsel %vm2507_vm1, %v8008_v51, %v2360_v47  ;;  %v1463_v48 = vsel %vm1312_vm11, %v8059_v10, %v1165_v54  ;;  %vm2504_vm2 = vcmp.eq.s32.totalorder %v8055_v58, %v8060_v29  ;;  %vm2802_vm3 = vcmp.eq.s32.totalorder %v8055_v58, %v8041_v21  ;;  %v8062_v54 = vld [vmem:[#allocation60_spill] sm:$0xff] }
 0x11c   : > { %v2956_v13 = vsel %vm2805_vm4, %v8061_v23, %v2658_v14  ;;  %v1761_v52 = vsel %vm1610_vm14, %v8050_v55, %v1463_v48  ;;  %vm719_vm5 = vcmp.eq.s32.totalorder %v8055_v58, %v4160_v56  ;;  %vm1016_vm6 = vcmp.eq.s32.totalorder %v8055_v58, %v4176_v8  ;;  %v8063_v55 = vld [vmem:[#allocation67_spill] sm:$0xff] }
 0x11d   : > { %3145 = vmatprep.subr.mxu1 %v2956_v13  ;;  %v2059_v47 = vsel %vm1908_vm7, %v8051_v57, %v1761_v52  ;;  %v869_v29 = vsel %vm719_vm5, %v8062_v54, 0.0  ;;  %vm1314_vm10 = vcmp.eq.s32.totalorder %v8055_v58, %v8028_v50  ;;  %vm1612_vm12 = vcmp.eq.s32.totalorder %v8055_v58, %v8010_v32 }
 0x11e   : > { %v2357_v14 = vsel %vm2206_vm8, %v8053_v44, %v2059_v47  ;;  %v1167_v48 = vsel %vm1016_vm6, %v4180_v34, %v869_v29  ;;  %vm1910_vm13 = vcmp.eq.s32.totalorder %v8055_v58, %v8063_v55  ;;  %vm2208_vm0 = vcmp.eq.s32.totalorder %v8055_v58, %v8045_v16  ;;  %v8064_v55 = vld [vmem:[#allocation73_spill] sm:$0xff] }
 0x11f   : > { %v2655_v13 = vsel %vm2504_vm2, %v8054_v7, %v2357_v14  ;;  %v1465_v52 = vsel %vm1314_vm10, %v8044_v53, %v1167_v48  ;;  %vm2506_vm1 = vcmp.eq.s32.totalorder %v8055_v58, %v8030_v36  ;;  %vm2804_vm4 = vcmp.eq.s32.totalorder %v8055_v58, %v4241_v3 }
 0x120   : > { %v2953_v29 = vsel %vm2802_vm3, %v4156_v42, %v2655_v13  ;;  %v1763_v47 = vsel %vm1612_vm12, %v8046_v19, %v1465_v52  ;;  %vm714_vm15 = vcmp.eq.s32.totalorder %v8064_v55, %v3941_v24  ;;  %vm1011_vm9 = vcmp.eq.s32.totalorder %v8064_v55, %v3944_v25 }
 0x121   : > { %3075 = vmatpush1.msra.mxu0 %v2953_v29  ;;  %v2061_v14 = vsel %vm1910_vm13, %v4212_v33, %v1763_v47  ;;  %v864_v48 = vsel %vm714_vm15, %v8002_v11, 0.0  ;;  %vm1309_vm11 = vcmp.eq.s32.totalorder %v8064_v55, %v3947_v26  ;;  %vm1607_vm14 = vcmp.eq.s32.totalorder %v8064_v55, %v3950_v27 }
 0x122   : > { %v2359_v13 = vsel %vm2208_vm0, %v4223_v15, %v2061_v14  ;;  %v1162_v52 = vsel %vm1011_vm9, %v3898_v60, %v864_v48  ;;  %vm1905_vm7 = vcmp.eq.s32.totalorder %v8064_v55, %v3953_v28  ;;  %vm2203_vm8 = vcmp.eq.s32.totalorder %v8064_v55, %v8003_v49 }
 0x123   : > { %v2657_v29 = vsel %vm2506_vm1, %v4234_v0, %v2359_v13  ;;  %v1460_v47 = vsel %vm1309_vm11, %v3901_v61, %v1162_v52  ;;  %vm2501_vm2 = vcmp.eq.s32.totalorder %v8064_v55, %v8022_v2  ;;  %vm2799_vm3 = vcmp.eq.s32.totalorder %v8064_v55, %v4006_v12 }
 0x124   : > { %v2955_v14 = vsel %vm2804_vm4, %v4245_v4, %v2657_v29  ;;  %v1758_v48 = vsel %vm1607_vm14, %v3904_v62, %v1460_v47  ;;  %vm716_vm5 = vcmp.eq.s32.totalorder %v8064_v55, %v3989_v37  ;;  %vm1013_vm6 = vcmp.eq.s32.totalorder %v8064_v55, %v3994_v39 }
 0x125   : > { %3146 = vmatpush1.msra.mxu1 %v2955_v14  ;;  %v2056_v13 = vsel %vm1905_vm7, %v3909_v1, %v1758_v48  ;;  %v866_v52 = vsel %vm716_vm5, %v8023_v45, 0.0  ;;  %vm1311_vm10 = vcmp.eq.s32.totalorder %v8064_v55, %v3998_v40  ;;  %vm1609_vm12 = vcmp.eq.s32.totalorder %v8064_v55, %v4012_v43  ;;  %v8065_v48 = vld [vmem:[#allocation40_spill] sm:$0xff] }
 0x126   : > { %v2354_v58 = vsel %vm2203_vm8, %v8036_v18, %v2056_v13  ;;  %v1164_v29 = vsel %vm1013_vm6, %v8024_v63, %v866_v52  ;;  %vm1907_vm13 = vcmp.eq.s32.totalorder %v8064_v55, %v8013_v9  ;;  %vm2205_vm0 = vcmp.eq.s32.totalorder %v8064_v55, %v8014_v5  ;;  %v8066_v52 = vld [vmem:[#allocation35_spill] sm:$0xff] }
 0x127   : > { %v2652_v47 = vsel %vm2501_vm2, %v3962_v31, %v2354_v58  ;;  %v1462_v14 = vsel %vm1311_vm10, %v4002_v41, %v1164_v29  ;;  %vm2503_vm1 = vcmp.eq.s32.totalorder %v8064_v55, %v8065_v48  ;;  %vm2801_vm4 = vcmp.eq.s32.totalorder %v8064_v55, %v8016_v6  ;;  %v8067_v58 = vld [vmem:[#allocation37_spill] sm:$0xff]  ;;  %v8068_v48 = vld [vmem:[#allocation46_spill] sm:$0xff]  ;;  %v8069_v31 = vld [vmem:[#allocation51_spill] sm:$0xff] }
 0x128   : > { %v2950_v13 = vsel %vm2799_vm3, %v8037_v59, %v2652_v47  ;;  %v1760_v9 = vsel %vm1609_vm12, %v8066_v52, %v1462_v14  ;;  %vm713_vm15 = vcmp.eq.s32.totalorder %v8064_v55, %v8047_v20  ;;  %vm1010_vm9 = vcmp.eq.s32.totalorder %v8064_v55, %v4101_v46 }
 0x129   : > { %3076 = vmatprep.subr.mxu0 %v2950_v13  ;;  %v2058_v29 = vsel %vm1907_vm13, %v8067_v58, %v1760_v9  ;;  %v863_v41 = vsel %vm713_vm15, %v8068_v48, 0.0  ;;  %vm1308_vm11 = vcmp.eq.s32.totalorder %v8064_v55, %v7982_v22  ;;  %vm1606_vm14 = vcmp.eq.s32.totalorder %v8064_v55, %v8069_v31  ;;  %v8070_v48 = vld [vmem:[#allocation57_spill] sm:$0xff] }
 0x12a   : > { %v2356_v47 = vsel %vm2205_vm0, %v8025_v30, %v2058_v29  ;;  %v1161_v14 = vsel %vm1010_vm9, %v7996_v38, %v863_v41  ;;  %vm1904_vm7 = vcmp.eq.s32.totalorder %v8064_v55, %v8058_v35  ;;  %vm2202_vm8 = vcmp.eq.s32.totalorder %v8064_v55, %v8039_v17  ;;  %v8071_v29 = vld [vmem:[#allocation52_spill] sm:$0xff] }
 0x12b   : > { %v2654_v9 = vsel %vm2503_vm1, %v8008_v51, %v2356_v47  ;;  %v1459_v13 = vsel %vm1308_vm11, %v8059_v10, %v1161_v14  ;;  %vm2500_vm2 = vcmp.eq.s32.totalorder %v8064_v55, %v8070_v48  ;;  %vm2798_vm3 = vcmp.eq.s32.totalorder %v8064_v55, %v8041_v21 }
 0x12c   : > { %v2952_v41 = vsel %vm2801_vm4, %v8061_v23, %v2654_v9  ;;  %v1757_v35 = vsel %vm1606_vm14, %v8071_v29, %v1459_v13  ;;  %vm715_vm5 = vcmp.eq.s32.totalorder %v8064_v55, %v4160_v56  ;;  %vm1012_vm6 = vcmp.eq.s32.totalorder %v8064_v55, %v4176_v8  ;;  %v8072_v29 = vld [vmem:[#allocation67_spill] sm:$0xff] }
 0x12d   : > { %3147 = vmatprep.subr.mxu1 %v2952_v41  ;;  %v2055_v47 = vsel %vm1904_vm7, %v8051_v57, %v1757_v35  ;;  %v865_v14 = vsel %vm715_vm5, %v8062_v54, 0.0  ;;  %vm1310_vm10 = vcmp.eq.s32.totalorder %v8064_v55, %v8028_v50  ;;  %vm1608_vm12 = vcmp.eq.s32.totalorder %v8064_v55, %v8010_v32 }
 0x12e   : > { %v2353_v9 = vsel %vm2202_vm8, %v8053_v44, %v2055_v47  ;;  %v1163_v13 = vsel %vm1012_vm6, %v4180_v34, %v865_v14  ;;  %vm1906_vm13 = vcmp.eq.s32.totalorder %v8064_v55, %v8072_v29  ;;  %vm2204_vm0 = vcmp.eq.s32.totalorder %v8064_v55, %v8045_v16  ;;  %v8073_v29 = vld [vmem:[#allocation74_spill] sm:$0xff] }
 0x12f   : > { %v2651_v35 = vsel %vm2500_vm2, %v8054_v7, %v2353_v9  ;;  %v1461_v41 = vsel %vm1310_vm10, %v8044_v53, %v1163_v13  ;;  %vm2502_vm1 = vcmp.eq.s32.totalorder %v8064_v55, %v8030_v36  ;;  %vm2800_vm4 = vcmp.eq.s32.totalorder %v8064_v55, %v4241_v3 }
 0x130   : > { %v2949_v47 = vsel %vm2798_vm3, %v4156_v42, %v2651_v35  ;;  %v1759_v14 = vsel %vm1608_vm12, %v8046_v19, %v1461_v41  ;;  %vm710_vm15 = vcmp.eq.s32.totalorder %v8073_v29, %v3941_v24  ;;  %vm1007_vm9 = vcmp.eq.s32.totalorder %v8073_v29, %v3944_v25 }
 0x131   : > { %3077 = vmatpush1.msra.mxu0 %v2949_v47  ;;  %v2057_v9 = vsel %vm1906_vm13, %v4212_v33, %v1759_v14  ;;  %v860_v13 = vsel %vm710_vm15, %v8002_v11, 0.0  ;;  %vm1305_vm11 = vcmp.eq.s32.totalorder %v8073_v29, %v3947_v26  ;;  %vm1603_vm14 = vcmp.eq.s32.totalorder %v8073_v29, %v3950_v27 }
 0x132   : > { %v2355_v35 = vsel %vm2204_vm0, %v4223_v15, %v2057_v9  ;;  %v1158_v41 = vsel %vm1007_vm9, %v3898_v60, %v860_v13  ;;  %vm1901_vm7 = vcmp.eq.s32.totalorder %v8073_v29, %v3953_v28  ;;  %vm2199_vm8 = vcmp.eq.s32.totalorder %v8073_v29, %v8003_v49 }
 0x133   : > { %v2653_v47 = vsel %vm2502_vm1, %v4234_v0, %v2355_v35  ;;  %v1456_v14 = vsel %vm1305_vm11, %v3901_v61, %v1158_v41  ;;  %vm2497_vm2 = vcmp.eq.s32.totalorder %v8073_v29, %v8022_v2  ;;  %vm2795_vm3 = vcmp.eq.s32.totalorder %v8073_v29, %v4006_v12 }
 0x134   : > { %v2951_v9 = vsel %vm2800_vm4, %v4245_v4, %v2653_v47  ;;  %v1754_v13 = vsel %vm1603_vm14, %v3904_v62, %v1456_v14  ;;  %vm712_vm5 = vcmp.eq.s32.totalorder %v8073_v29, %v3989_v37  ;;  %vm1009_vm6 = vcmp.eq.s32.totalorder %v8073_v29, %v3994_v39  ;;  %v8074_v14 = vld [vmem:[#allocation36_spill] sm:$0xff] }
 0x135   : > { %3148 = vmatpush1.msra.mxu1 %v2951_v9  ;;  %v2052_v35 = vsel %vm1901_vm7, %v3909_v1, %v1754_v13  ;;  %v862_v41 = vsel %vm712_vm5, %v8023_v45, 0.0  ;;  %vm1307_vm10 = vcmp.eq.s32.totalorder %v8073_v29, %v3998_v40  ;;  %vm1605_vm12 = vcmp.eq.s32.totalorder %v8073_v29, %v4012_v43  ;;  %v8075_v9 = vld [vmem:[#allocation28_spill] sm:$0xff]  ;;  %v8076_v1 = vld [vmem:[#allocation33_spill] sm:$0xff] }
 0x136   : > { %v2350_v55 = vsel %vm2199_vm8, %v8036_v18, %v2052_v35  ;;  %v1160_v47 = vsel %vm1009_vm6, %v8024_v63, %v862_v41  ;;  %vm1903_vm13 = vcmp.eq.s32.totalorder %v8073_v29, %v8074_v14  ;;  %vm2201_vm0 = vcmp.eq.s32.totalorder %v8073_v29, %v8014_v5  ;;  %v8077_v39 = vld [vmem:[#allocation40_spill] sm:$0xff] }
 0x137   : > { %v2648_v13 = vsel %vm2497_vm2, %v8075_v9, %v2350_v55  ;;  %v1458_v45 = vsel %vm1307_vm10, %v8076_v1, %v1160_v47  ;;  %vm2499_vm1 = vcmp.eq.s32.totalorder %v8073_v29, %v8077_v39  ;;  %vm2797_vm4 = vcmp.eq.s32.totalorder %v8073_v29, %v8016_v6  ;;  %v8078_v47 = vld [vmem:[#allocation46_spill] sm:$0xff] }
 0x138   : > { %v2946_v35 = vsel %vm2795_vm3, %v8037_v59, %v2648_v13  ;;  %v1756_v41 = vsel %vm1605_vm12, %v8066_v52, %v1458_v45  ;;  %vm709_vm15 = vcmp.eq.s32.totalorder %v8073_v29, %v8047_v20  ;;  %vm1006_vm9 = vcmp.eq.s32.totalorder %v8073_v29, %v4101_v46  ;;  %v8079_v52 = vld [vmem:[#allocation53_spill] sm:$0xff] }
 0x139   : > { %3078 = vmatprep.subr.mxu0 %v2946_v35  ;;  %v2054_v55 = vsel %vm1903_vm13, %v8067_v58, %v1756_v41  ;;  %v859_v39 = vsel %vm709_vm15, %v8078_v47, 0.0  ;;  %vm1304_vm11 = vcmp.eq.s32.totalorder %v8073_v29, %v7982_v22  ;;  %vm1602_vm14 = vcmp.eq.s32.totalorder %v8073_v29, %v8069_v31 }
 0x13a   : > { %v2352_v13 = vsel %vm2201_vm0, %v8025_v30, %v2054_v55  ;;  %v1157_v45 = vsel %vm1006_vm9, %v7996_v38, %v859_v39  ;;  %vm1900_vm7 = vcmp.eq.s32.totalorder %v8073_v29, %v8079_v52  ;;  %vm2198_vm8 = vcmp.eq.s32.totalorder %v8073_v29, %v8039_v17  ;;  %v8080_v55 = vld [vmem:[#allocation52_spill] sm:$0xff] }
 0x13b   : > { %v2650_v35 = vsel %vm2499_vm1, %v8008_v51, %v2352_v13  ;;  %v1455_v41 = vsel %vm1304_vm11, %v8059_v10, %v1157_v45  ;;  %vm2496_vm2 = vcmp.eq.s32.totalorder %v8073_v29, %v8070_v48  ;;  %vm2794_vm3 = vcmp.eq.s32.totalorder %v8073_v29, %v8041_v21 }
 0x13c   : > { %v2948_v39 = vsel %vm2797_vm4, %v8061_v23, %v2650_v35  ;;  %v1753_v52 = vsel %vm1602_vm14, %v8080_v55, %v1455_v41  ;;  %vm711_vm5 = vcmp.eq.s32.totalorder %v8073_v29, %v4160_v56  ;;  %vm1008_vm6 = vcmp.eq.s32.totalorder %v8073_v29, %v4176_v8  ;;  %v8081_v55 = vld [vmem:[#allocation67_spill] sm:$0xff] }
 0x13d   : > { %3149 = vmatprep.subr.mxu1 %v2948_v39  ;;  %v2051_v13 = vsel %vm1900_vm7, %v8051_v57, %v1753_v52  ;;  %v861_v45 = vsel %vm711_vm5, %v8062_v54, 0.0  ;;  %vm1306_vm10 = vcmp.eq.s32.totalorder %v8073_v29, %v8028_v50  ;;  %vm1604_vm12 = vcmp.eq.s32.totalorder %v8073_v29, %v8010_v32 }
 0x13e   : > { %v2349_v35 = vsel %vm2198_vm8, %v8053_v44, %v2051_v13  ;;  %v1159_v41 = vsel %vm1008_vm6, %v4180_v34, %v861_v45  ;;  %vm1902_vm13 = vcmp.eq.s32.totalorder %v8073_v29, %v8081_v55  ;;  %vm2200_vm0 = vcmp.eq.s32.totalorder %v8073_v29, %v8045_v16  ;;  %v8082_v55 = vld [vmem:[#allocation75_spill] sm:$0xff] }
 0x13f   : > { %v2647_v52 = vsel %vm2496_vm2, %v8054_v7, %v2349_v35  ;;  %v1457_v39 = vsel %vm1306_vm10, %v8044_v53, %v1159_v41  ;;  %vm2498_vm1 = vcmp.eq.s32.totalorder %v8073_v29, %v8030_v36  ;;  %vm2796_vm4 = vcmp.eq.s32.totalorder %v8073_v29, %v4241_v3 }
 0x140   : > { %v2945_v13 = vsel %vm2794_vm3, %v4156_v42, %v2647_v52  ;;  %v1755_v45 = vsel %vm1604_vm12, %v8046_v19, %v1457_v39  ;;  %vm706_vm15 = vcmp.eq.s32.totalorder %v8082_v55, %v3941_v24  ;;  %vm1003_vm9 = vcmp.eq.s32.totalorder %v8082_v55, %v3944_v25 }
 0x141   : > { %3079 = vmatpush1.msra.mxu0 %v2945_v13  ;;  %v2053_v35 = vsel %vm1902_vm13, %v4212_v33, %v1755_v45  ;;  %v856_v41 = vsel %vm706_vm15, %v8002_v11, 0.0  ;;  %vm1301_vm11 = vcmp.eq.s32.totalorder %v8082_v55, %v3947_v26  ;;  %vm1599_vm14 = vcmp.eq.s32.totalorder %v8082_v55, %v3950_v27 }
 0x142   : > { %v2351_v52 = vsel %vm2200_vm0, %v4223_v15, %v2053_v35  ;;  %v1154_v39 = vsel %vm1003_vm9, %v3898_v60, %v856_v41  ;;  %vm1897_vm7 = vcmp.eq.s32.totalorder %v8082_v55, %v3953_v28  ;;  %vm2195_vm8 = vcmp.eq.s32.totalorder %v8082_v55, %v8003_v49  ;;  %v8083_v49 = vld [vmem:[#allocation31_spill] sm:$0xff] }
 0x143   : > { %v2649_v13 = vsel %vm2498_vm1, %v4234_v0, %v2351_v52  ;;  %v1452_v45 = vsel %vm1301_vm11, %v3901_v61, %v1154_v39  ;;  %vm2493_vm2 = vcmp.eq.s32.totalorder %v8082_v55, %v8022_v2  ;;  %vm2791_vm3 = vcmp.eq.s32.totalorder %v8082_v55, %v4006_v12  ;;  %v8084_v52 = vld [vmem:[#allocation21_spill] sm:$0xff]  ;;  %v8085_v61 = vld [vmem:[#allocation22_spill] sm:$0xff] }
 0x144   : > { %v2947_v35 = vsel %vm2796_vm4, %v4245_v4, %v2649_v13  ;;  %v1750_v41 = vsel %vm1599_vm14, %v3904_v62, %v1452_v45  ;;  %vm708_vm5 = vcmp.eq.s32.totalorder %v8082_v55, %v3989_v37  ;;  %vm1005_vm6 = vcmp.eq.s32.totalorder %v8082_v55, %v8083_v49 }
 0x145   : > { %3150 = vmatpush1.msra.mxu1 %v2947_v35  ;;  %v2048_v39 = vsel %vm1897_vm7, %v8084_v52, %v1750_v41  ;;  %v858_v2 = vsel %vm708_vm5, %v8085_v61, 0.0  ;;  %vm1303_vm10 = vcmp.eq.s32.totalorder %v8082_v55, %v3998_v40  ;;  %vm1601_vm12 = vcmp.eq.s32.totalorder %v8082_v55, %v4012_v43  ;;  %v8086_v41 = vld [vmem:[#allocation40_spill] sm:$0xff] }
 0x146   : > { %v2346_v29 = vsel %vm2195_vm8, %v8036_v18, %v2048_v39  ;;  %v1156_v13 = vsel %vm1005_vm6, %v8024_v63, %v858_v2  ;;  %vm1899_vm13 = vcmp.eq.s32.totalorder %v8082_v55, %v8074_v14  ;;  %vm2197_vm0 = vcmp.eq.s32.totalorder %v8082_v55, %v8014_v5  ;;  %v8087_v39 = vld [vmem:[#allocation35_spill] sm:$0xff] }
 0x147   : > { %v2644_v45 = vsel %vm2493_vm2, %v8075_v9, %v2346_v29  ;;  %v1454_v35 = vsel %vm1303_vm10, %v8076_v1, %v1156_v13  ;;  %vm2495_vm1 = vcmp.eq.s32.totalorder %v8082_v55, %v8086_v41  ;;  %vm2793_vm4 = vcmp.eq.s32.totalorder %v8082_v55, %v8016_v6 }
 0x148   : > { %v2942_v2 = vsel %vm2791_vm3, %v8037_v59, %v2644_v45  ;;  %v1752_v18 = vsel %vm1601_vm12, %v8087_v39, %v1454_v35  ;;  %vm705_vm15 = vcmp.eq.s32.totalorder %v8082_v55, %v8047_v20  ;;  %vm1002_vm9 = vcmp.eq.s32.totalorder %v8082_v55, %v4101_v46  ;;  %v8088_v59 = vld [vmem:[#allocation53_spill] sm:$0xff] }
 0x149   : > { %3080 = vmatprep.subr.mxu0 %v2942_v2  ;;  %v2050_v29 = vsel %vm1899_vm13, %v8067_v58, %v1752_v18  ;;  %v855_v13 = vsel %vm705_vm15, %v8078_v47, 0.0  ;;  %vm1300_vm11 = vcmp.eq.s32.totalorder %v8082_v55, %v7982_v22  ;;  %vm1598_vm14 = vcmp.eq.s32.totalorder %v8082_v55, %v8069_v31 }
 0x14a   : > { %v2348_v45 = vsel %vm2197_vm0, %v8025_v30, %v2050_v29  ;;  %v1153_v35 = vsel %vm1002_vm9, %v7996_v38, %v855_v13  ;;  %vm1896_vm7 = vcmp.eq.s32.totalorder %v8082_v55, %v8088_v59  ;;  %vm2194_vm8 = vcmp.eq.s32.totalorder %v8082_v55, %v8039_v17  ;;  %v8089_v13 = vld [vmem:[#allocation52_spill] sm:$0xff] }
 0x14b   : > { %v2646_v18 = vsel %vm2495_vm1, %v8008_v51, %v2348_v45  ;;  %v1451_v2 = vsel %vm1300_vm11, %v8059_v10, %v1153_v35  ;;  %vm2492_vm2 = vcmp.eq.s32.totalorder %v8082_v55, %v8070_v48  ;;  %vm2790_vm3 = vcmp.eq.s32.totalorder %v8082_v55, %v8041_v21 }
 0x14c   : > { %v2944_v29 = vsel %vm2793_vm4, %v8061_v23, %v2646_v18  ;;  %v1749_v59 = vsel %vm1598_vm14, %v8089_v13, %v1451_v2  ;;  %vm707_vm5 = vcmp.eq.s32.totalorder %v8082_v55, %v4160_v56  ;;  %vm1004_vm6 = vcmp.eq.s32.totalorder %v8082_v55, %v4176_v8  ;;  %v8090_v13 = vld [vmem:[#allocation67_spill] sm:$0xff] }
 0x14d   : > { %3151 = vmatprep.subr.mxu1 %v2944_v29  ;;  %v2047_v45 = vsel %vm1896_vm7, %v8051_v57, %v1749_v59  ;;  %v857_v35 = vsel %vm707_vm5, %v8062_v54, 0.0  ;;  %vm1302_vm10 = vcmp.eq.s32.totalorder %v8082_v55, %v8028_v50  ;;  %vm1600_vm12 = vcmp.eq.s32.totalorder %v8082_v55, %v8010_v32 }
 0x14e   : > { %v2345_v18 = vsel %vm2194_vm8, %v8053_v44, %v2047_v45  ;;  %v1155_v2 = vsel %vm1004_vm6, %v4180_v34, %v857_v35  ;;  %vm1898_vm13 = vcmp.eq.s32.totalorder %v8082_v55, %v8090_v13  ;;  %vm2196_vm0 = vcmp.eq.s32.totalorder %v8082_v55, %v8045_v16  ;;  %v8091_v45 = vld [vmem:[#allocation16_spill] sm:$0xff] }
 0x14f   : > { %v2643_v8 = vsel %vm2492_vm2, %v8054_v7, %v2345_v18  ;;  %v1453_v29 = vsel %vm1302_vm10, %v8044_v53, %v1155_v2  ;;  %vm2494_vm1 = vcmp.eq.s32.totalorder %v8082_v55, %v8030_v36  ;;  %v5452_v35 = vadd.s32 24, %v8091_v45 }
 0x150   : > { %v2941_v59 = vsel %vm2790_vm3, %v4156_v42, %v2643_v8  ;;  %v1751_v32 = vsel %vm1600_vm12, %v8046_v19, %v1453_v29  ;;  %vm2792_vm4 = vcmp.eq.s32.totalorder %v8082_v55, %v4241_v3  ;;  %v5458_v2 = vadd.s32 16, %v8091_v45 }
 0x151   : > { %3081 = vmatpush1.msra.mxu0 %v2941_v59  ;;  %v2049_v18 = vsel %vm1898_vm13, %v4212_v33, %v1751_v32  ;;  %v5461_v16 = vadd.s32 8, %v8091_v45  ;;  %vm702_vm15 = vcmp.eq.s32.totalorder %v5452_v35, %v3941_v24  ;;  %vm999_vm9 = vcmp.eq.s32.totalorder %v5452_v35, %v3944_v25  ;;  %v8094_v45 = vld [vmem:[#allocation27_spill] sm:$0xff] }
 0x152   : > { %v2347_v8 = vsel %vm2196_vm0, %v4223_v15, %v2049_v18  ;;  %vm1297_vm11 = vcmp.eq.s32.totalorder %v5452_v35, %v3947_v26  ;;  %v852_v55 = vsel %vm702_vm15, %v8002_v11, 0.0  ;;  %vm1595_vm14 = vcmp.eq.s32.totalorder %v5452_v35, %v3950_v27  ;;  %v8093_v18 = vld [vmem:[#allocation26_spill] sm:$0xff] }
 0x153   : > { %8092 = vst [vmem:[#allocation44_spill] sm:$0xff] %v5461_v16  ;;  %v2645_v32 = vsel %vm2494_vm1, %v4234_v0, %v2347_v8  ;;  %vm1893_vm7 = vcmp.eq.s32.totalorder %v5452_v35, %v3953_v28  ;;  %v1150_v59 = vsel %vm999_vm9, %v3898_v60, %v852_v55  ;;  %vm2191_vm8 = vcmp.eq.s32.totalorder %v5452_v35, %v8093_v18  ;;  %v8095_v8 = vld [vmem:[#allocation19_spill] sm:$0xff] }
 0x154   : > { %v2943_v29 = vsel %vm2792_vm4, %v4245_v4, %v2645_v32  ;;  %vm2489_vm2 = vcmp.eq.s32.totalorder %v5452_v35, %v8094_v45  ;;  %v1448_v16 = vsel %vm1297_vm11, %v8095_v8, %v1150_v59  ;;  %vm2787_vm3 = vcmp.eq.s32.totalorder %v5452_v35, %v4006_v12 }
 0x155   : > { %3152 = vmatpush1.msra.mxu1 %v2943_v29  ;;  %vm704_vm5 = vcmp.eq.s32.totalorder %v5452_v35, %v3989_v37  ;;  %vm1001_vm6 = vcmp.eq.s32.totalorder %v5452_v35, %v8083_v49  ;;  %v1746_v32 = vsel %vm1595_vm14, %v3904_v62, %v1448_v16  ;;  %vm1299_vm10 = vcmp.eq.s32.totalorder %v5452_v35, %v3998_v40  ;;  %v8096_v49 = vld [vmem:[#allocation24_spill] sm:$0xff] }
 0x156   : > { %v854_v55 = vsel %vm704_vm5, %v8085_v61, 0.0  ;;  %vm1597_vm12 = vcmp.eq.s32.totalorder %v5452_v35, %v4012_v43  ;;  %v2044_v29 = vsel %vm1893_vm7, %v8084_v52, %v1746_v32  ;;  %vm1895_vm13 = vcmp.eq.s32.totalorder %v5452_v35, %v8074_v14 }
 0x157   : > { %v1152_v59 = vsel %vm1001_vm6, %v8024_v63, %v854_v55  ;;  %vm2193_vm0 = vcmp.eq.s32.totalorder %v5452_v35, %v8014_v5  ;;  %v2342_v16 = vsel %vm2191_vm8, %v8096_v49, %v2044_v29  ;;  %vm2491_vm1 = vcmp.eq.s32.totalorder %v5452_v35, %v8086_v41  ;;  %v8097_v29 = vld [vmem:[#allocation29_spill] sm:$0xff] }
 0x158   : > { %v1450_v61 = vsel %vm1299_vm10, %v8076_v1, %v1152_v59  ;;  %vm2789_vm4 = vcmp.eq.s32.totalorder %v5452_v35, %v8016_v6  ;;  %v2640_v32 = vsel %vm2489_vm2, %v8075_v9, %v2342_v16  ;;  %vm701_vm15 = vcmp.eq.s32.totalorder %v5452_v35, %v8047_v20 }
 0x159   : > { %v1748_v55 = vsel %vm1597_vm12, %v8087_v39, %v1450_v61  ;;  %vm998_vm9 = vcmp.eq.s32.totalorder %v5452_v35, %v4101_v46  ;;  %v2938_v59 = vsel %vm2787_vm3, %v8097_v29, %v2640_v32  ;;  %v851_v5 = vsel %vm701_vm15, %v8078_v47, 0.0  ;;  %v8098_v46 = vld [vmem:[#allocation53_spill] sm:$0xff] }
 0x15a   : > { %v2046_v41 = vsel %vm1895_vm13, %v8067_v58, %v1748_v55  ;;  %vm1296_vm11 = vcmp.eq.s32.totalorder %v5452_v35, %v7982_v22  ;;  %3082 = vmatprep.subr.mxu0 %v2938_v59  ;;  %v1149_v16 = vsel %vm998_vm9, %v7996_v38, %v851_v5  ;;  %vm1594_vm14 = vcmp.eq.s32.totalorder %v5452_v35, %v8069_v31 }
 0x15b   : > { %v2344_v61 = vsel %vm2193_vm0, %v8025_v30, %v2046_v41  ;;  %vm1892_vm7 = vcmp.eq.s32.totalorder %v5452_v35, %v8098_v46  ;;  %v1447_v55 = vsel %vm1296_vm11, %v8059_v10, %v1149_v16  ;;  %vm2190_vm8 = vcmp.eq.s32.totalorder %v5452_v35, %v8039_v17  ;;  %v8099_v41 = vld [vmem:[#allocation52_spill] sm:$0xff]  ;;  %v8100_v17 = vld [vmem:[#allocation61_spill] sm:$0xff] }
 0x15c   : > { %v2642_v32 = vsel %vm2491_vm1, %v8008_v51, %v2344_v61  ;;  %vm2488_vm2 = vcmp.eq.s32.totalorder %v5452_v35, %v8070_v48  ;;  %v1745_v59 = vsel %vm1594_vm14, %v8099_v41, %v1447_v55  ;;  %vm2786_vm3 = vcmp.eq.s32.totalorder %v5452_v35, %v8041_v21  ;;  %v8101_v41 = vld [vmem:[#allocation65_spill] sm:$0xff] }
 0x15d   : > { %v2940_v5 = vsel %vm2789_vm4, %v8061_v23, %v2642_v32  ;;  %vm703_vm5 = vcmp.eq.s32.totalorder %v5452_v35, %v4160_v56  ;;  %v2043_v61 = vsel %vm1892_vm7, %v8051_v57, %v1745_v59  ;;  %vm1000_vm6 = vcmp.eq.s32.totalorder %v5452_v35, %v8100_v17 }
 0x15e   : > { %3153 = vmatprep.subr.mxu1 %v2940_v5  ;;  %v853_v16 = vsel %vm703_vm5, %v8062_v54, 0.0  ;;  %vm1298_vm10 = vcmp.eq.s32.totalorder %v5452_v35, %v8028_v50  ;;  %v2341_v32 = vsel %vm2190_vm8, %v8053_v44, %v2043_v61  ;;  %vm1596_vm12 = vcmp.eq.s32.totalorder %v5452_v35, %v8101_v41  ;;  %v8102_v54 = vld [vmem:[#allocation68_spill] sm:$0xff] }
 0x15f   : > { %v1151_v55 = vsel %vm1000_vm6, %v4180_v34, %v853_v16  ;;  %vm1894_vm13 = vcmp.eq.s32.totalorder %v5452_v35, %v8090_v13  ;;  %v2639_v5 = vsel %vm2488_vm2, %v8054_v7, %v2341_v32  ;;  %vm2192_vm0 = vcmp.eq.s32.totalorder %v5452_v35, %v8102_v54 }
 0x160   : > { %v1449_v59 = vsel %vm1298_vm10, %v8044_v53, %v1151_v55  ;;  %vm2490_vm1 = vcmp.eq.s32.totalorder %v5452_v35, %v8030_v36  ;;  %v2937_v61 = vsel %vm2786_vm3, %v4156_v42, %v2639_v5  ;;  %vm2788_vm4 = vcmp.eq.s32.totalorder %v5452_v35, %v4241_v3 }
 0x161   : > { %v1747_v16 = vsel %vm1596_vm12, %v8046_v19, %v1449_v59  ;;  %vm698_vm15 = vcmp.eq.s32.totalorder %v5458_v2, %v3941_v24  ;;  %3083 = vmatpush1.msra.mxu0 %v2937_v61  ;;  %vm995_vm9 = vcmp.eq.s32.totalorder %v5458_v2, %v3944_v25  ;;  %vm1293_vm11 = vcmp.eq.s32.totalorder %v5458_v2, %v3947_v26 }
 0x162   : > { %v2045_v32 = vsel %vm1894_vm13, %v4212_v33, %v1747_v16  ;;  %v848_v55 = vsel %vm698_vm15, %v8002_v11, 0.0  ;;  %vm1591_vm14 = vcmp.eq.s32.totalorder %v5458_v2, %v3950_v27  ;;  %vm1889_vm7 = vcmp.eq.s32.totalorder %v5458_v2, %v3953_v28 }
 0x163   : > { %v2343_v5 = vsel %vm2192_vm0, %v4223_v15, %v2045_v32  ;;  %v1146_v59 = vsel %vm995_vm9, %v3898_v60, %v848_v55  ;;  %vm2187_vm8 = vcmp.eq.s32.totalorder %v5458_v2, %v8093_v18  ;;  %vm2485_vm2 = vcmp.eq.s32.totalorder %v5458_v2, %v8094_v45 }
 0x164   : > { %v2641_v35 = vsel %vm2490_vm1, %v4234_v0, %v2343_v5  ;;  %v1444_v61 = vsel %vm1293_vm11, %v8095_v8, %v1146_v59  ;;  %vm2783_vm3 = vcmp.eq.s32.totalorder %v5458_v2, %v4006_v12  ;;  %vm700_vm5 = vcmp.eq.s32.totalorder %v5458_v2, %v3989_v37  ;;  %v8103_v5 = vld [vmem:[#allocation22_spill] sm:$0xff]  ;;  %v8104_v8 = vld [vmem:[#allocation31_spill] sm:$0xff] }
 0x165   : > { %v2939_v16 = vsel %vm2788_vm4, %v4245_v4, %v2641_v35  ;;  %v1742_v32 = vsel %vm1591_vm14, %v3904_v62, %v1444_v61  ;;  %v850_v59 = vsel %vm700_vm5, %v8103_v5, 0.0  ;;  %vm997_vm6 = vcmp.eq.s32.totalorder %v5458_v2, %v8104_v8  ;;  %v8105_v5 = vld [vmem:[#allocation38_spill] sm:$0xff]  ;;  %v8106_v8 = vld [vmem:[#allocation40_spill] sm:$0xff] }
 0x166   : > { %3154 = vmatpush1.msra.mxu1 %v2939_v16  ;;  %v2040_v55 = vsel %vm1889_vm7, %v8084_v52, %v1742_v32  ;;  %vm1295_vm10 = vcmp.eq.s32.totalorder %v5458_v2, %v3998_v40  ;;  %v1148_v61 = vsel %vm997_vm6, %v8024_v63, %v850_v59  ;;  %vm1593_vm12 = vcmp.eq.s32.totalorder %v5458_v2, %v4012_v43 }
 0x167   : > { %v2338_v35 = vsel %vm2187_vm8, %v8096_v49, %v2040_v55  ;;  %vm1891_vm13 = vcmp.eq.s32.totalorder %v5458_v2, %v8074_v14  ;;  %v1446_v32 = vsel %vm1295_vm10, %v8076_v1, %v1148_v61  ;;  %vm2189_vm0 = vcmp.eq.s32.totalorder %v5458_v2, %v8105_v5  ;;  %v8107_v1 = vld [vmem:[#allocation47_spill] sm:$0xff] }
 0x168   : > { %v2636_v16 = vsel %vm2485_vm2, %v8075_v9, %v2338_v35  ;;  %vm2487_vm1 = vcmp.eq.s32.totalorder %v5458_v2, %v8106_v8  ;;  %v1744_v59 = vsel %vm1593_vm12, %v8087_v39, %v1446_v32  ;;  %vm2785_vm4 = vcmp.eq.s32.totalorder %v5458_v2, %v8016_v6 }
 0x169   : > { %v2934_v55 = vsel %vm2783_vm3, %v8097_v29, %v2636_v16  ;;  %vm697_vm15 = vcmp.eq.s32.totalorder %v5458_v2, %v8047_v20  ;;  %v2042_v35 = vsel %vm1891_vm13, %v8067_v58, %v1744_v59  ;;  %vm994_vm9 = vcmp.eq.s32.totalorder %v5458_v2, %v8107_v1 }
 0x16a   : > { %3084 = vmatprep.subr.mxu0 %v2934_v55  ;;  %v847_v61 = vsel %vm697_vm15, %v8078_v47, 0.0  ;;  %vm1292_vm11 = vcmp.eq.s32.totalorder %v5458_v2, %v7982_v22  ;;  %v2340_v16 = vsel %vm2189_vm0, %v8025_v30, %v2042_v35  ;;  %vm1590_vm14 = vcmp.eq.s32.totalorder %v5458_v2, %v8069_v31  ;;  %v8108_v47 = vld [vmem:[#allocation55_spill] sm:$0xff]  ;;  %v8109_v30 = vld [vmem:[#allocation52_spill] sm:$0xff] }
 0x16b   : > { %v1145_v32 = vsel %vm994_vm9, %v7996_v38, %v847_v61  ;;  %vm1888_vm7 = vcmp.eq.s32.totalorder %v5458_v2, %v8098_v46  ;;  %v2638_v55 = vsel %vm2487_vm1, %v8008_v51, %v2340_v16  ;;  %vm2186_vm8 = vcmp.eq.s32.totalorder %v5458_v2, %v8108_v47 }
 0x16c   : > { %v1443_v59 = vsel %vm1292_vm11, %v8059_v10, %v1145_v32  ;;  %vm2484_vm2 = vcmp.eq.s32.totalorder %v5458_v2, %v8070_v48  ;;  %v2936_v35 = vsel %vm2785_vm4, %v8061_v23, %v2638_v55  ;;  %vm2782_vm3 = vcmp.eq.s32.totalorder %v5458_v2, %v8041_v21  ;;  %v8110_v32 = vld [vmem:[#allocation60_spill] sm:$0xff] }
 0x16d   : > { %v1741_v61 = vsel %vm1590_vm14, %v8109_v30, %v1443_v59  ;;  %vm699_vm5 = vcmp.eq.s32.totalorder %v5458_v2, %v4160_v56  ;;  %3155 = vmatprep.subr.mxu1 %v2936_v35  ;;  %vm996_vm6 = vcmp.eq.s32.totalorder %v5458_v2, %v8100_v17  ;;  %vm1294_vm10 = vcmp.eq.s32.totalorder %v5458_v2, %v8028_v50 }
 0x16e   : > { %v2039_v16 = vsel %vm1888_vm7, %v8051_v57, %v1741_v61  ;;  %v849_v10 = vsel %vm699_vm5, %v8110_v32, 0.0  ;;  %vm1592_vm12 = vcmp.eq.s32.totalorder %v5458_v2, %v8101_v41  ;;  %vm1890_vm13 = vcmp.eq.s32.totalorder %v5458_v2, %v8090_v13  ;;  %v8111_v41 = vld [vmem:[#allocation44_spill] sm:$0xff] }
 0x16f   : > { %v2337_v55 = vsel %vm2186_vm8, %v8053_v44, %v2039_v16  ;;  %v1147_v59 = vsel %vm996_vm6, %v4180_v34, %v849_v10  ;;  %vm2188_vm0 = vcmp.eq.s32.totalorder %v5458_v2, %v8102_v54  ;;  %vm2486_vm1 = vcmp.eq.s32.totalorder %v5458_v2, %v8030_v36 }
 0x170   : > { %v2635_v35 = vsel %vm2484_vm2, %v8054_v7, %v2337_v55  ;;  %v1445_v61 = vsel %vm1294_vm10, %v8044_v53, %v1147_v59  ;;  %vm2784_vm4 = vcmp.eq.s32.totalorder %v5458_v2, %v4241_v3  ;;  %vm694_vm15 = vcmp.eq.s32.totalorder %v8111_v41, %v3941_v24 }
 0x171   : > { %v2933_v16 = vsel %vm2782_vm3, %v4156_v42, %v2635_v35  ;;  %v1743_v10 = vsel %vm1592_vm12, %v8046_v19, %v1445_v61  ;;  %v844_v59 = vsel %vm694_vm15, %v8002_v11, 0.0  ;;  %vm991_vm9 = vcmp.eq.s32.totalorder %v8111_v41, %v3944_v25 }
 0x172   : > { %3085 = vmatpush1.msra.mxu0 %v2933_v16  ;;  %v2041_v55 = vsel %vm1890_vm13, %v4212_v33, %v1743_v10  ;;  %vm1289_vm11 = vcmp.eq.s32.totalorder %v8111_v41, %v3947_v26  ;;  %v1142_v61 = vsel %vm991_vm9, %v3898_v60, %v844_v59  ;;  %vm1587_vm14 = vcmp.eq.s32.totalorder %v8111_v41, %v3950_v27  ;;  %v8112_v16 = vld [vmem:[#allocation19_spill] sm:$0xff] }
 0x173   : > { %v2339_v35 = vsel %vm2188_vm0, %v4223_v15, %v2041_v55  ;;  %vm1885_vm7 = vcmp.eq.s32.totalorder %v8111_v41, %v3953_v28  ;;  %v1440_v10 = vsel %vm1289_vm11, %v8112_v16, %v1142_v61  ;;  %vm2183_vm8 = vcmp.eq.s32.totalorder %v8111_v41, %v8093_v18  ;;  %v8113_v61 = vld [vmem:[#allocation22_spill] sm:$0xff]  ;;  %v8114_v28 = vld [vmem:[#allocation31_spill] sm:$0xff] }
 0x174   : > { %v2637_v2 = vsel %vm2486_vm1, %v4234_v0, %v2339_v35  ;;  %vm2481_vm2 = vcmp.eq.s32.totalorder %v8111_v41, %v8094_v45  ;;  %v1738_v59 = vsel %vm1587_vm14, %v3904_v62, %v1440_v10  ;;  %vm2779_vm3 = vcmp.eq.s32.totalorder %v8111_v41, %v4006_v12 }
 0x175   : > { %v2935_v55 = vsel %vm2784_vm4, %v4245_v4, %v2637_v2  ;;  %vm696_vm5 = vcmp.eq.s32.totalorder %v8111_v41, %v3989_v37  ;;  %v2036_v35 = vsel %vm1885_vm7, %v8084_v52, %v1738_v59  ;;  %vm993_vm6 = vcmp.eq.s32.totalorder %v8111_v41, %v8114_v28  ;;  %v8115_v2 = vld [vmem:[#allocation16_spill] sm:$0xff]  ;;  %v8116_v59 = vld [vmem:[#allocation33_spill] sm:$0xff] }
 0x176   : > { %3156 = vmatpush1.msra.mxu1 %v2935_v55  ;;  %v846_v0 = vsel %vm696_vm5, %v8113_v61, 0.0  ;;  %vm1291_vm10 = vcmp.eq.s32.totalorder %v8111_v41, %v3998_v40  ;;  %vm690_vm12 = vcmp.eq.s32.totalorder %v8115_v2, %v3941_v24  ;;  %v2334_v10 = vsel %vm2183_vm8, %v8096_v49, %v2036_v35 }
 0x177   : > { %v1144_v4 = vsel %vm993_vm6, %v8024_v63, %v846_v0  ;;  %vm1589_vm13 = vcmp.eq.s32.totalorder %v8111_v41, %v4012_v43  ;;  %vm1887_vm0 = vcmp.eq.s32.totalorder %v8111_v41, %v8074_v14  ;;  %vm987_vm1 = vcmp.eq.s32.totalorder %v8115_v2, %v3944_v25 }
 0x178   : > { %v2632_v55 = vsel %vm2481_vm2, %v8075_v9, %v2334_v10  ;;  %v1442_v40 = vsel %vm1291_vm10, %v8116_v59, %v1144_v4  ;;  %vm2185_vm4 = vcmp.eq.s32.totalorder %v8111_v41, %v8105_v5  ;;  %vm2483_vm15 = vcmp.eq.s32.totalorder %v8111_v41, %v8106_v8  ;;  %v8117_v10 = vld [vmem:[#allocation46_spill] sm:$0xff] }
 0x179   : > { %v2930_v0 = vsel %vm2779_vm3, %v8097_v29, %v2632_v55  ;;  %v1740_v35 = vsel %vm1589_vm13, %v8087_v39, %v1442_v40  ;;  %vm2781_vm9 = vcmp.eq.s32.totalorder %v8111_v41, %v8016_v6  ;;  %vm693_vm11 = vcmp.eq.s32.totalorder %v8111_v41, %v8047_v20  ;;  %v8118_v55 = vld [vmem:[#allocation39_spill] sm:$0xff] }
 0x17a   : > { %3086 = vmatprep.subr.mxu0 %v2930_v0  ;;  %v2038_v4 = vsel %vm1887_vm0, %v8067_v58, %v1740_v35  ;;  %v843_v59 = vsel %vm693_vm11, %v8117_v10, 0.0  ;;  %vm990_vm14 = vcmp.eq.s32.totalorder %v8111_v41, %v8107_v1  ;;  %vm1288_vm7 = vcmp.eq.s32.totalorder %v8111_v41, %v7982_v22  ;;  %v8119_v35 = vld [vmem:[#allocation50_spill] sm:$0xff] }
 0x17b   : > { %v2336_v8 = vsel %vm2185_vm4, %v8118_v55, %v2038_v4  ;;  %v1141_v40 = vsel %vm990_vm14, %v7996_v38, %v843_v59  ;;  %vm1586_vm8 = vcmp.eq.s32.totalorder %v8111_v41, %v8069_v31  ;;  %vm1884_vm2 = vcmp.eq.s32.totalorder %v8111_v41, %v8098_v46 }
 0x17c   : > { %v2634_v0 = vsel %vm2483_vm15, %v8008_v51, %v2336_v8  ;;  %v1439_v10 = vsel %vm1288_vm7, %v8119_v35, %v1141_v40  ;;  %vm2182_vm3 = vcmp.eq.s32.totalorder %v8111_v41, %v8108_v47  ;;  %vm2480_vm5 = vcmp.eq.s32.totalorder %v8111_v41, %v8070_v48 }
 0x17d   : > { %v2932_v4 = vsel %vm2781_vm9, %v8061_v23, %v2634_v0  ;;  %v1737_v59 = vsel %vm1586_vm8, %v8109_v30, %v1439_v10  ;;  %vm2778_vm6 = vcmp.eq.s32.totalorder %v8111_v41, %v8041_v21  ;;  %vm695_vm10 = vcmp.eq.s32.totalorder %v8111_v41, %v4160_v56  ;;  %v8120_v30 = vld [vmem:[#allocation65_spill] sm:$0xff] }
 0x17e   : > { %3157 = vmatprep.subr.mxu1 %v2932_v4  ;;  %v2035_v8 = vsel %vm1884_vm2, %v8051_v57, %v1737_v59  ;;  %v845_v40 = vsel %vm695_vm10, %v8110_v32, 0.0  ;;  %vm992_vm13 = vcmp.eq.s32.totalorder %v8111_v41, %v8100_v17  ;;  %vm1290_vm0 = vcmp.eq.s32.totalorder %v8111_v41, %v8028_v50 }
 0x17f   : > { %v2333_v0 = vsel %vm2182_vm3, %v8053_v44, %v2035_v8  ;;  %v1143_v10 = vsel %vm992_vm13, %v4180_v34, %v845_v40  ;;  %vm1588_vm4 = vcmp.eq.s32.totalorder %v8111_v41, %v8120_v30  ;;  %vm1886_vm15 = vcmp.eq.s32.totalorder %v8111_v41, %v8090_v13 }
 0x180   : > { %v2631_v4 = vsel %vm2480_vm5, %v8054_v7, %v2333_v0  ;;  %v1441_v59 = vsel %vm1290_vm0, %v8044_v53, %v1143_v10  ;;  %vm2184_vm9 = vcmp.eq.s32.totalorder %v8111_v41, %v8102_v54  ;;  %vm2482_vm11 = vcmp.eq.s32.totalorder %v8111_v41, %v8030_v36 }
 0x181   : > { %v2929_v8 = vsel %vm2778_vm6, %v4156_v42, %v2631_v4  ;;  %v1739_v40 = vsel %vm1588_vm4, %v8046_v19, %v1441_v59  ;;  %vm2780_vm14 = vcmp.eq.s32.totalorder %v8111_v41, %v4241_v3  ;;  %v840_v0 = vsel %vm690_vm12, %v8002_v11, 0.0  ;;  %v8121_v59 = vld [vmem:[#allocation25_spill] sm:$0xff] }
 0x182   : > { %3087 = vmatpush1.msra.mxu0 %v2929_v8  ;;  %v2037_v10 = vsel %vm1886_vm15, %v4212_v33, %v1739_v40  ;;  %v1138_v36 = vsel %vm987_vm1, %v3898_v60, %v840_v0  ;;  %vm1285_vm7 = vcmp.eq.s32.totalorder %v8115_v2, %v3947_v26  ;;  %vm1583_vm8 = vcmp.eq.s32.totalorder %v8115_v2, %v3950_v27  ;;  %v8122_v8 = vld [vmem:[#allocation70_spill] sm:$0xff]  ;;  %v8123_v60 = vld [vmem:[#allocation72_spill] sm:$0xff] }
 0x183   : > { %v2335_v41 = vsel %vm2184_vm9, %v4223_v15, %v2037_v10  ;;  %v1436_v4 = vsel %vm1285_vm7, %v8112_v16, %v1138_v36  ;;  %vm1881_vm12 = vcmp.eq.s32.totalorder %v8115_v2, %v8121_v59  ;;  %vm2179_vm2 = vcmp.eq.s32.totalorder %v8115_v2, %v8093_v18 }
 0x184   : > { %v2633_v40 = vsel %vm2482_vm11, %v8122_v8, %v2335_v41  ;;  %v1734_v0 = vsel %vm1583_vm8, %v3904_v62, %v1436_v4  ;;  %vm2477_vm1 = vcmp.eq.s32.totalorder %v8115_v2, %v8094_v45  ;;  %vm2775_vm3 = vcmp.eq.s32.totalorder %v8115_v2, %v4006_v12  ;;  %v8124_v62 = vld [vmem:[#allocation32_spill] sm:$0xff] }
 0x185   : > { %v2931_v10 = vsel %vm2780_vm14, %v8123_v60, %v2633_v40  ;;  %v2032_v36 = vsel %vm1881_vm12, %v8084_v52, %v1734_v0  ;;  %vm692_vm5 = vcmp.eq.s32.totalorder %v8115_v2, %v3989_v37  ;;  %vm989_vm6 = vcmp.eq.s32.totalorder %v8115_v2, %v8114_v28  ;;  %v8126_v52 = vld [vmem:[#allocation40_spill] sm:$0xff] }
 0x186   : > { %3158 = vmatpush1.msra.mxu1 %v2931_v10  ;;  %v2330_v41 = vsel %vm2179_vm2, %v8096_v49, %v2032_v36  ;;  %v842_v4 = vsel %vm692_vm5, %v8113_v61, 0.0  ;;  %vm1287_vm10 = vcmp.eq.s32.totalorder %v8115_v2, %v8124_v62  ;;  %vm1585_vm13 = vcmp.eq.s32.totalorder %v8115_v2, %v4012_v43  ;;  %v8125_v36 = vld [vmem:[#allocation33_spill] sm:$0xff] }
 0x187   : > { %v2628_v40 = vsel %vm2477_vm1, %v8075_v9, %v2330_v41  ;;  %v1140_v0 = vsel %vm989_vm6, %v8024_v63, %v842_v4  ;;  %vm1883_vm0 = vcmp.eq.s32.totalorder %v8115_v2, %v8074_v14  ;;  %vm2181_vm4 = vcmp.eq.s32.totalorder %v8115_v2, %v8105_v5 }
 0x188   : > { %v2926_v10 = vsel %vm2775_vm3, %v8097_v29, %v2628_v40  ;;  %v1438_v49 = vsel %vm1287_vm10, %v8125_v36, %v1140_v0  ;;  %vm2479_vm15 = vcmp.eq.s32.totalorder %v8115_v2, %v8126_v52  ;;  %vm2777_vm9 = vcmp.eq.s32.totalorder %v8115_v2, %v8016_v6  ;;  %v8127_v40 = vld [vmem:[#allocation46_spill] sm:$0xff] }
 0x189   : > { %3088 = vmatprep.subr.mxu0 %v2926_v10  ;;  %v1736_v41 = vsel %vm1585_vm13, %v8087_v39, %v1438_v49  ;;  %vm689_vm11 = vcmp.eq.s32.totalorder %v8115_v2, %v8047_v20  ;;  %vm986_vm14 = vcmp.eq.s32.totalorder %v8115_v2, %v8107_v1  ;;  %vm1284_vm7 = vcmp.eq.s32.totalorder %v8115_v2, %v7982_v22 }
 0x18a   : > { %v2034_v4 = vsel %vm1883_vm0, %v8067_v58, %v1736_v41  ;;  %v839_v0 = vsel %vm689_vm11, %v8127_v40, 0.0  ;;  %vm1582_vm8 = vcmp.eq.s32.totalorder %v8115_v2, %v8069_v31  ;;  %vm1880_vm12 = vcmp.eq.s32.totalorder %v8115_v2, %v8098_v46 }
 0x18b   : > { %v2332_v49 = vsel %vm2181_vm4, %v8118_v55, %v2034_v4  ;;  %v1137_v10 = vsel %vm986_vm14, %v7996_v38, %v839_v0  ;;  %vm2178_vm2 = vcmp.eq.s32.totalorder %v8115_v2, %v8108_v47  ;;  %vm2476_vm1 = vcmp.eq.s32.totalorder %v8115_v2, %v8070_v48  ;;  %v8128_v0 = vld [vmem:[#allocation52_spill] sm:$0xff] }
 0x18c   : > { %v2630_v41 = vsel %vm2479_vm15, %v8008_v51, %v2332_v49  ;;  %v1435_v22 = vsel %vm1284_vm7, %v8119_v35, %v1137_v10  ;;  %vm2774_vm3 = vcmp.eq.s32.totalorder %v8115_v2, %v8041_v21  ;;  %vm691_vm5 = vcmp.eq.s32.totalorder %v8115_v2, %v4160_v56 }
 0x18d   : > { %v2928_v4 = vsel %vm2777_vm9, %v8061_v23, %v2630_v41  ;;  %v1733_v47 = vsel %vm1582_vm8, %v8128_v0, %v1435_v22  ;;  %v841_v46 = vsel %vm691_vm5, %v8110_v32, 0.0  ;;  %vm988_vm6 = vcmp.eq.s32.totalorder %v8115_v2, %v8100_v17 }
 0x18e   : > { %3159 = vmatprep.subr.mxu1 %v2928_v4  ;;  %v2031_v49 = vsel %vm1880_vm12, %v8051_v57, %v1733_v47  ;;  %v1139_v10 = vsel %vm988_vm6, %v4180_v34, %v841_v46  ;;  %vm1286_vm10 = vcmp.eq.s32.totalorder %v8115_v2, %v8028_v50  ;;  %vm1584_vm13 = vcmp.eq.s32.totalorder %v8115_v2, %v8120_v30  ;;  %v8129_v4 = vld [vmem:[#allocation69_spill] sm:$0xff] }
 0x18f   : > { %v2329_v41 = vsel %vm2178_vm2, %v8053_v44, %v2031_v49  ;;  %v1437_v22 = vsel %vm1286_vm10, %v8044_v53, %v1139_v10  ;;  %vm1882_vm0 = vcmp.eq.s32.totalorder %v8115_v2, %v8090_v13  ;;  %vm2180_vm4 = vcmp.eq.s32.totalorder %v8115_v2, %v8102_v54 }
 0x190   : > { %v2627_v46 = vsel %vm2476_vm1, %v8054_v7, %v2329_v41  ;;  %v1735_v47 = vsel %vm1584_vm13, %v8046_v19, %v1437_v22  ;;  %vm2478_vm15 = vcmp.eq.s32.totalorder %v8115_v2, %v8129_v4  ;;  %vm2776_vm9 = vcmp.eq.s32.totalorder %v8115_v2, %v4241_v3 }
 0x191   : > { %v2925_v49 = vsel %vm2774_vm3, %v4156_v42, %v2627_v46  ;;  %v2033_v10 = vsel %vm1882_vm0, %v4212_v33, %v1735_v47  ;;  %v5878_v54 = vadd.s32 248, %v8115_v2  ;;  %v5881_v41 = vadd.s32 240, %v8115_v2 }
 0x192   : > { %3089 = vmatpush1.msra.mxu0 %v2925_v49  ;;  %v2331_v22 = vsel %vm2180_vm4, %v4223_v15, %v2033_v10  ;;  %v5885_v19 = vadd.s32 232, %v8115_v2  ;;  %v5888_v3 = vadd.s32 224, %v8115_v2  ;;  %v5891_v4 = vadd.s32 216, %v8115_v2  ;;  %v8133_v10 = vld [vmem:[#allocation18_spill] sm:$0xff] }
 0x193   : > { %v2629_v46 = vsel %vm2478_vm15, %v8122_v8, %v2331_v22  ;;  %vm814_vm11 = vcmp.eq.s32.totalorder %v5878_v54, %v3941_v24  ;;  %vm1111_vm14 = vcmp.eq.s32.totalorder %v5878_v54, %v3944_v25  ;;  %vm1409_vm7 = vcmp.eq.s32.totalorder %v5878_v54, %v3947_v26 }
 0x194   : > { %8130 = vst [vmem:[#allocation73_spill] sm:$0xff] %v5885_v19  ;;  %8131 = vst [vmem:[#allocation74_spill] sm:$0xff] %v5888_v3  ;;  %v2927_v47 = vsel %vm2776_vm9, %v8123_v60, %v2629_v46  ;;  %v964_v49 = vsel %vm814_vm11, %v8002_v11, 0.0  ;;  %vm1707_vm8 = vcmp.eq.s32.totalorder %v5878_v54, %v3950_v27  ;;  %vm2005_vm12 = vcmp.eq.s32.totalorder %v5878_v54, %v8121_v59  ;;  %v8136_v19 = vld [vmem:[#allocation24_spill] sm:$0xff] }
 0x195   : > { %8132 = vst [vmem:[#allocation75_spill] sm:$0xff] %v5891_v4  ;;  %3160 = vmatpush1.msra.mxu1 %v2927_v47  ;;  %v1262_v22 = vsel %vm1111_vm14, %v8133_v10, %v964_v49  ;;  %vm2303_vm2 = vcmp.eq.s32.totalorder %v5878_v54, %v8093_v18  ;;  %vm2601_vm1 = vcmp.eq.s32.totalorder %v5878_v54, %v8094_v45  ;;  %v8134_v47 = vld [vmem:[#allocation20_spill] sm:$0xff] }
 0x196   : > { %vm2899_vm3 = vcmp.eq.s32.totalorder %v5878_v54, %v4006_v12  ;;  %v1560_v46 = vsel %vm1409_vm7, %v8112_v16, %v1262_v22  ;;  %vm816_vm5 = vcmp.eq.s32.totalorder %v5878_v54, %v3989_v37  ;;  %vm1113_vm6 = vcmp.eq.s32.totalorder %v5878_v54, %v8114_v28  ;;  %v8135_v22 = vld [vmem:[#allocation21_spill] sm:$0xff] }
 0x197   : > { %vm1411_vm10 = vcmp.eq.s32.totalorder %v5878_v54, %v8124_v62  ;;  %v1858_v49 = vsel %vm1707_vm8, %v8134_v47, %v1560_v46  ;;  %v966_v2 = vsel %vm816_vm5, %v8113_v61, 0.0  ;;  %vm1709_vm13 = vcmp.eq.s32.totalorder %v5878_v54, %v4012_v43 }
 0x198   : > { %vm2007_vm0 = vcmp.eq.s32.totalorder %v5878_v54, %v8074_v14  ;;  %v2156_v4 = vsel %vm2005_vm12, %v8135_v22, %v1858_v49  ;;  %v1264_v3 = vsel %vm1113_vm6, %v8024_v63, %v966_v2  ;;  %vm2305_vm4 = vcmp.eq.s32.totalorder %v5878_v54, %v8105_v5 }
 0x199   : > { %vm2603_vm15 = vcmp.eq.s32.totalorder %v5878_v54, %v8126_v52  ;;  %v2454_v46 = vsel %vm2303_vm2, %v8136_v19, %v2156_v4  ;;  %v1562_v62 = vsel %vm1411_vm10, %v8125_v36, %v1264_v3  ;;  %vm2901_vm9 = vcmp.eq.s32.totalorder %v5878_v54, %v8016_v6  ;;  %v8137_v36 = vld [vmem:[#allocation49_spill] sm:$0xff] }
 0x19a   : > { %vm813_vm11 = vcmp.eq.s32.totalorder %v5878_v54, %v8047_v20  ;;  %v2752_v2 = vsel %vm2601_vm1, %v8075_v9, %v2454_v46  ;;  %v1860_v49 = vsel %vm1709_vm13, %v8087_v39, %v1562_v62  ;;  %vm1110_vm14 = vcmp.eq.s32.totalorder %v5878_v54, %v8107_v1 }
 0x19b   : > { %v963_v5 = vsel %vm813_vm11, %v8127_v40, 0.0  ;;  %v3050_v3 = vsel %vm2899_vm3, %v8097_v29, %v2752_v2  ;;  %v2158_v4 = vsel %vm2007_vm0, %v8067_v58, %v1860_v49  ;;  %vm1408_vm7 = vcmp.eq.s32.totalorder %v5878_v54, %v8137_v36  ;;  %v8138_v40 = vld [vmem:[#allocation53_spill] sm:$0xff]  ;;  %v8139_v49 = vld [vmem:[#allocation55_spill] sm:$0xff] }
 0x19c   : > { %v1261_v20 = vsel %vm1110_vm14, %v7996_v38, %v963_v5  ;;  %3090 = vmatprep.subr.mxu0 %v3050_v3  ;;  %v2456_v62 = vsel %vm2305_vm4, %v8118_v55, %v2158_v4  ;;  %vm1706_vm8 = vcmp.eq.s32.totalorder %v5878_v54, %v8069_v31  ;;  %vm2004_vm12 = vcmp.eq.s32.totalorder %v5878_v54, %v8138_v40 }
 0x19d   : > { %v1559_v46 = vsel %vm1408_vm7, %v8119_v35, %v1261_v20  ;;  %v2754_v2 = vsel %vm2603_vm15, %v8008_v51, %v2456_v62  ;;  %vm2302_vm2 = vcmp.eq.s32.totalorder %v5878_v54, %v8139_v49  ;;  %vm2600_vm1 = vcmp.eq.s32.totalorder %v5878_v54, %v8070_v48 }
 0x19e   : > { %v1857_v5 = vsel %vm1706_vm8, %v8128_v0, %v1559_v46  ;;  %v3052_v20 = vsel %vm2901_vm9, %v8061_v23, %v2754_v2  ;;  %vm2898_vm3 = vcmp.eq.s32.totalorder %v5878_v54, %v8041_v21  ;;  %vm815_vm5 = vcmp.eq.s32.totalorder %v5878_v54, %v4160_v56 }
 0x19f   : > { %v2155_v3 = vsel %vm2004_vm12, %v8051_v57, %v1857_v5  ;;  %3161 = vmatprep.subr.mxu1 %v3052_v20  ;;  %v965_v62 = vsel %vm815_vm5, %v8110_v32, 0.0  ;;  %vm1112_vm6 = vcmp.eq.s32.totalorder %v5878_v54, %v8100_v17  ;;  %vm1410_vm10 = vcmp.eq.s32.totalorder %v5878_v54, %v8028_v50 }
 0x1a0   : > { %v2453_v4 = vsel %vm2302_vm2, %v8053_v44, %v2155_v3  ;;  %v1263_v2 = vsel %vm1112_vm6, %v4180_v34, %v965_v62  ;;  %vm1708_vm13 = vcmp.eq.s32.totalorder %v5878_v54, %v8120_v30  ;;  %vm2006_vm0 = vcmp.eq.s32.totalorder %v5878_v54, %v8090_v13  ;;  %v8140_v3 = vld [vmem:[#allocation68_spill] sm:$0xff]  ;;  %v8141_v44 = vld [vmem:[#allocation69_spill] sm:$0xff]  ;;  %v8143_v62 = vld [vmem:[#allocation71_spill] sm:$0xff] }
 0x1a1   : > { %v2751_v46 = vsel %vm2600_vm1, %v8054_v7, %v2453_v4  ;;  %v1561_v20 = vsel %vm1410_vm10, %v8044_v53, %v1263_v2  ;;  %vm2304_vm4 = vcmp.eq.s32.totalorder %v5878_v54, %v8140_v3  ;;  %vm2602_vm15 = vcmp.eq.s32.totalorder %v5878_v54, %v8141_v44  ;;  %v8142_v4 = vld [vmem:[#allocation66_spill] sm:$0xff] }
 0x1a2   : > { %v3049_v5 = vsel %vm2898_vm3, %v4156_v42, %v2751_v46  ;;  %v1859_v7 = vsel %vm1708_vm13, %v8142_v4, %v1561_v20  ;;  %vm2900_vm9 = vcmp.eq.s32.totalorder %v5878_v54, %v8143_v62  ;;  %vm810_vm11 = vcmp.eq.s32.totalorder %v5881_v41, %v3941_v24 }
 0x1a3   : > { %3091 = vmatpush2.msra.mxu0 %v3049_v5  ;;  %vm1107_vm14 = vcmp.eq.s32.totalorder %v5881_v41, %v3944_v25  ;;  %v2157_v46 = vsel %vm2006_vm0, %v4212_v33, %v1859_v7  ;;  %v960_v2 = vsel %vm810_vm11, %v8002_v11, 0.0  ;;  %vm1405_vm7 = vcmp.eq.s32.totalorder %v5881_v41, %v3947_v26 }
 0x1a4   : > { %vm1703_vm8 = vcmp.eq.s32.totalorder %v5881_v41, %v3950_v27  ;;  %v2455_v5 = vsel %vm2304_vm4, %v4223_v15, %v2157_v46  ;;  %v1258_v54 = vsel %vm1107_vm14, %v8133_v10, %v960_v2  ;;  %vm2001_vm12 = vcmp.eq.s32.totalorder %v5881_v41, %v8121_v59 }
 0x1a5   : > { %vm2299_vm2 = vcmp.eq.s32.totalorder %v5881_v41, %v8093_v18  ;;  %v2753_v7 = vsel %vm2602_vm15, %v8122_v8, %v2455_v5  ;;  %v1556_v20 = vsel %vm1405_vm7, %v8112_v16, %v1258_v54  ;;  %vm2597_vm1 = vcmp.eq.s32.totalorder %v5881_v41, %v8094_v45  ;;  %v8144_v16 = vld [vmem:[#allocation32_spill] sm:$0xff] }
 0x1a6   : > { %vm2895_vm3 = vcmp.eq.s32.totalorder %v5881_v41, %v4006_v12  ;;  %v3051_v46 = vsel %vm2900_vm9, %v8123_v60, %v2753_v7  ;;  %v1854_v2 = vsel %vm1703_vm8, %v8134_v47, %v1556_v20  ;;  %vm812_vm5 = vcmp.eq.s32.totalorder %v5881_v41, %v3989_v37  ;;  %v8145_v37 = vld [vmem:[#allocation38_spill] sm:$0xff] }
 0x1a7   : > { %vm1109_vm6 = vcmp.eq.s32.totalorder %v5881_v41, %v8114_v28  ;;  %3162 = vmatpush2.msra.mxu1 %v3051_v46  ;;  %v2152_v5 = vsel %vm2001_vm12, %v8135_v22, %v1854_v2  ;;  %v962_v54 = vsel %vm812_vm5, %v8113_v61, 0.0  ;;  %vm1407_vm10 = vcmp.eq.s32.totalorder %v5881_v41, %v8144_v16  ;;  %v8146_v2 = vld [vmem:[#allocation33_spill] sm:$0xff] }
 0x1a8   : > { %vm1705_vm13 = vcmp.eq.s32.totalorder %v5881_v41, %v4012_v43  ;;  %v2450_v7 = vsel %vm2299_vm2, %v8136_v19, %v2152_v5  ;;  %v1260_v20 = vsel %vm1109_vm6, %v8024_v63, %v962_v54  ;;  %vm2003_vm0 = vcmp.eq.s32.totalorder %v5881_v41, %v8074_v14  ;;  %v8147_v14 = vld [vmem:[#allocation45_spill] sm:$0xff] }
 0x1a9   : > { %vm2301_vm4 = vcmp.eq.s32.totalorder %v5881_v41, %v8145_v37  ;;  %v2748_v46 = vsel %vm2597_vm1, %v8075_v9, %v2450_v7  ;;  %v1558_v61 = vsel %vm1407_vm10, %v8146_v2, %v1260_v20  ;;  %vm2599_vm15 = vcmp.eq.s32.totalorder %v5881_v41, %v8126_v52  ;;  %v8148_v20 = vld [vmem:[#allocation46_spill] sm:$0xff] }
 0x1aa   : > { %vm2897_vm9 = vcmp.eq.s32.totalorder %v5881_v41, %v8016_v6  ;;  %v3046_v5 = vsel %vm2895_vm3, %v8097_v29, %v2748_v46  ;;  %v1856_v54 = vsel %vm1705_vm13, %v8087_v39, %v1558_v61  ;;  %vm809_vm11 = vcmp.eq.s32.totalorder %v5881_v41, %v8147_v14 }
 0x1ab   : > { %vm1106_vm14 = vcmp.eq.s32.totalorder %v5881_v41, %v8107_v1  ;;  %3092 = vmatprep.subr.mxu0 %v3046_v5  ;;  %v2154_v7 = vsel %vm2003_vm0, %v8067_v58, %v1856_v54  ;;  %v959_v52 = vsel %vm809_vm11, %v8148_v20, 0.0  ;;  %vm1404_vm7 = vcmp.eq.s32.totalorder %v5881_v41, %v8137_v36 }
 0x1ac   : > { %vm1702_vm8 = vcmp.eq.s32.totalorder %v5881_v41, %v8069_v31  ;;  %v2452_v46 = vsel %vm2301_vm4, %v8118_v55, %v2154_v7  ;;  %v1257_v61 = vsel %vm1106_vm14, %v7996_v38, %v959_v52  ;;  %vm2000_vm12 = vcmp.eq.s32.totalorder %v5881_v41, %v8138_v40 }
 0x1ad   : > { %vm2298_vm2 = vcmp.eq.s32.totalorder %v5881_v41, %v8139_v49  ;;  %v2750_v5 = vsel %vm2599_vm15, %v8008_v51, %v2452_v46  ;;  %v1555_v54 = vsel %vm1404_vm7, %v8119_v35, %v1257_v61  ;;  %vm2596_vm1 = vcmp.eq.s32.totalorder %v5881_v41, %v8070_v48 }
 0x1ae   : > { %vm2894_vm3 = vcmp.eq.s32.totalorder %v5881_v41, %v8041_v21  ;;  %v3048_v52 = vsel %vm2897_vm9, %v8061_v23, %v2750_v5  ;;  %v1853_v7 = vsel %vm1702_vm8, %v8128_v0, %v1555_v54  ;;  %vm811_vm5 = vcmp.eq.s32.totalorder %v5881_v41, %v4160_v56  ;;  %v8149_v5 = vld [vmem:[#allocation56_spill] sm:$0xff] }
 0x1af   : > { %vm1108_vm6 = vcmp.eq.s32.totalorder %v5881_v41, %v8100_v17  ;;  %3163 = vmatprep.subr.mxu1 %v3048_v52  ;;  %v2151_v46 = vsel %vm2000_vm12, %v8051_v57, %v1853_v7  ;;  %v961_v61 = vsel %vm811_vm5, %v8110_v32, 0.0  ;;  %vm1406_vm10 = vcmp.eq.s32.totalorder %v5881_v41, %v8028_v50  ;;  %v8150_v52 = vld [vmem:[#allocation58_spill] sm:$0xff] }
 0x1b0   : > { %vm1704_vm13 = vcmp.eq.s32.totalorder %v5881_v41, %v8120_v30  ;;  %v2449_v23 = vsel %vm2298_vm2, %v8149_v5, %v2151_v46  ;;  %v1259_v54 = vsel %vm1108_vm6, %v4180_v34, %v961_v61  ;;  %vm2002_vm0 = vcmp.eq.s32.totalorder %v5881_v41, %v8090_v13  ;;  %v8151_v13 = vld [vmem:[#allocation73_spill] sm:$0xff] }
 0x1b1   : > { %vm2300_vm4 = vcmp.eq.s32.totalorder %v5881_v41, %v8140_v3  ;;  %v2747_v7 = vsel %vm2596_vm1, %v8150_v52, %v2449_v23  ;;  %v1557_v32 = vsel %vm1406_vm10, %v8044_v53, %v1259_v54  ;;  %vm2598_vm15 = vcmp.eq.s32.totalorder %v5881_v41, %v8141_v44 }
 0x1b2   : > { %vm2896_vm9 = vcmp.eq.s32.totalorder %v5881_v41, %v8143_v62  ;;  %v3045_v46 = vsel %vm2894_vm3, %v4156_v42, %v2747_v7  ;;  %v1855_v61 = vsel %vm1704_vm13, %v8142_v4, %v1557_v32  ;;  %vm806_vm11 = vcmp.eq.s32.totalorder %v8151_v13, %v3941_v24 }
 0x1b3   : > { %vm1103_vm14 = vcmp.eq.s32.totalorder %v8151_v13, %v3944_v25  ;;  %3093 = vmatpush2.msra.mxu0 %v3045_v46  ;;  %v2153_v23 = vsel %vm2002_vm0, %v4212_v33, %v1855_v61  ;;  %v956_v54 = vsel %vm806_vm11, %v8002_v11, 0.0  ;;  %vm1401_vm7 = vcmp.eq.s32.totalorder %v8151_v13, %v3947_v26  ;;  %v8152_v61 = vld [vmem:[#allocation19_spill] sm:$0xff] }
 0x1b4   : > { %vm1699_vm8 = vcmp.eq.s32.totalorder %v8151_v13, %v3950_v27  ;;  %v2451_v7 = vsel %vm2300_vm4, %v4223_v15, %v2153_v23  ;;  %v1254_v32 = vsel %vm1103_vm14, %v8133_v10, %v956_v54  ;;  %vm1997_vm12 = vcmp.eq.s32.totalorder %v8151_v13, %v8121_v59  ;;  %v8153_v59 = vld [vmem:[#allocation30_spill] sm:$0xff] }
 0x1b5   : > { %vm2295_vm2 = vcmp.eq.s32.totalorder %v8151_v13, %v8093_v18  ;;  %v2749_v46 = vsel %vm2598_vm15, %v8122_v8, %v2451_v7  ;;  %v1552_v11 = vsel %vm1401_vm7, %v8152_v61, %v1254_v32  ;;  %vm2593_vm1 = vcmp.eq.s32.totalorder %v8151_v13, %v8094_v45  ;;  %v8154_v32 = vld [vmem:[#allocation22_spill] sm:$0xff] }
 0x1b6   : > { %vm2891_vm3 = vcmp.eq.s32.totalorder %v8151_v13, %v4006_v12  ;;  %v3047_v23 = vsel %vm2896_vm9, %v8123_v60, %v2749_v46  ;;  %v1850_v54 = vsel %vm1699_vm8, %v8134_v47, %v1552_v11  ;;  %vm808_vm5 = vcmp.eq.s32.totalorder %v8151_v13, %v8153_v59  ;;  %v8155_v46 = vld [vmem:[#allocation36_spill] sm:$0xff] }
 0x1b7   : > { %vm1105_vm6 = vcmp.eq.s32.totalorder %v8151_v13, %v8114_v28  ;;  %3164 = vmatpush2.msra.mxu1 %v3047_v23  ;;  %v2148_v7 = vsel %vm1997_vm12, %v8135_v22, %v1850_v54  ;;  %v958_v45 = vsel %vm808_vm5, %v8154_v32, 0.0  ;;  %vm1403_vm10 = vcmp.eq.s32.totalorder %v8151_v13, %v8144_v16  ;;  %v8156_v32 = vld [vmem:[#allocation40_spill] sm:$0xff] }
 0x1b8   : > { %vm1701_vm13 = vcmp.eq.s32.totalorder %v8151_v13, %v4012_v43  ;;  %v2446_v41 = vsel %vm2295_vm2, %v8136_v19, %v2148_v7  ;;  %v1256_v11 = vsel %vm1105_vm6, %v8024_v63, %v958_v45  ;;  %vm1999_vm0 = vcmp.eq.s32.totalorder %v8151_v13, %v8155_v46 }
 0x1b9   : > { %vm2297_vm4 = vcmp.eq.s32.totalorder %v8151_v13, %v8145_v37  ;;  %v2744_v23 = vsel %vm2593_vm1, %v8075_v9, %v2446_v41  ;;  %v1554_v54 = vsel %vm1403_vm10, %v8146_v2, %v1256_v11  ;;  %vm2595_vm15 = vcmp.eq.s32.totalorder %v8151_v13, %v8156_v32 }
 0x1ba   : > { %vm2893_vm9 = vcmp.eq.s32.totalorder %v8151_v13, %v8016_v6  ;;  %v3042_v45 = vsel %vm2891_vm3, %v8097_v29, %v2744_v23  ;;  %v1852_v7 = vsel %vm1701_vm13, %v8087_v39, %v1554_v54  ;;  %vm805_vm11 = vcmp.eq.s32.totalorder %v8151_v13, %v8147_v14 }
 0x1bb   : > { %vm1102_vm14 = vcmp.eq.s32.totalorder %v8151_v13, %v8107_v1  ;;  %3094 = vmatprep.subr.mxu0 %v3042_v45  ;;  %v2150_v41 = vsel %vm1999_vm0, %v8067_v58, %v1852_v7  ;;  %v955_v11 = vsel %vm805_vm11, %v8148_v20, 0.0  ;;  %vm1400_vm7 = vcmp.eq.s32.totalorder %v8151_v13, %v8137_v36 }
 0x1bc   : > { %vm1698_vm8 = vcmp.eq.s32.totalorder %v8151_v13, %v8069_v31  ;;  %v2448_v23 = vsel %vm2297_vm4, %v8118_v55, %v2150_v41  ;;  %v1253_v54 = vsel %vm1102_vm14, %v7996_v38, %v955_v11  ;;  %vm1996_vm12 = vcmp.eq.s32.totalorder %v8151_v13, %v8138_v40  ;;  %v8157_v31 = vld [vmem:[#allocation43_spill] sm:$0xff] }
 0x1bd   : > { %vm2294_vm2 = vcmp.eq.s32.totalorder %v8151_v13, %v8139_v49  ;;  %v2746_v45 = vsel %vm2595_vm15, %v8008_v51, %v2448_v23  ;;  %v1551_v7 = vsel %vm1400_vm7, %v8119_v35, %v1253_v54  ;;  %vm2592_vm1 = vcmp.eq.s32.totalorder %v8151_v13, %v8070_v48  ;;  %v8158_v54 = vld [vmem:[#allocation60_spill] sm:$0xff] }
 0x1be   : > { %vm2890_vm3 = vcmp.eq.s32.totalorder %v8151_v13, %v8041_v21  ;;  %v3044_v41 = vsel %vm2893_vm9, %v8157_v31, %v2746_v45  ;;  %v1849_v11 = vsel %vm1698_vm8, %v8128_v0, %v1551_v7  ;;  %vm807_vm5 = vcmp.eq.s32.totalorder %v8151_v13, %v4160_v56  ;;  %v8159_v0 = vld [vmem:[#allocation67_spill] sm:$0xff] }
 0x1bf   : > { %vm1104_vm6 = vcmp.eq.s32.totalorder %v8151_v13, %v8100_v17  ;;  %3165 = vmatprep.subr.mxu1 %v3044_v41  ;;  %v2147_v23 = vsel %vm1996_vm12, %v8051_v57, %v1849_v11  ;;  %v957_v48 = vsel %vm807_vm5, %v8158_v54, 0.0  ;;  %vm1402_vm10 = vcmp.eq.s32.totalorder %v8151_v13, %v8028_v50 }
 0x1c0   : > { %vm1700_vm13 = vcmp.eq.s32.totalorder %v8151_v13, %v8120_v30  ;;  %v2445_v45 = vsel %vm2294_vm2, %v8149_v5, %v2147_v23  ;;  %v1255_v7 = vsel %vm1104_vm6, %v4180_v34, %v957_v48  ;;  %vm1998_vm0 = vcmp.eq.s32.totalorder %v8151_v13, %v8159_v0  ;;  %v8160_v0 = vld [vmem:[#allocation74_spill] sm:$0xff] }
 0x1c1   : > { %vm2296_vm4 = vcmp.eq.s32.totalorder %v8151_v13, %v8140_v3  ;;  %v2743_v41 = vsel %vm2592_vm1, %v8150_v52, %v2445_v45  ;;  %v1553_v11 = vsel %vm1402_vm10, %v8044_v53, %v1255_v7  ;;  %vm2594_vm15 = vcmp.eq.s32.totalorder %v8151_v13, %v8141_v44  ;;  %v8161_v7 = vld [vmem:[#allocation17_spill] sm:$0xff] }
 0x1c2   : > { %vm2892_vm9 = vcmp.eq.s32.totalorder %v8151_v13, %v8143_v62  ;;  %v3041_v48 = vsel %vm2890_vm3, %v4156_v42, %v2743_v41  ;;  %v1851_v23 = vsel %vm1700_vm13, %v8142_v4, %v1553_v11  ;;  %vm802_vm11 = vcmp.eq.s32.totalorder %v8160_v0, %v3941_v24  ;;  %v8162_v4 = vld [vmem:[#allocation25_spill] sm:$0xff] }
 0x1c3   : > { %vm1099_vm14 = vcmp.eq.s32.totalorder %v8160_v0, %v3944_v25  ;;  %3095 = vmatpush2.msra.mxu0 %v3041_v48  ;;  %v2149_v45 = vsel %vm1998_vm0, %v4212_v33, %v1851_v23  ;;  %v952_v44 = vsel %vm802_vm11, %v8161_v7, 0.0  ;;  %vm1397_vm7 = vcmp.eq.s32.totalorder %v8160_v0, %v3947_v26  ;;  %v8163_v7 = vld [vmem:[#allocation27_spill] sm:$0xff] }
 0x1c4   : > { %vm1695_vm8 = vcmp.eq.s32.totalorder %v8160_v0, %v3950_v27  ;;  %v2447_v41 = vsel %vm2296_vm4, %v4223_v15, %v2149_v45  ;;  %v1250_v11 = vsel %vm1099_vm14, %v8133_v10, %v952_v44  ;;  %vm1993_vm12 = vcmp.eq.s32.totalorder %v8160_v0, %v8162_v4 }
 0x1c5   : > { %vm2291_vm2 = vcmp.eq.s32.totalorder %v8160_v0, %v8093_v18  ;;  %v2745_v48 = vsel %vm2594_vm15, %v8122_v8, %v2447_v41  ;;  %v1548_v23 = vsel %vm1397_vm7, %v8152_v61, %v1250_v11  ;;  %vm2589_vm1 = vcmp.eq.s32.totalorder %v8160_v0, %v8163_v7  ;;  %v8164_v11 = vld [vmem:[#allocation22_spill] sm:$0xff] }
 0x1c6   : > { %vm2887_vm3 = vcmp.eq.s32.totalorder %v8160_v0, %v4006_v12  ;;  %v3043_v44 = vsel %vm2892_vm9, %v8123_v60, %v2745_v48  ;;  %v1846_v45 = vsel %vm1695_vm8, %v8134_v47, %v1548_v23  ;;  %vm804_vm5 = vcmp.eq.s32.totalorder %v8160_v0, %v8153_v59 }
 0x1c7   : > { %vm1101_vm6 = vcmp.eq.s32.totalorder %v8160_v0, %v8114_v28  ;;  %3166 = vmatpush2.msra.mxu1 %v3043_v44  ;;  %v2144_v41 = vsel %vm1993_vm12, %v8135_v22, %v1846_v45  ;;  %v954_v7 = vsel %vm804_vm5, %v8164_v11, 0.0  ;;  %vm1399_vm10 = vcmp.eq.s32.totalorder %v8160_v0, %v8144_v16 }
 0x1c8   : > { %vm1697_vm13 = vcmp.eq.s32.totalorder %v8160_v0, %v4012_v43  ;;  %v2442_v13 = vsel %vm2291_vm2, %v8136_v19, %v2144_v41  ;;  %v1252_v48 = vsel %vm1101_vm6, %v8024_v63, %v954_v7  ;;  %vm1995_vm0 = vcmp.eq.s32.totalorder %v8160_v0, %v8155_v46 }
 0x1c9   : > { %vm2293_vm4 = vcmp.eq.s32.totalorder %v8160_v0, %v8145_v37  ;;  %v2740_v23 = vsel %vm2589_vm1, %v8075_v9, %v2442_v13  ;;  %v1550_v44 = vsel %vm1399_vm10, %v8146_v2, %v1252_v48  ;;  %vm2591_vm15 = vcmp.eq.s32.totalorder %v8160_v0, %v8156_v32  ;;  %v8165_v48 = vld [vmem:[#allocation51_spill] sm:$0xff] }
 0x1ca   : > { %vm2889_vm9 = vcmp.eq.s32.totalorder %v8160_v0, %v8016_v6  ;;  %v3038_v7 = vsel %vm2887_vm3, %v8097_v29, %v2740_v23  ;;  %v1848_v45 = vsel %vm1697_vm13, %v8087_v39, %v1550_v44  ;;  %vm801_vm11 = vcmp.eq.s32.totalorder %v8160_v0, %v8147_v14 }
 0x1cb   : > { %vm1098_vm14 = vcmp.eq.s32.totalorder %v8160_v0, %v8107_v1  ;;  %3096 = vmatprep.subr.mxu0 %v3038_v7  ;;  %v2146_v41 = vsel %vm1995_vm0, %v8067_v58, %v1848_v45  ;;  %v951_v13 = vsel %vm801_vm11, %v8148_v20, 0.0  ;;  %vm1396_vm7 = vcmp.eq.s32.totalorder %v8160_v0, %v8137_v36  ;;  %v8166_v20 = vld [vmem:[#allocation57_spill] sm:$0xff] }
 0x1cc   : > { %vm1694_vm8 = vcmp.eq.s32.totalorder %v8160_v0, %v8165_v48  ;;  %v2444_v23 = vsel %vm2293_vm4, %v8118_v55, %v2146_v41  ;;  %v1249_v44 = vsel %vm1098_vm14, %v7996_v38, %v951_v13  ;;  %vm1992_vm12 = vcmp.eq.s32.totalorder %v8160_v0, %v8138_v40  ;;  %v8167_v13 = vld [vmem:[#allocation52_spill] sm:$0xff] }
 0x1cd   : > { %vm2290_vm2 = vcmp.eq.s32.totalorder %v8160_v0, %v8139_v49  ;;  %v2742_v7 = vsel %vm2591_vm15, %v8008_v51, %v2444_v23  ;;  %v1547_v45 = vsel %vm1396_vm7, %v8119_v35, %v1249_v44  ;;  %vm2588_vm1 = vcmp.eq.s32.totalorder %v8160_v0, %v8166_v20 }
 0x1ce   : > { %vm2886_vm3 = vcmp.eq.s32.totalorder %v8160_v0, %v8041_v21  ;;  %v3040_v41 = vsel %vm2889_vm9, %v8157_v31, %v2742_v7  ;;  %v1845_v40 = vsel %vm1694_vm8, %v8167_v13, %v1547_v45  ;;  %vm803_vm5 = vcmp.eq.s32.totalorder %v8160_v0, %v4160_v56  ;;  %v8168_v13 = vld [vmem:[#allocation67_spill] sm:$0xff] }
 0x1cf   : > { %vm1100_vm6 = vcmp.eq.s32.totalorder %v8160_v0, %v8100_v17  ;;  %3167 = vmatprep.subr.mxu1 %v3040_v41  ;;  %v2143_v23 = vsel %vm1992_vm12, %v8051_v57, %v1845_v40  ;;  %v953_v44 = vsel %vm803_vm5, %v8158_v54, 0.0  ;;  %vm1398_vm10 = vcmp.eq.s32.totalorder %v8160_v0, %v8028_v50  ;;  %v8169_v54 = vld [vmem:[#allocation69_spill] sm:$0xff] }
 0x1d0   : > { %vm1696_vm13 = vcmp.eq.s32.totalorder %v8160_v0, %v8120_v30  ;;  %v2441_v7 = vsel %vm2290_vm2, %v8149_v5, %v2143_v23  ;;  %v1251_v45 = vsel %vm1100_vm6, %v4180_v34, %v953_v44  ;;  %vm1994_vm0 = vcmp.eq.s32.totalorder %v8160_v0, %v8168_v13  ;;  %v8170_v44 = vld [vmem:[#allocation66_spill] sm:$0xff]  ;;  %v8171_v34 = vld [vmem:[#allocation75_spill] sm:$0xff] }
 0x1d1   : > { %vm2292_vm4 = vcmp.eq.s32.totalorder %v8160_v0, %v8140_v3  ;;  %v2739_v40 = vsel %vm2588_vm1, %v8150_v52, %v2441_v7  ;;  %v1549_v41 = vsel %vm1398_vm10, %v8044_v53, %v1251_v45  ;;  %vm2590_vm15 = vcmp.eq.s32.totalorder %v8160_v0, %v8169_v54  ;;  %v8172_v45 = vld [vmem:[#allocation17_spill] sm:$0xff] }
 0x1d2   : > { %vm2888_vm9 = vcmp.eq.s32.totalorder %v8160_v0, %v8143_v62  ;;  %v3037_v23 = vsel %vm2886_vm3, %v4156_v42, %v2739_v40  ;;  %v1847_v13 = vsel %vm1696_vm13, %v8170_v44, %v1549_v41  ;;  %vm798_vm11 = vcmp.eq.s32.totalorder %v8171_v34, %v3941_v24 }
 0x1d3   : > { %vm1095_vm14 = vcmp.eq.s32.totalorder %v8171_v34, %v3944_v25  ;;  %3097 = vmatpush2.msra.mxu0 %v3037_v23  ;;  %v2145_v7 = vsel %vm1994_vm0, %v4212_v33, %v1847_v13  ;;  %v948_v54 = vsel %vm798_vm11, %v8172_v45, 0.0  ;;  %vm1393_vm7 = vcmp.eq.s32.totalorder %v8171_v34, %v3947_v26  ;;  %v8173_v45 = vld [vmem:[#allocation27_spill] sm:$0xff] }
 0x1d4   : > { %vm1691_vm8 = vcmp.eq.s32.totalorder %v8171_v34, %v3950_v27  ;;  %v2443_v40 = vsel %vm2292_vm4, %v4223_v15, %v2145_v7  ;;  %v1246_v41 = vsel %vm1095_vm14, %v8133_v10, %v948_v54  ;;  %vm1989_vm12 = vcmp.eq.s32.totalorder %v8171_v34, %v8162_v4 }
 0x1d5   : > { %vm2287_vm2 = vcmp.eq.s32.totalorder %v8171_v34, %v8093_v18  ;;  %v2741_v13 = vsel %vm2590_vm15, %v8122_v8, %v2443_v40  ;;  %v1544_v23 = vsel %vm1393_vm7, %v8152_v61, %v1246_v41  ;;  %vm2585_vm1 = vcmp.eq.s32.totalorder %v8171_v34, %v8173_v45 }
 0x1d6   : > { %vm2883_vm3 = vcmp.eq.s32.totalorder %v8171_v34, %v4006_v12  ;;  %v3039_v54 = vsel %vm2888_vm9, %v8123_v60, %v2741_v13  ;;  %v1842_v7 = vsel %vm1691_vm8, %v8134_v47, %v1544_v23  ;;  %vm800_vm5 = vcmp.eq.s32.totalorder %v8171_v34, %v8153_v59 }
 0x1d7   : > { %vm1097_vm6 = vcmp.eq.s32.totalorder %v8171_v34, %v8114_v28  ;;  %3168 = vmatpush2.msra.mxu1 %v3039_v54  ;;  %v2140_v40 = vsel %vm1989_vm12, %v8135_v22, %v1842_v7  ;;  %v950_v41 = vsel %vm800_vm5, %v8164_v11, 0.0  ;;  %vm1395_vm10 = vcmp.eq.s32.totalorder %v8171_v34, %v8144_v16 }
 0x1d8   : > { %vm1693_vm13 = vcmp.eq.s32.totalorder %v8171_v34, %v4012_v43  ;;  %v2438_v0 = vsel %vm2287_vm2, %v8136_v19, %v2140_v40  ;;  %v1248_v13 = vsel %vm1097_vm6, %v8024_v63, %v950_v41  ;;  %vm1991_vm0 = vcmp.eq.s32.totalorder %v8171_v34, %v8155_v46 }
 0x1d9   : > { %vm2289_vm4 = vcmp.eq.s32.totalorder %v8171_v34, %v8145_v37  ;;  %v2736_v23 = vsel %vm2585_vm1, %v8075_v9, %v2438_v0  ;;  %v1546_v54 = vsel %vm1395_vm10, %v8146_v2, %v1248_v13  ;;  %vm2587_vm15 = vcmp.eq.s32.totalorder %v8171_v34, %v8156_v32  ;;  %v8174_v0 = vld [vmem:[#allocation46_spill] sm:$0xff] }
 0x1da   : > { %vm2885_vm9 = vcmp.eq.s32.totalorder %v8171_v34, %v8016_v6  ;;  %v3034_v7 = vsel %vm2883_vm3, %v8097_v29, %v2736_v23  ;;  %v1844_v40 = vsel %vm1693_vm13, %v8087_v39, %v1546_v54  ;;  %vm797_vm11 = vcmp.eq.s32.totalorder %v8171_v34, %v8147_v14  ;;  %v8175_v29 = vld [vmem:[#allocation53_spill] sm:$0xff] }
 0x1db   : > { %vm1094_vm14 = vcmp.eq.s32.totalorder %v8171_v34, %v8107_v1  ;;  %3098 = vmatprep.subr.mxu0 %v3034_v7  ;;  %v2142_v41 = vsel %vm1991_vm0, %v8067_v58, %v1844_v40  ;;  %v947_v13 = vsel %vm797_vm11, %v8174_v0, 0.0  ;;  %vm1392_vm7 = vcmp.eq.s32.totalorder %v8171_v34, %v8137_v36 }
 0x1dc   : > { %vm1690_vm8 = vcmp.eq.s32.totalorder %v8171_v34, %v8165_v48  ;;  %v2440_v23 = vsel %vm2289_vm4, %v8118_v55, %v2142_v41  ;;  %v1245_v54 = vsel %vm1094_vm14, %v7996_v38, %v947_v13  ;;  %vm1988_vm12 = vcmp.eq.s32.totalorder %v8171_v34, %v8175_v29  ;;  %v8176_v13 = vld [vmem:[#allocation52_spill] sm:$0xff] }
 0x1dd   : > { %vm2286_vm2 = vcmp.eq.s32.totalorder %v8171_v34, %v8139_v49  ;;  %v2738_v7 = vsel %vm2587_vm15, %v8008_v51, %v2440_v23  ;;  %v1543_v40 = vsel %vm1392_vm7, %v8119_v35, %v1245_v54  ;;  %vm2584_vm1 = vcmp.eq.s32.totalorder %v8171_v34, %v8166_v20  ;;  %v8177_v54 = vld [vmem:[#allocation60_spill] sm:$0xff] }
 0x1de   : > { %vm2882_vm3 = vcmp.eq.s32.totalorder %v8171_v34, %v8041_v21  ;;  %v3036_v41 = vsel %vm2885_vm9, %v8157_v31, %v2738_v7  ;;  %v1841_v29 = vsel %vm1690_vm8, %v8176_v13, %v1543_v40  ;;  %vm799_vm5 = vcmp.eq.s32.totalorder %v8171_v34, %v4160_v56  ;;  %v8178_v40 = vld [vmem:[#allocation62_spill] sm:$0xff]  ;;  %v8179_v31 = vld [vmem:[#allocation67_spill] sm:$0xff] }
 0x1df   : > { %vm1096_vm6 = vcmp.eq.s32.totalorder %v8171_v34, %v8100_v17  ;;  %3169 = vmatprep.subr.mxu1 %v3036_v41  ;;  %v2139_v23 = vsel %vm1988_vm12, %v8051_v57, %v1841_v29  ;;  %v949_v20 = vsel %vm799_vm5, %v8177_v54, 0.0  ;;  %vm1394_vm10 = vcmp.eq.s32.totalorder %v8171_v34, %v8028_v50  ;;  %v8180_v17 = vld [vmem:[#allocation69_spill] sm:$0xff] }
 0x1e0   : > { %vm1692_vm13 = vcmp.eq.s32.totalorder %v8171_v34, %v8120_v30  ;;  %v2437_v7 = vsel %vm2286_vm2, %v8149_v5, %v2139_v23  ;;  %v1247_v13 = vsel %vm1096_vm6, %v8178_v40, %v949_v20  ;;  %vm1990_vm0 = vcmp.eq.s32.totalorder %v8171_v34, %v8179_v31  ;;  %v8181_v31 = vld [vmem:[#allocation16_spill] sm:$0xff] }
 0x1e1   : > { %vm2288_vm4 = vcmp.eq.s32.totalorder %v8171_v34, %v8140_v3  ;;  %v2735_v29 = vsel %vm2584_vm1, %v8150_v52, %v2437_v7  ;;  %v1545_v41 = vsel %vm1394_vm10, %v8044_v53, %v1247_v13  ;;  %vm2586_vm15 = vcmp.eq.s32.totalorder %v8171_v34, %v8180_v17 }
 0x1e2   : > { %vm2884_vm9 = vcmp.eq.s32.totalorder %v8171_v34, %v8143_v62  ;;  %v3033_v20 = vsel %vm2882_vm3, %v4156_v42, %v2735_v29  ;;  %v1843_v23 = vsel %vm1692_vm13, %v8170_v44, %v1545_v41  ;;  %v6429_v30 = vadd.s32 208, %v8181_v31 }
 0x1e3   : > { %v6432_v7 = vadd.s32 200, %v8181_v31  ;;  %3099 = vmatpush2.msra.mxu0 %v3033_v20  ;;  %v2141_v13 = vsel %vm1990_vm0, %v4212_v33, %v1843_v23  ;;  %v6436_v17 = vadd.s32 192, %v8181_v31  ;;  %v6439_v3 = vadd.s32 184, %v8181_v31  ;;  %v8185_v20 = vld [vmem:[#allocation17_spill] sm:$0xff] }
 0x1e4   : > { %v6442_v53 = vadd.s32 176, %v8181_v31  ;;  %v2439_v29 = vsel %vm2288_vm4, %v4223_v15, %v2141_v13  ;;  %vm794_vm11 = vcmp.eq.s32.totalorder %v6429_v30, %v3941_v24  ;;  %vm1091_vm14 = vcmp.eq.s32.totalorder %v6429_v30, %v3944_v25 }
 0x1e5   : > { %8182 = vst [vmem:[#allocation26_spill] sm:$0xff] %v6436_v17  ;;  %8183 = vst [vmem:[#allocation44_spill] sm:$0xff] %v6439_v3  ;;  %vm1389_vm7 = vcmp.eq.s32.totalorder %v6429_v30, %v3947_v26  ;;  %v2737_v41 = vsel %vm2586_vm15, %v8122_v8, %v2439_v29  ;;  %v944_v23 = vsel %vm794_vm11, %v8185_v20, 0.0  ;;  %vm1687_vm8 = vcmp.eq.s32.totalorder %v6429_v30, %v3950_v27  ;;  %v8187_v17 = vld [vmem:[#allocation53_spill] sm:$0xff] }
 0x1e6   : > { %8184 = vst [vmem:[#allocation70_spill] sm:$0xff] %v6442_v53  ;;  %vm1985_vm12 = vcmp.eq.s32.totalorder %v6429_v30, %v8162_v4  ;;  %v3035_v13 = vsel %vm2884_vm9, %v8123_v60, %v2737_v41  ;;  %v1242_v31 = vsel %vm1091_vm14, %v8133_v10, %v944_v23  ;;  %vm2283_vm2 = vcmp.eq.s32.totalorder %v6429_v30, %v8093_v18 }
 0x1e7   : > { %vm2581_vm1 = vcmp.eq.s32.totalorder %v6429_v30, %v8173_v45  ;;  %3170 = vmatpush2.msra.mxu1 %v3035_v13  ;;  %v1540_v29 = vsel %vm1389_vm7, %v8152_v61, %v1242_v31  ;;  %vm2879_vm3 = vcmp.eq.s32.totalorder %v6429_v30, %v4006_v12  ;;  %vm796_vm5 = vcmp.eq.s32.totalorder %v6429_v30, %v8153_v59 }
 0x1e8   : > { %vm1093_vm6 = vcmp.eq.s32.totalorder %v6429_v30, %v8114_v28  ;;  %v1838_v34 = vsel %vm1687_vm8, %v8134_v47, %v1540_v29  ;;  %v946_v41 = vsel %vm796_vm5, %v8164_v11, 0.0  ;;  %vm1391_vm10 = vcmp.eq.s32.totalorder %v6429_v30, %v8144_v16 }
 0x1e9   : > { %vm1689_vm13 = vcmp.eq.s32.totalorder %v6429_v30, %v4012_v43  ;;  %v2136_v31 = vsel %vm1985_vm12, %v8135_v22, %v1838_v34  ;;  %v1244_v23 = vsel %vm1093_vm6, %v8024_v63, %v946_v41  ;;  %vm1987_vm0 = vcmp.eq.s32.totalorder %v6429_v30, %v8155_v46 }
 0x1ea   : > { %vm2285_vm4 = vcmp.eq.s32.totalorder %v6429_v30, %v8145_v37  ;;  %v2434_v13 = vsel %vm2283_vm2, %v8136_v19, %v2136_v31  ;;  %v1542_v29 = vsel %vm1391_vm10, %v8146_v2, %v1244_v23  ;;  %vm2583_vm15 = vcmp.eq.s32.totalorder %v6429_v30, %v8156_v32  ;;  %v8186_v31 = vld [vmem:[#allocation29_spill] sm:$0xff] }
 0x1eb   : > { %vm2881_vm9 = vcmp.eq.s32.totalorder %v6429_v30, %v8016_v6  ;;  %v2732_v34 = vsel %vm2581_vm1, %v8075_v9, %v2434_v13  ;;  %v1840_v41 = vsel %vm1689_vm13, %v8087_v39, %v1542_v29  ;;  %vm793_vm11 = vcmp.eq.s32.totalorder %v6429_v30, %v8147_v14 }
 0x1ec   : > { %vm1090_vm14 = vcmp.eq.s32.totalorder %v6429_v30, %v8107_v1  ;;  %v3030_v23 = vsel %vm2879_vm3, %v8186_v31, %v2732_v34  ;;  %v2138_v53 = vsel %vm1987_vm0, %v8067_v58, %v1840_v41  ;;  %v943_v3 = vsel %vm793_vm11, %v8174_v0, 0.0  ;;  %v8188_v1 = vld [vmem:[#allocation57_spill] sm:$0xff] }
 0x1ed   : > { %vm1388_vm7 = vcmp.eq.s32.totalorder %v6429_v30, %v8137_v36  ;;  %3100 = vmatprep.subr.mxu0 %v3030_v23  ;;  %v2436_v13 = vsel %vm2285_vm4, %v8118_v55, %v2138_v53  ;;  %v1241_v29 = vsel %vm1090_vm14, %v7996_v38, %v943_v3  ;;  %vm1686_vm8 = vcmp.eq.s32.totalorder %v6429_v30, %v8165_v48  ;;  %v8189_v23 = vld [vmem:[#allocation43_spill] sm:$0xff]  ;;  %v8190_v3 = vld [vmem:[#allocation52_spill] sm:$0xff] }
 0x1ee   : > { %vm1984_vm12 = vcmp.eq.s32.totalorder %v6429_v30, %v8187_v17  ;;  %v2734_v34 = vsel %vm2583_vm15, %v8008_v51, %v2436_v13  ;;  %v1539_v41 = vsel %vm1388_vm7, %v8119_v35, %v1241_v29  ;;  %vm2282_vm2 = vcmp.eq.s32.totalorder %v6429_v30, %v8139_v49  ;;  %v8191_v49 = vld [vmem:[#allocation61_spill] sm:$0xff] }
 0x1ef   : > { %vm2580_vm1 = vcmp.eq.s32.totalorder %v6429_v30, %v8188_v1  ;;  %v3032_v53 = vsel %vm2881_vm9, %v8189_v23, %v2734_v34  ;;  %v1837_v48 = vsel %vm1686_vm8, %v8190_v3, %v1539_v41  ;;  %vm2878_vm3 = vcmp.eq.s32.totalorder %v6429_v30, %v8041_v21  ;;  %v8192_v3 = vld [vmem:[#allocation65_spill] sm:$0xff]  ;;  %v8193_v21 = vld [vmem:[#allocation67_spill] sm:$0xff] }
 0x1f0   : > { %vm795_vm5 = vcmp.eq.s32.totalorder %v6429_v30, %v4160_v56  ;;  %3171 = vmatprep.subr.mxu1 %v3032_v53  ;;  %v2135_v13 = vsel %vm1984_vm12, %v8051_v57, %v1837_v48  ;;  %vm1092_vm6 = vcmp.eq.s32.totalorder %v6429_v30, %v8191_v49  ;;  %vm1390_vm10 = vcmp.eq.s32.totalorder %v6429_v30, %v8028_v50  ;;  %v8194_v53 = vld [vmem:[#allocation64_spill] sm:$0xff]  ;;  %v8196_v49 = vld [vmem:[#allocation69_spill] sm:$0xff] }
 0x1f1   : > { %v945_v29 = vsel %vm795_vm5, %v8177_v54, 0.0  ;;  %v2433_v34 = vsel %vm2282_vm2, %v8149_v5, %v2135_v13  ;;  %vm1688_vm13 = vcmp.eq.s32.totalorder %v6429_v30, %v8192_v3  ;;  %vm1986_vm0 = vcmp.eq.s32.totalorder %v6429_v30, %v8193_v21  ;;  %v8195_v57 = vld [vmem:[#allocation68_spill] sm:$0xff] }
 0x1f2   : > { %v1243_v41 = vsel %vm1092_vm6, %v8178_v40, %v945_v29  ;;  %v2731_v48 = vsel %vm2580_vm1, %v8150_v52, %v2433_v34  ;;  %vm2284_vm4 = vcmp.eq.s32.totalorder %v6429_v30, %v8195_v57  ;;  %vm2582_vm15 = vcmp.eq.s32.totalorder %v6429_v30, %v8196_v49 }
 0x1f3   : > { %v1541_v54 = vsel %vm1390_vm10, %v8194_v53, %v1243_v41  ;;  %v3029_v13 = vsel %vm2878_vm3, %v4156_v42, %v2731_v48  ;;  %vm2880_vm9 = vcmp.eq.s32.totalorder %v6429_v30, %v8143_v62  ;;  %vm790_vm11 = vcmp.eq.s32.totalorder %v6432_v7, %v3941_v24 }
 0x1f4   : > { %v1839_v29 = vsel %vm1688_vm13, %v8170_v44, %v1541_v54  ;;  %3101 = vmatpush2.msra.mxu0 %v3029_v13  ;;  %v940_v41 = vsel %vm790_vm11, %v8185_v20, 0.0  ;;  %vm1087_vm14 = vcmp.eq.s32.totalorder %v6432_v7, %v3944_v25  ;;  %vm1385_vm7 = vcmp.eq.s32.totalorder %v6432_v7, %v3947_v26 }
 0x1f5   : > { %v2137_v34 = vsel %vm1986_vm0, %v4212_v33, %v1839_v29  ;;  %v1238_v54 = vsel %vm1087_vm14, %v8133_v10, %v940_v41  ;;  %vm1683_vm8 = vcmp.eq.s32.totalorder %v6432_v7, %v3950_v27  ;;  %vm1981_vm12 = vcmp.eq.s32.totalorder %v6432_v7, %v8162_v4 }
 0x1f6   : > { %v2435_v48 = vsel %vm2284_vm4, %v4223_v15, %v2137_v34  ;;  %v1536_v13 = vsel %vm1385_vm7, %v8152_v61, %v1238_v54  ;;  %vm2279_vm2 = vcmp.eq.s32.totalorder %v6432_v7, %v8093_v18  ;;  %vm2577_vm1 = vcmp.eq.s32.totalorder %v6432_v7, %v8173_v45 }
 0x1f7   : > { %v2733_v30 = vsel %vm2582_vm15, %v8122_v8, %v2435_v48  ;;  %v1834_v34 = vsel %vm1683_vm8, %v8134_v47, %v1536_v13  ;;  %vm2875_vm3 = vcmp.eq.s32.totalorder %v6432_v7, %v4006_v12  ;;  %vm792_vm5 = vcmp.eq.s32.totalorder %v6432_v7, %v8153_v59 }
 0x1f8   : > { %v3031_v29 = vsel %vm2880_vm9, %v8123_v60, %v2733_v30  ;;  %v2132_v41 = vsel %vm1981_vm12, %v8135_v22, %v1834_v34  ;;  %v942_v48 = vsel %vm792_vm5, %v8164_v11, 0.0  ;;  %vm1089_vm6 = vcmp.eq.s32.totalorder %v6432_v7, %v8114_v28 }
 0x1f9   : > { %3172 = vmatpush2.msra.mxu1 %v3031_v29  ;;  %vm1387_vm10 = vcmp.eq.s32.totalorder %v6432_v7, %v8144_v16  ;;  %v2430_v54 = vsel %vm2279_vm2, %v8136_v19, %v2132_v41  ;;  %v1240_v30 = vsel %vm1089_vm6, %v8024_v63, %v942_v48  ;;  %vm1685_vm13 = vcmp.eq.s32.totalorder %v6432_v7, %v4012_v43 }
 0x1fa   : > { %vm1983_vm0 = vcmp.eq.s32.totalorder %v6432_v7, %v8155_v46  ;;  %v2728_v13 = vsel %vm2577_vm1, %v8075_v9, %v2430_v54  ;;  %v1538_v29 = vsel %vm1387_vm10, %v8146_v2, %v1240_v30  ;;  %vm2281_vm4 = vcmp.eq.s32.totalorder %v6432_v7, %v8145_v37  ;;  %v8197_v30 = vld [vmem:[#allocation47_spill] sm:$0xff] }
 0x1fb   : > { %vm2579_vm15 = vcmp.eq.s32.totalorder %v6432_v7, %v8156_v32  ;;  %v3026_v34 = vsel %vm2875_vm3, %v8186_v31, %v2728_v13  ;;  %v1836_v41 = vsel %vm1685_vm13, %v8087_v39, %v1538_v29  ;;  %vm2877_vm9 = vcmp.eq.s32.totalorder %v6432_v7, %v8016_v6  ;;  %v8198_v39 = vld [vmem:[#allocation51_spill] sm:$0xff] }
 0x1fc   : > { %vm789_vm11 = vcmp.eq.s32.totalorder %v6432_v7, %v8147_v14  ;;  %3102 = vmatprep.subr.mxu0 %v3026_v34  ;;  %v2134_v48 = vsel %vm1983_vm0, %v8067_v58, %v1836_v41  ;;  %vm1086_vm14 = vcmp.eq.s32.totalorder %v6432_v7, %v8197_v30  ;;  %vm1384_vm7 = vcmp.eq.s32.totalorder %v6432_v7, %v8137_v36 }
 0x1fd   : > { %v939_v54 = vsel %vm789_vm11, %v8174_v0, 0.0  ;;  %v2432_v13 = vsel %vm2281_vm4, %v8118_v55, %v2134_v48  ;;  %vm1682_vm8 = vcmp.eq.s32.totalorder %v6432_v7, %v8198_v39  ;;  %vm1980_vm12 = vcmp.eq.s32.totalorder %v6432_v7, %v8187_v17  ;;  %v8199_v0 = vld [vmem:[#allocation55_spill] sm:$0xff]  ;;  %v8200_v55 = vld [vmem:[#allocation52_spill] sm:$0xff]  ;;  %v8204_v17 = vld [vmem:[#allocation61_spill] sm:$0xff] }
 0x1fe   : > { %v1237_v29 = vsel %vm1086_vm14, %v7996_v38, %v939_v54  ;;  %v2730_v34 = vsel %vm2579_vm15, %v8008_v51, %v2432_v13  ;;  %vm2278_vm2 = vcmp.eq.s32.totalorder %v6432_v7, %v8199_v0  ;;  %vm2576_vm1 = vcmp.eq.s32.totalorder %v6432_v7, %v8188_v1  ;;  %v8201_v38 = vld [vmem:[#allocation59_spill] sm:$0xff]  ;;  %v8202_v13 = vld [vmem:[#allocation54_spill] sm:$0xff] }
 0x1ff   : > { %v1535_v41 = vsel %vm1384_vm7, %v8119_v35, %v1237_v29  ;;  %v3028_v48 = vsel %vm2877_vm9, %v8189_v23, %v2730_v34  ;;  %vm2874_vm3 = vcmp.eq.s32.totalorder %v6432_v7, %v8201_v38  ;;  %vm791_vm5 = vcmp.eq.s32.totalorder %v6432_v7, %v4160_v56  ;;  %v8203_v29 = vld [vmem:[#allocation60_spill] sm:$0xff] }
 0x200   : > { %v1833_v54 = vsel %vm1682_vm8, %v8200_v55, %v1535_v41  ;;  %3173 = vmatprep.subr.mxu1 %v3028_v48  ;;  %v941_v35 = vsel %vm791_vm5, %v8203_v29, 0.0  ;;  %vm1088_vm6 = vcmp.eq.s32.totalorder %v6432_v7, %v8204_v17  ;;  %vm1386_vm10 = vcmp.eq.s32.totalorder %v6432_v7, %v8028_v50 }
 0x201   : > { %v2131_v51 = vsel %vm1980_vm12, %v8202_v13, %v1833_v54  ;;  %v1239_v41 = vsel %vm1088_vm6, %v8178_v40, %v941_v35  ;;  %vm1684_vm13 = vcmp.eq.s32.totalorder %v6432_v7, %v8192_v3  ;;  %vm1982_vm0 = vcmp.eq.s32.totalorder %v6432_v7, %v8193_v21  ;;  %v8205_v3 = vld [vmem:[#allocation26_spill] sm:$0xff] }
 0x202   : > { %v2429_v34 = vsel %vm2278_vm2, %v8149_v5, %v2131_v51  ;;  %v1537_v54 = vsel %vm1386_vm10, %v8194_v53, %v1239_v41  ;;  %vm2280_vm4 = vcmp.eq.s32.totalorder %v6432_v7, %v8195_v57  ;;  %vm2578_vm15 = vcmp.eq.s32.totalorder %v6432_v7, %v8196_v49 }
 0x203   : > { %v2727_v48 = vsel %vm2576_vm1, %v8150_v52, %v2429_v34  ;;  %v1835_v35 = vsel %vm1684_vm13, %v8170_v44, %v1537_v54  ;;  %vm2876_vm9 = vcmp.eq.s32.totalorder %v6432_v7, %v8143_v62  ;;  %vm786_vm11 = vcmp.eq.s32.totalorder %v8205_v3, %v3941_v24 }
 0x204   : > { %v3025_v51 = vsel %vm2874_vm3, %v4156_v42, %v2727_v48  ;;  %v2133_v34 = vsel %vm1982_vm0, %v4212_v33, %v1835_v35  ;;  %v936_v41 = vsel %vm786_vm11, %v8185_v20, 0.0  ;;  %vm1083_vm14 = vcmp.eq.s32.totalorder %v8205_v3, %v3944_v25 }
 0x205   : > { %3103 = vmatpush2.msra.mxu0 %v3025_v51  ;;  %vm1381_vm7 = vcmp.eq.s32.totalorder %v8205_v3, %v3947_v26  ;;  %v2431_v48 = vsel %vm2280_vm4, %v4223_v15, %v2133_v34  ;;  %v1234_v54 = vsel %vm1083_vm14, %v8133_v10, %v936_v41  ;;  %vm1679_vm8 = vcmp.eq.s32.totalorder %v8205_v3, %v3950_v27 }
 0x206   : > { %vm1977_vm12 = vcmp.eq.s32.totalorder %v8205_v3, %v8162_v4  ;;  %v2729_v7 = vsel %vm2578_vm15, %v8122_v8, %v2431_v48  ;;  %v1532_v51 = vsel %vm1381_vm7, %v8152_v61, %v1234_v54  ;;  %vm2275_vm2 = vcmp.eq.s32.totalorder %v8205_v3, %v8093_v18 }
 0x207   : > { %vm2573_vm1 = vcmp.eq.s32.totalorder %v8205_v3, %v8173_v45  ;;  %v3027_v35 = vsel %vm2876_vm9, %v8123_v60, %v2729_v7  ;;  %v1830_v34 = vsel %vm1679_vm8, %v8134_v47, %v1532_v51  ;;  %vm2871_vm3 = vcmp.eq.s32.totalorder %v8205_v3, %v4006_v12 }
 0x208   : > { %vm788_vm5 = vcmp.eq.s32.totalorder %v8205_v3, %v8153_v59  ;;  %3174 = vmatpush2.msra.mxu1 %v3027_v35  ;;  %v2128_v41 = vsel %vm1977_vm12, %v8135_v22, %v1830_v34  ;;  %vm1085_vm6 = vcmp.eq.s32.totalorder %v8205_v3, %v8114_v28  ;;  %vm1383_vm10 = vcmp.eq.s32.totalorder %v8205_v3, %v8144_v16 }
 0x209   : > { %v938_v48 = vsel %vm788_vm5, %v8164_v11, 0.0  ;;  %v2426_v54 = vsel %vm2275_vm2, %v8136_v19, %v2128_v41  ;;  %vm1681_vm13 = vcmp.eq.s32.totalorder %v8205_v3, %v4012_v43  ;;  %vm1979_vm0 = vcmp.eq.s32.totalorder %v8205_v3, %v8155_v46  ;;  %v8206_v41 = vld [vmem:[#allocation35_spill] sm:$0xff] }
 0x20a   : > { %v1236_v7 = vsel %vm1085_vm6, %v8024_v63, %v938_v48  ;;  %v2724_v51 = vsel %vm2573_vm1, %v8075_v9, %v2426_v54  ;;  %vm2277_vm4 = vcmp.eq.s32.totalorder %v8205_v3, %v8145_v37  ;;  %vm2575_vm15 = vcmp.eq.s32.totalorder %v8205_v3, %v8156_v32 }
 0x20b   : > { %v1534_v35 = vsel %vm1383_vm10, %v8146_v2, %v1236_v7  ;;  %v3022_v34 = vsel %vm2871_vm3, %v8186_v31, %v2724_v51  ;;  %vm2873_vm9 = vcmp.eq.s32.totalorder %v8205_v3, %v8016_v6  ;;  %vm785_vm11 = vcmp.eq.s32.totalorder %v8205_v3, %v8147_v14  ;;  %v8207_v7 = vld [vmem:[#allocation46_spill] sm:$0xff]  ;;  %v8208_v51 = vld [vmem:[#allocation39_spill] sm:$0xff]  ;;  %v8210_v6 = vld [vmem:[#allocation53_spill] sm:$0xff] }
 0x20c   : > { %v1832_v48 = vsel %vm1681_vm13, %v8206_v41, %v1534_v35  ;;  %3104 = vmatprep.subr.mxu0 %v3022_v34  ;;  %v935_v2 = vsel %vm785_vm11, %v8207_v7, 0.0  ;;  %vm1082_vm14 = vcmp.eq.s32.totalorder %v8205_v3, %v8197_v30  ;;  %vm1380_vm7 = vcmp.eq.s32.totalorder %v8205_v3, %v8137_v36  ;;  %v8209_v35 = vld [vmem:[#allocation48_spill] sm:$0xff]  ;;  %v8211_v34 = vld [vmem:[#allocation41_spill] sm:$0xff] }
 0x20d   : > { %v2130_v54 = vsel %vm1979_vm0, %v8067_v58, %v1832_v48  ;;  %v1233_v41 = vsel %vm1082_vm14, %v8209_v35, %v935_v2  ;;  %vm1678_vm8 = vcmp.eq.s32.totalorder %v8205_v3, %v8198_v39  ;;  %vm1976_vm12 = vcmp.eq.s32.totalorder %v8205_v3, %v8210_v6  ;;  %v8212_v58 = vld [vmem:[#allocation50_spill] sm:$0xff] }
 0x20e   : > { %v2428_v31 = vsel %vm2277_vm4, %v8208_v51, %v2130_v54  ;;  %v1531_v7 = vsel %vm1380_vm7, %v8212_v58, %v1233_v41  ;;  %vm2274_vm2 = vcmp.eq.s32.totalorder %v8205_v3, %v8199_v0  ;;  %vm2572_vm1 = vcmp.eq.s32.totalorder %v8205_v3, %v8188_v1 }
 0x20f   : > { %v2726_v48 = vsel %vm2575_vm15, %v8211_v34, %v2428_v31  ;;  %v1829_v2 = vsel %vm1678_vm8, %v8200_v55, %v1531_v7  ;;  %vm2870_vm3 = vcmp.eq.s32.totalorder %v8205_v3, %v8201_v38  ;;  %vm787_vm5 = vcmp.eq.s32.totalorder %v8205_v3, %v4160_v56  ;;  %v8213_v55 = vld [vmem:[#allocation65_spill] sm:$0xff] }
 0x210   : > { %v3024_v54 = vsel %vm2873_vm9, %v8189_v23, %v2726_v48  ;;  %v2127_v31 = vsel %vm1976_vm12, %v8202_v13, %v1829_v2  ;;  %v937_v41 = vsel %vm787_vm5, %v8203_v29, 0.0  ;;  %vm1084_vm6 = vcmp.eq.s32.totalorder %v8205_v3, %v8204_v17 }
 0x211   : > { %3175 = vmatprep.subr.mxu1 %v3024_v54  ;;  %vm1382_vm10 = vcmp.eq.s32.totalorder %v8205_v3, %v8028_v50  ;;  %v2425_v48 = vsel %vm2274_vm2, %v8149_v5, %v2127_v31  ;;  %v1235_v7 = vsel %vm1084_vm6, %v8178_v40, %v937_v41  ;;  %vm1680_vm13 = vcmp.eq.s32.totalorder %v8205_v3, %v8213_v55  ;;  %v8214_v55 = vld [vmem:[#allocation44_spill] sm:$0xff] }
 0x212   : > { %vm1978_vm0 = vcmp.eq.s32.totalorder %v8205_v3, %v8193_v21  ;;  %v2723_v54 = vsel %vm2572_vm1, %v8150_v52, %v2425_v48  ;;  %v1533_v2 = vsel %vm1382_vm10, %v8194_v53, %v1235_v7  ;;  %vm2276_vm4 = vcmp.eq.s32.totalorder %v8205_v3, %v8195_v57 }
 0x213   : > { %vm2574_vm15 = vcmp.eq.s32.totalorder %v8205_v3, %v8196_v49  ;;  %v3021_v31 = vsel %vm2870_vm3, %v4156_v42, %v2723_v54  ;;  %v1831_v41 = vsel %vm1680_vm13, %v8170_v44, %v1533_v2  ;;  %vm2872_vm9 = vcmp.eq.s32.totalorder %v8205_v3, %v8143_v62 }
 0x214   : > { %vm782_vm11 = vcmp.eq.s32.totalorder %v8214_v55, %v3941_v24  ;;  %3105 = vmatpush2.msra.mxu0 %v3021_v31  ;;  %v2129_v48 = vsel %vm1978_vm0, %v4212_v33, %v1831_v41  ;;  %vm1079_vm14 = vcmp.eq.s32.totalorder %v8214_v55, %v3944_v25  ;;  %vm1377_vm7 = vcmp.eq.s32.totalorder %v8214_v55, %v3947_v26 }
 0x215   : > { %v932_v7 = vsel %vm782_vm11, %v8185_v20, 0.0  ;;  %v2427_v54 = vsel %vm2276_vm4, %v4223_v15, %v2129_v48  ;;  %vm1675_vm8 = vcmp.eq.s32.totalorder %v8214_v55, %v3950_v27  ;;  %vm1973_vm12 = vcmp.eq.s32.totalorder %v8214_v55, %v8162_v4 }
 0x216   : > { %v1230_v2 = vsel %vm1079_vm14, %v8133_v10, %v932_v7  ;;  %v2725_v3 = vsel %vm2574_vm15, %v8122_v8, %v2427_v54  ;;  %vm2271_vm2 = vcmp.eq.s32.totalorder %v8214_v55, %v8093_v18  ;;  %vm2569_vm1 = vcmp.eq.s32.totalorder %v8214_v55, %v8173_v45 }
 0x217   : > { %v1528_v31 = vsel %vm1377_vm7, %v8152_v61, %v1230_v2  ;;  %v3023_v41 = vsel %vm2872_vm9, %v8123_v60, %v2725_v3  ;;  %vm2867_vm3 = vcmp.eq.s32.totalorder %v8214_v55, %v4006_v12  ;;  %vm784_vm5 = vcmp.eq.s32.totalorder %v8214_v55, %v8153_v59 }
 0x218   : > { %v1826_v48 = vsel %vm1675_vm8, %v8134_v47, %v1528_v31  ;;  %3176 = vmatpush2.msra.mxu1 %v3023_v41  ;;  %v934_v54 = vsel %vm784_vm5, %v8164_v11, 0.0  ;;  %vm1081_vm6 = vcmp.eq.s32.totalorder %v8214_v55, %v8114_v28  ;;  %vm1379_vm10 = vcmp.eq.s32.totalorder %v8214_v55, %v8144_v16  ;;  %v8215_v41 = vld [vmem:[#allocation33_spill] sm:$0xff] }
 0x219   : > { %v2124_v7 = vsel %vm1973_vm12, %v8135_v22, %v1826_v48  ;;  %v1232_v3 = vsel %vm1081_vm6, %v8024_v63, %v934_v54  ;;  %vm1677_vm13 = vcmp.eq.s32.totalorder %v8214_v55, %v4012_v43  ;;  %vm1975_vm0 = vcmp.eq.s32.totalorder %v8214_v55, %v8155_v46  ;;  %v8216_v16 = vld [vmem:[#allocation29_spill] sm:$0xff]  ;;  %v8218_v63 = vld [vmem:[#allocation42_spill] sm:$0xff] }
 0x21a   : > { %v2422_v2 = vsel %vm2271_vm2, %v8136_v19, %v2124_v7  ;;  %v1530_v48 = vsel %vm1379_vm10, %v8215_v41, %v1232_v3  ;;  %vm2273_vm4 = vcmp.eq.s32.totalorder %v8214_v55, %v8145_v37  ;;  %vm2571_vm15 = vcmp.eq.s32.totalorder %v8214_v55, %v8156_v32  ;;  %v8217_v19 = vld [vmem:[#allocation35_spill] sm:$0xff]  ;;  %v8220_v3 = vld [vmem:[#allocation46_spill] sm:$0xff] }
 0x21b   : > { %v2720_v31 = vsel %vm2569_vm1, %v8075_v9, %v2422_v2  ;;  %v1828_v54 = vsel %vm1677_vm13, %v8217_v19, %v1530_v48  ;;  %vm2869_vm9 = vcmp.eq.s32.totalorder %v8214_v55, %v8218_v63  ;;  %vm781_vm11 = vcmp.eq.s32.totalorder %v8214_v55, %v8147_v14  ;;  %v8219_v2 = vld [vmem:[#allocation37_spill] sm:$0xff] }
 0x21c   : > { %v3018_v7 = vsel %vm2867_vm3, %v8216_v16, %v2720_v31  ;;  %v2126_v9 = vsel %vm1975_vm0, %v8219_v2, %v1828_v54  ;;  %v931_v41 = vsel %vm781_vm11, %v8220_v3, 0.0  ;;  %vm1078_vm14 = vcmp.eq.s32.totalorder %v8214_v55, %v8197_v30 }
 0x21d   : > { %3106 = vmatprep.subr.mxu0 %v3018_v7  ;;  %vm1376_vm7 = vcmp.eq.s32.totalorder %v8214_v55, %v8137_v36  ;;  %v2424_v31 = vsel %vm2273_vm4, %v8208_v51, %v2126_v9  ;;  %v1229_v48 = vsel %vm1078_vm14, %v8209_v35, %v931_v41  ;;  %vm1674_vm8 = vcmp.eq.s32.totalorder %v8214_v55, %v8198_v39  ;;  %v8221_v51 = vld [vmem:[#allocation52_spill] sm:$0xff] }
 0x21e   : > { %vm1972_vm12 = vcmp.eq.s32.totalorder %v8214_v55, %v8210_v6  ;;  %v2722_v7 = vsel %vm2571_vm15, %v8211_v34, %v2424_v31  ;;  %v1527_v54 = vsel %vm1376_vm7, %v8212_v58, %v1229_v48  ;;  %vm2270_vm2 = vcmp.eq.s32.totalorder %v8214_v55, %v8199_v0 }
 0x21f   : > { %vm2568_vm1 = vcmp.eq.s32.totalorder %v8214_v55, %v8188_v1  ;;  %v3020_v9 = vsel %vm2869_vm9, %v8189_v23, %v2722_v7  ;;  %v1825_v41 = vsel %vm1674_vm8, %v8221_v51, %v1527_v54  ;;  %vm2866_vm3 = vcmp.eq.s32.totalorder %v8214_v55, %v8201_v38  ;;  %v8222_v51 = vld [vmem:[#allocation65_spill] sm:$0xff] }
 0x220   : > { %vm783_vm5 = vcmp.eq.s32.totalorder %v8214_v55, %v4160_v56  ;;  %3177 = vmatprep.subr.mxu1 %v3020_v9  ;;  %v2123_v31 = vsel %vm1972_vm12, %v8202_v13, %v1825_v41  ;;  %vm1080_vm6 = vcmp.eq.s32.totalorder %v8214_v55, %v8204_v17  ;;  %vm1378_vm10 = vcmp.eq.s32.totalorder %v8214_v55, %v8028_v50 }
 0x221   : > { %v933_v48 = vsel %vm783_vm5, %v8203_v29, 0.0  ;;  %v2421_v7 = vsel %vm2270_vm2, %v8149_v5, %v2123_v31  ;;  %vm1676_vm13 = vcmp.eq.s32.totalorder %v8214_v55, %v8222_v51  ;;  %vm1974_vm0 = vcmp.eq.s32.totalorder %v8214_v55, %v8193_v21  ;;  %v8223_v51 = vld [vmem:[#allocation70_spill] sm:$0xff] }
 0x222   : > { %v1231_v54 = vsel %vm1080_vm6, %v8178_v40, %v933_v48  ;;  %v2719_v9 = vsel %vm2568_vm1, %v8150_v52, %v2421_v7  ;;  %vm2272_vm4 = vcmp.eq.s32.totalorder %v8214_v55, %v8195_v57  ;;  %vm2570_vm15 = vcmp.eq.s32.totalorder %v8214_v55, %v8196_v49 }
 0x223   : > { %v1529_v41 = vsel %vm1378_vm10, %v8194_v53, %v1231_v54  ;;  %v3017_v31 = vsel %vm2866_vm3, %v4156_v42, %v2719_v9  ;;  %vm2868_vm9 = vcmp.eq.s32.totalorder %v8214_v55, %v8143_v62  ;;  %vm778_vm11 = vcmp.eq.s32.totalorder %v8223_v51, %v3941_v24 }
 0x224   : > { %v1827_v48 = vsel %vm1676_vm13, %v8170_v44, %v1529_v41  ;;  %3107 = vmatpush2.msra.mxu0 %v3017_v31  ;;  %v928_v54 = vsel %vm778_vm11, %v8185_v20, 0.0  ;;  %vm1075_vm14 = vcmp.eq.s32.totalorder %v8223_v51, %v3944_v25  ;;  %vm1373_vm7 = vcmp.eq.s32.totalorder %v8223_v51, %v3947_v26 }
 0x225   : > { %v2125_v7 = vsel %vm1974_vm0, %v4212_v33, %v1827_v48  ;;  %v1226_v41 = vsel %vm1075_vm14, %v8133_v10, %v928_v54  ;;  %vm1671_vm8 = vcmp.eq.s32.totalorder %v8223_v51, %v3950_v27  ;;  %vm1969_vm12 = vcmp.eq.s32.totalorder %v8223_v51, %v8162_v4 }
 0x226   : > { %v2423_v9 = vsel %vm2272_vm4, %v4223_v15, %v2125_v7  ;;  %v1524_v31 = vsel %vm1373_vm7, %v8152_v61, %v1226_v41  ;;  %vm2267_vm2 = vcmp.eq.s32.totalorder %v8223_v51, %v8093_v18  ;;  %vm2565_vm1 = vcmp.eq.s32.totalorder %v8223_v51, %v8173_v45  ;;  %v8224_v41 = vld [vmem:[#allocation32_spill] sm:$0xff] }
 0x227   : > { %v2721_v55 = vsel %vm2570_vm15, %v8122_v8, %v2423_v9  ;;  %v1822_v7 = vsel %vm1671_vm8, %v8134_v47, %v1524_v31  ;;  %vm2863_vm3 = vcmp.eq.s32.totalorder %v8223_v51, %v4006_v12  ;;  %vm780_vm5 = vcmp.eq.s32.totalorder %v8223_v51, %v8153_v59  ;;  %v8226_v31 = vld [vmem:[#allocation23_spill] sm:$0xff] }
 0x228   : > { %v3019_v48 = vsel %vm2868_vm9, %v8123_v60, %v2721_v55  ;;  %v2120_v54 = vsel %vm1969_vm12, %v8135_v22, %v1822_v7  ;;  %v930_v9 = vsel %vm780_vm5, %v8164_v11, 0.0  ;;  %vm1077_vm6 = vcmp.eq.s32.totalorder %v8223_v51, %v8114_v28  ;;  %v8225_v55 = vld [vmem:[#allocation24_spill] sm:$0xff]  ;;  %v8228_v22 = vld [vmem:[#allocation33_spill] sm:$0xff] }
 0x229   : > { %3178 = vmatpush2.msra.mxu1 %v3019_v48  ;;  %vm1375_vm10 = vcmp.eq.s32.totalorder %v8223_v51, %v8224_v41  ;;  %v2418_v61 = vsel %vm2267_vm2, %v8225_v55, %v2120_v54  ;;  %v1228_v47 = vsel %vm1077_vm6, %v8226_v31, %v930_v9  ;;  %vm1673_vm13 = vcmp.eq.s32.totalorder %v8223_v51, %v4012_v43  ;;  %v8227_v48 = vld [vmem:[#allocation28_spill] sm:$0xff] }
 0x22a   : > { %vm1971_vm0 = vcmp.eq.s32.totalorder %v8223_v51, %v8155_v46  ;;  %v2716_v7 = vsel %vm2565_vm1, %v8227_v48, %v2418_v61  ;;  %v1526_v11 = vsel %vm1375_vm10, %v8228_v22, %v1228_v47  ;;  %vm2269_vm4 = vcmp.eq.s32.totalorder %v8223_v51, %v8145_v37 }
 0x22b   : > { %vm2567_vm15 = vcmp.eq.s32.totalorder %v8223_v51, %v8156_v32  ;;  %v3014_v54 = vsel %vm2863_vm3, %v8216_v16, %v2716_v7  ;;  %v1824_v9 = vsel %vm1673_vm13, %v8217_v19, %v1526_v11  ;;  %vm2865_vm9 = vcmp.eq.s32.totalorder %v8223_v51, %v8218_v63  ;;  %v8229_v7 = vld [vmem:[#allocation39_spill] sm:$0xff] }
 0x22c   : > { %vm777_vm11 = vcmp.eq.s32.totalorder %v8223_v51, %v8147_v14  ;;  %3108 = vmatprep.subr.mxu0 %v3014_v54  ;;  %v2122_v61 = vsel %vm1971_vm0, %v8219_v2, %v1824_v9  ;;  %vm1074_vm14 = vcmp.eq.s32.totalorder %v8223_v51, %v8197_v30  ;;  %vm1372_vm7 = vcmp.eq.s32.totalorder %v8223_v51, %v8137_v36 }
 0x22d   : > { %v927_v47 = vsel %vm777_vm11, %v8220_v3, 0.0  ;;  %v2420_v16 = vsel %vm2269_vm4, %v8229_v7, %v2122_v61  ;;  %vm1670_vm8 = vcmp.eq.s32.totalorder %v8223_v51, %v8198_v39  ;;  %vm1968_vm12 = vcmp.eq.s32.totalorder %v8223_v51, %v8210_v6  ;;  %v8230_v7 = vld [vmem:[#allocation52_spill] sm:$0xff] }
 0x22e   : > { %v1225_v11 = vsel %vm1074_vm14, %v8209_v35, %v927_v47  ;;  %v2718_v54 = vsel %vm2567_vm15, %v8211_v34, %v2420_v16  ;;  %vm2266_vm2 = vcmp.eq.s32.totalorder %v8223_v51, %v8199_v0  ;;  %vm2564_vm1 = vcmp.eq.s32.totalorder %v8223_v51, %v8188_v1 }
 0x22f   : > { %v1523_v9 = vsel %vm1372_vm7, %v8212_v58, %v1225_v11  ;;  %v3016_v61 = vsel %vm2865_vm9, %v8189_v23, %v2718_v54  ;;  %vm2862_vm3 = vcmp.eq.s32.totalorder %v8223_v51, %v8201_v38  ;;  %vm779_vm5 = vcmp.eq.s32.totalorder %v8223_v51, %v4160_v56 }
 0x230   : > { %v1821_v47 = vsel %vm1670_vm8, %v8230_v7, %v1523_v9  ;;  %3179 = vmatprep.subr.mxu1 %v3016_v61  ;;  %v929_v11 = vsel %vm779_vm5, %v8203_v29, 0.0  ;;  %vm1076_vm6 = vcmp.eq.s32.totalorder %v8223_v51, %v8204_v17  ;;  %vm1374_vm10 = vcmp.eq.s32.totalorder %v8223_v51, %v8028_v50  ;;  %v8231_v7 = vld [vmem:[#allocation65_spill] sm:$0xff] }
 0x231   : > { %v2119_v16 = vsel %vm1968_vm12, %v8202_v13, %v1821_v47  ;;  %v1227_v9 = vsel %vm1076_vm6, %v8178_v40, %v929_v11  ;;  %vm1672_vm13 = vcmp.eq.s32.totalorder %v8223_v51, %v8231_v7  ;;  %vm1970_vm0 = vcmp.eq.s32.totalorder %v8223_v51, %v8193_v21  ;;  %v8232_v7 = vld [vmem:[#allocation16_spill] sm:$0xff] }
 0x232   : > { %v2417_v54 = vsel %vm2266_vm2, %v8149_v5, %v2119_v16  ;;  %v1525_v47 = vsel %vm1374_vm10, %v8194_v53, %v1227_v9  ;;  %vm2268_vm4 = vcmp.eq.s32.totalorder %v8223_v51, %v8195_v57  ;;  %vm2566_vm15 = vcmp.eq.s32.totalorder %v8223_v51, %v8196_v49 }
 0x233   : > { %v2715_v61 = vsel %vm2564_vm1, %v8150_v52, %v2417_v54  ;;  %v1823_v11 = vsel %vm1672_vm13, %v8170_v44, %v1525_v47  ;;  %vm2864_vm9 = vcmp.eq.s32.totalorder %v8223_v51, %v8143_v62  ;;  %v6936_v40 = vadd.s32 168, %v8232_v7 }
 0x234   : > { %v3013_v16 = vsel %vm2862_vm3, %v4156_v42, %v2715_v61  ;;  %v2121_v54 = vsel %vm1970_vm0, %v4212_v33, %v1823_v11  ;;  %v6940_v9 = vadd.s32 160, %v8232_v7  ;;  %v6943_v57 = vadd.s32 152, %v8232_v7 }
 0x235   : > { %3109 = vmatpush2.msra.mxu0 %v3013_v16  ;;  %v6946_v49 = vadd.s32 144, %v8232_v7  ;;  %v2419_v61 = vsel %vm2268_vm4, %v4223_v15, %v2121_v54  ;;  %vm774_vm11 = vcmp.eq.s32.totalorder %v6936_v40, %v3941_v24  ;;  %vm1071_vm14 = vcmp.eq.s32.totalorder %v6936_v40, %v3944_v25  ;;  %v8235_v54 = vld [vmem:[#allocation19_spill] sm:$0xff]  ;;  %v8237_v7 = vld [vmem:[#allocation22_spill] sm:$0xff] }
 0x236   : > { %8233 = vst [vmem:[#allocation72_spill] sm:$0xff] %v6943_v57  ;;  %vm1369_vm7 = vcmp.eq.s32.totalorder %v6936_v40, %v3947_v26  ;;  %v2717_v51 = vsel %vm2566_vm15, %v8122_v8, %v2419_v61  ;;  %v924_v47 = vsel %vm774_vm11, %v8185_v20, 0.0  ;;  %vm1667_vm8 = vcmp.eq.s32.totalorder %v6936_v40, %v3950_v27 }
 0x237   : > { %8234 = vst [vmem:[#allocation18_spill] sm:$0xff] %v6946_v49  ;;  %vm1965_vm12 = vcmp.eq.s32.totalorder %v6936_v40, %v8162_v4  ;;  %v3015_v16 = vsel %vm2864_vm9, %v8123_v60, %v2717_v51  ;;  %v1222_v11 = vsel %vm1071_vm14, %v8133_v10, %v924_v47  ;;  %vm2263_vm2 = vcmp.eq.s32.totalorder %v6936_v40, %v8093_v18  ;;  %v8236_v51 = vld [vmem:[#allocation20_spill] sm:$0xff] }
 0x238   : > { %vm2561_vm1 = vcmp.eq.s32.totalorder %v6936_v40, %v8173_v45  ;;  %3180 = vmatpush2.msra.mxu1 %v3015_v16  ;;  %v1520_v61 = vsel %vm1369_vm7, %v8235_v54, %v1222_v11  ;;  %vm2859_vm3 = vcmp.eq.s32.totalorder %v6936_v40, %v4006_v12  ;;  %vm776_vm5 = vcmp.eq.s32.totalorder %v6936_v40, %v8153_v59  ;;  %v8238_v16 = vld [vmem:[#allocation21_spill] sm:$0xff] }
 0x239   : > { %vm1073_vm6 = vcmp.eq.s32.totalorder %v6936_v40, %v8114_v28  ;;  %v1818_v47 = vsel %vm1667_vm8, %v8236_v51, %v1520_v61  ;;  %v926_v49 = vsel %vm776_vm5, %v8237_v7, 0.0  ;;  %vm1371_vm10 = vcmp.eq.s32.totalorder %v6936_v40, %v8224_v41 }
 0x23a   : > { %vm1669_vm13 = vcmp.eq.s32.totalorder %v6936_v40, %v4012_v43  ;;  %v2116_v11 = vsel %vm1965_vm12, %v8238_v16, %v1818_v47  ;;  %v1224_v57 = vsel %vm1073_vm6, %v8226_v31, %v926_v49  ;;  %vm1967_vm0 = vcmp.eq.s32.totalorder %v6936_v40, %v8155_v46 }
 0x23b   : > { %vm2265_vm4 = vcmp.eq.s32.totalorder %v6936_v40, %v8145_v37  ;;  %v2414_v61 = vsel %vm2263_vm2, %v8225_v55, %v2116_v11  ;;  %v1522_v28 = vsel %vm1371_vm10, %v8228_v22, %v1224_v57  ;;  %vm2563_vm15 = vcmp.eq.s32.totalorder %v6936_v40, %v8156_v32  ;;  %v8239_v57 = vld [vmem:[#allocation29_spill] sm:$0xff] }
 0x23c   : > { %vm2861_vm9 = vcmp.eq.s32.totalorder %v6936_v40, %v8218_v63  ;;  %v2712_v49 = vsel %vm2561_vm1, %v8227_v48, %v2414_v61  ;;  %v1820_v47 = vsel %vm1669_vm13, %v8217_v19, %v1522_v28  ;;  %vm773_vm11 = vcmp.eq.s32.totalorder %v6936_v40, %v8147_v14  ;;  %v8240_v28 = vld [vmem:[#allocation39_spill] sm:$0xff] }
 0x23d   : > { %vm1070_vm14 = vcmp.eq.s32.totalorder %v6936_v40, %v8197_v30  ;;  %v3010_v11 = vsel %vm2859_vm3, %v8239_v57, %v2712_v49  ;;  %v2118_v32 = vsel %vm1967_vm0, %v8219_v2, %v1820_v47  ;;  %v923_v37 = vsel %vm773_vm11, %v8220_v3, 0.0 }
 0x23e   : > { %vm1368_vm7 = vcmp.eq.s32.totalorder %v6936_v40, %v8137_v36  ;;  %3110 = vmatprep.subr.mxu0 %v3010_v11  ;;  %v2416_v61 = vsel %vm2265_vm4, %v8240_v28, %v2118_v32  ;;  %v1221_v14 = vsel %vm1070_vm14, %v8209_v35, %v923_v37  ;;  %vm1666_vm8 = vcmp.eq.s32.totalorder %v6936_v40, %v8198_v39  ;;  %v8241_v32 = vld [vmem:[#allocation52_spill] sm:$0xff] }
 0x23f   : > { %vm1964_vm12 = vcmp.eq.s32.totalorder %v6936_v40, %v8210_v6  ;;  %v2714_v49 = vsel %vm2563_vm15, %v8211_v34, %v2416_v61  ;;  %v1519_v47 = vsel %vm1368_vm7, %v8212_v58, %v1221_v14  ;;  %vm2262_vm2 = vcmp.eq.s32.totalorder %v6936_v40, %v8199_v0 }
 0x240   : > { %vm2560_vm1 = vcmp.eq.s32.totalorder %v6936_v40, %v8188_v1  ;;  %v3012_v37 = vsel %vm2861_vm9, %v8189_v23, %v2714_v49  ;;  %v1817_v11 = vsel %vm1666_vm8, %v8241_v32, %v1519_v47  ;;  %vm2858_vm3 = vcmp.eq.s32.totalorder %v6936_v40, %v8201_v38  ;;  %v8242_v47 = vld [vmem:[#allocation62_spill] sm:$0xff]  ;;  %v8243_v23 = vld [vmem:[#allocation65_spill] sm:$0xff] }
 0x241   : > { %vm775_vm5 = vcmp.eq.s32.totalorder %v6936_v40, %v4160_v56  ;;  %3181 = vmatprep.subr.mxu1 %v3012_v37  ;;  %v2115_v14 = vsel %vm1964_vm12, %v8202_v13, %v1817_v11  ;;  %vm1072_vm6 = vcmp.eq.s32.totalorder %v6936_v40, %v8204_v17  ;;  %vm1370_vm10 = vcmp.eq.s32.totalorder %v6936_v40, %v8028_v50  ;;  %v8245_v17 = vld [vmem:[#allocation69_spill] sm:$0xff] }
 0x242   : > { %v925_v61 = vsel %vm775_vm5, %v8203_v29, 0.0  ;;  %v2413_v49 = vsel %vm2262_vm2, %v8149_v5, %v2115_v14  ;;  %vm1668_vm13 = vcmp.eq.s32.totalorder %v6936_v40, %v8243_v23  ;;  %vm1966_vm0 = vcmp.eq.s32.totalorder %v6936_v40, %v8193_v21  ;;  %v8244_v29 = vld [vmem:[#allocation68_spill] sm:$0xff] }
 0x243   : > { %v1223_v32 = vsel %vm1072_vm6, %v8242_v47, %v925_v61  ;;  %v2711_v37 = vsel %vm2560_vm1, %v8150_v52, %v2413_v49  ;;  %vm2264_vm4 = vcmp.eq.s32.totalorder %v6936_v40, %v8244_v29  ;;  %vm2562_vm15 = vcmp.eq.s32.totalorder %v6936_v40, %v8245_v17 }
 0x244   : > { %v1521_v11 = vsel %vm1370_vm10, %v8194_v53, %v1223_v32  ;;  %v3009_v14 = vsel %vm2858_vm3, %v4156_v42, %v2711_v37  ;;  %vm2860_vm9 = vcmp.eq.s32.totalorder %v6936_v40, %v8143_v62  ;;  %vm770_vm11 = vcmp.eq.s32.totalorder %v6940_v9, %v3941_v24 }
 0x245   : > { %v1819_v61 = vsel %vm1668_vm13, %v8170_v44, %v1521_v11  ;;  %3111 = vmatpush2.msra.mxu0 %v3009_v14  ;;  %v920_v32 = vsel %vm770_vm11, %v8185_v20, 0.0  ;;  %vm1067_vm14 = vcmp.eq.s32.totalorder %v6940_v9, %v3944_v25  ;;  %vm1365_vm7 = vcmp.eq.s32.totalorder %v6940_v9, %v3947_v26 }
 0x246   : > { %v2117_v49 = vsel %vm1966_vm0, %v4212_v33, %v1819_v61  ;;  %v1218_v11 = vsel %vm1067_vm14, %v8133_v10, %v920_v32  ;;  %vm1663_vm8 = vcmp.eq.s32.totalorder %v6940_v9, %v3950_v27  ;;  %vm1961_vm12 = vcmp.eq.s32.totalorder %v6940_v9, %v8162_v4 }
 0x247   : > { %v2415_v37 = vsel %vm2264_vm4, %v4223_v15, %v2117_v49  ;;  %v1516_v14 = vsel %vm1365_vm7, %v8235_v54, %v1218_v11  ;;  %vm2259_vm2 = vcmp.eq.s32.totalorder %v6940_v9, %v8093_v18  ;;  %vm2557_vm1 = vcmp.eq.s32.totalorder %v6940_v9, %v8173_v45  ;;  %v8246_v11 = vld [vmem:[#allocation31_spill] sm:$0xff] }
 0x248   : > { %v2713_v40 = vsel %vm2562_vm15, %v8122_v8, %v2415_v37  ;;  %v1814_v49 = vsel %vm1663_vm8, %v8236_v51, %v1516_v14  ;;  %vm2855_vm3 = vcmp.eq.s32.totalorder %v6940_v9, %v4006_v12  ;;  %vm772_vm5 = vcmp.eq.s32.totalorder %v6940_v9, %v8153_v59 }
 0x249   : > { %v3011_v61 = vsel %vm2860_vm9, %v8123_v60, %v2713_v40  ;;  %v2112_v32 = vsel %vm1961_vm12, %v8238_v16, %v1814_v49  ;;  %v922_v37 = vsel %vm772_vm5, %v8237_v7, 0.0  ;;  %vm1069_vm6 = vcmp.eq.s32.totalorder %v6940_v9, %v8246_v11  ;;  %v8247_v7 = vld [vmem:[#allocation38_spill] sm:$0xff]  ;;  %v8248_v11 = vld [vmem:[#allocation40_spill] sm:$0xff] }
 0x24a   : > { %3182 = vmatpush2.msra.mxu1 %v3011_v61  ;;  %vm1367_vm10 = vcmp.eq.s32.totalorder %v6940_v9, %v8224_v41  ;;  %v2410_v40 = vsel %vm2259_vm2, %v8225_v55, %v2112_v32  ;;  %v1220_v14 = vsel %vm1069_vm6, %v8226_v31, %v922_v37  ;;  %vm1665_vm13 = vcmp.eq.s32.totalorder %v6940_v9, %v4012_v43  ;;  %v8249_v43 = vld [vmem:[#allocation45_spill] sm:$0xff] }
 0x24b   : > { %vm1963_vm0 = vcmp.eq.s32.totalorder %v6940_v9, %v8155_v46  ;;  %v2708_v61 = vsel %vm2557_vm1, %v8227_v48, %v2410_v40  ;;  %v1518_v49 = vsel %vm1367_vm10, %v8228_v22, %v1220_v14  ;;  %vm2261_vm4 = vcmp.eq.s32.totalorder %v6940_v9, %v8247_v7 }
 0x24c   : > { %vm2559_vm15 = vcmp.eq.s32.totalorder %v6940_v9, %v8248_v11  ;;  %v3006_v32 = vsel %vm2855_vm3, %v8239_v57, %v2708_v61  ;;  %v1816_v37 = vsel %vm1665_vm13, %v8217_v19, %v1518_v49  ;;  %vm2857_vm9 = vcmp.eq.s32.totalorder %v6940_v9, %v8218_v63 }
 0x24d   : > { %vm769_vm11 = vcmp.eq.s32.totalorder %v6940_v9, %v8249_v43  ;;  %3112 = vmatprep.subr.mxu0 %v3006_v32  ;;  %v2114_v40 = vsel %vm1963_vm0, %v8219_v2, %v1816_v37  ;;  %vm1066_vm14 = vcmp.eq.s32.totalorder %v6940_v9, %v8197_v30  ;;  %vm1364_vm7 = vcmp.eq.s32.totalorder %v6940_v9, %v8137_v36  ;;  %v8250_v36 = vld [vmem:[#allocation43_spill] sm:$0xff] }
 0x24e   : > { %v919_v14 = vsel %vm769_vm11, %v8220_v3, 0.0  ;;  %v2412_v61 = vsel %vm2261_vm4, %v8240_v28, %v2114_v40  ;;  %vm1662_vm8 = vcmp.eq.s32.totalorder %v6940_v9, %v8198_v39  ;;  %vm1960_vm12 = vcmp.eq.s32.totalorder %v6940_v9, %v8210_v6  ;;  %v8251_v28 = vld [vmem:[#allocation52_spill] sm:$0xff] }
 0x24f   : > { %v1217_v49 = vsel %vm1066_vm14, %v8209_v35, %v919_v14  ;;  %v2710_v32 = vsel %vm2559_vm15, %v8211_v34, %v2412_v61  ;;  %vm2258_vm2 = vcmp.eq.s32.totalorder %v6940_v9, %v8199_v0  ;;  %vm2556_vm1 = vcmp.eq.s32.totalorder %v6940_v9, %v8188_v1  ;;  %v8253_v34 = vld [vmem:[#allocation61_spill] sm:$0xff] }
 0x250   : > { %v1515_v37 = vsel %vm1364_vm7, %v8212_v58, %v1217_v49  ;;  %v3008_v40 = vsel %vm2857_vm9, %v8250_v36, %v2710_v32  ;;  %vm2854_vm3 = vcmp.eq.s32.totalorder %v6940_v9, %v8201_v38  ;;  %vm771_vm5 = vcmp.eq.s32.totalorder %v6940_v9, %v4160_v56  ;;  %v8252_v49 = vld [vmem:[#allocation60_spill] sm:$0xff] }
 0x251   : > { %v1813_v14 = vsel %vm1662_vm8, %v8251_v28, %v1515_v37  ;;  %3183 = vmatprep.subr.mxu1 %v3008_v40  ;;  %v921_v58 = vsel %vm771_vm5, %v8252_v49, 0.0  ;;  %vm1068_vm6 = vcmp.eq.s32.totalorder %v6940_v9, %v8253_v34  ;;  %vm1366_vm10 = vcmp.eq.s32.totalorder %v6940_v9, %v8028_v50 }
 0x252   : > { %v2111_v61 = vsel %vm1960_vm12, %v8202_v13, %v1813_v14  ;;  %v1219_v37 = vsel %vm1068_vm6, %v8242_v47, %v921_v58  ;;  %vm1664_vm13 = vcmp.eq.s32.totalorder %v6940_v9, %v8243_v23  ;;  %vm1962_vm0 = vcmp.eq.s32.totalorder %v6940_v9, %v8193_v21  ;;  %v8254_v23 = vld [vmem:[#allocation72_spill] sm:$0xff] }
 0x253   : > { %v2409_v32 = vsel %vm2258_vm2, %v8149_v5, %v2111_v61  ;;  %v1517_v14 = vsel %vm1366_vm10, %v8194_v53, %v1219_v37  ;;  %vm2260_vm4 = vcmp.eq.s32.totalorder %v6940_v9, %v8244_v29  ;;  %vm2558_vm15 = vcmp.eq.s32.totalorder %v6940_v9, %v8245_v17 }
 0x254   : > { %v2707_v40 = vsel %vm2556_vm1, %v8150_v52, %v2409_v32  ;;  %v1815_v58 = vsel %vm1664_vm13, %v8170_v44, %v1517_v14  ;;  %vm2856_vm9 = vcmp.eq.s32.totalorder %v6940_v9, %v8143_v62  ;;  %vm766_vm11 = vcmp.eq.s32.totalorder %v8254_v23, %v3941_v24 }
 0x255   : > { %v3005_v61 = vsel %vm2854_vm3, %v4156_v42, %v2707_v40  ;;  %v2113_v32 = vsel %vm1962_vm0, %v4212_v33, %v1815_v58  ;;  %v916_v37 = vsel %vm766_vm11, %v8185_v20, 0.0  ;;  %vm1063_vm14 = vcmp.eq.s32.totalorder %v8254_v23, %v3944_v25 }
 0x256   : > { %3113 = vmatpush2.msra.mxu0 %v3005_v61  ;;  %vm1361_vm7 = vcmp.eq.s32.totalorder %v8254_v23, %v3947_v26  ;;  %v2411_v40 = vsel %vm2260_vm4, %v4223_v15, %v2113_v32  ;;  %v1214_v14 = vsel %vm1063_vm14, %v8133_v10, %v916_v37  ;;  %vm1659_vm8 = vcmp.eq.s32.totalorder %v8254_v23, %v3950_v27 }
 0x257   : > { %vm1957_vm12 = vcmp.eq.s32.totalorder %v8254_v23, %v8162_v4  ;;  %v2709_v9 = vsel %vm2558_vm15, %v8122_v8, %v2411_v40  ;;  %v1512_v61 = vsel %vm1361_vm7, %v8235_v54, %v1214_v14  ;;  %vm2255_vm2 = vcmp.eq.s32.totalorder %v8254_v23, %v8093_v18  ;;  %v8255_v40 = vld [vmem:[#allocation22_spill] sm:$0xff]  ;;  %v8256_v54 = vld [vmem:[#allocation31_spill] sm:$0xff] }
 0x258   : > { %vm2553_vm1 = vcmp.eq.s32.totalorder %v8254_v23, %v8173_v45  ;;  %v3007_v58 = vsel %vm2856_vm9, %v8123_v60, %v2709_v9  ;;  %v1810_v32 = vsel %vm1659_vm8, %v8236_v51, %v1512_v61  ;;  %vm2851_vm3 = vcmp.eq.s32.totalorder %v8254_v23, %v4006_v12  ;;  %v8257_v51 = vld [vmem:[#allocation34_spill] sm:$0xff] }
 0x259   : > { %vm768_vm5 = vcmp.eq.s32.totalorder %v8254_v23, %v8153_v59  ;;  %3184 = vmatpush2.msra.mxu1 %v3007_v58  ;;  %v2108_v37 = vsel %vm1957_vm12, %v8238_v16, %v1810_v32  ;;  %vm1065_vm6 = vcmp.eq.s32.totalorder %v8254_v23, %v8256_v54  ;;  %vm1363_vm10 = vcmp.eq.s32.totalorder %v8254_v23, %v8224_v41 }
 0x25a   : > { %v918_v14 = vsel %vm768_vm5, %v8255_v40, 0.0  ;;  %v2406_v9 = vsel %vm2255_vm2, %v8225_v55, %v2108_v37  ;;  %vm1661_vm13 = vcmp.eq.s32.totalorder %v8254_v23, %v8257_v51  ;;  %vm1959_vm0 = vcmp.eq.s32.totalorder %v8254_v23, %v8155_v46 }
 0x25b   : > { %v1216_v61 = vsel %vm1065_vm6, %v8226_v31, %v918_v14  ;;  %v2704_v58 = vsel %vm2553_vm1, %v8227_v48, %v2406_v9  ;;  %vm2257_vm4 = vcmp.eq.s32.totalorder %v8254_v23, %v8247_v7  ;;  %vm2555_vm15 = vcmp.eq.s32.totalorder %v8254_v23, %v8248_v11  ;;  %v8258_v7 = vld [vmem:[#allocation49_spill] sm:$0xff] }
 0x25c   : > { %v1514_v32 = vsel %vm1363_vm10, %v8228_v22, %v1216_v61  ;;  %v3002_v37 = vsel %vm2851_vm3, %v8239_v57, %v2704_v58  ;;  %vm2853_vm9 = vcmp.eq.s32.totalorder %v8254_v23, %v8218_v63  ;;  %vm765_vm11 = vcmp.eq.s32.totalorder %v8254_v23, %v8249_v43  ;;  %v8259_v58 = vld [vmem:[#allocation39_spill] sm:$0xff] }
 0x25d   : > { %v1812_v14 = vsel %vm1661_vm13, %v8217_v19, %v1514_v32  ;;  %3114 = vmatprep.subr.mxu0 %v3002_v37  ;;  %v915_v61 = vsel %vm765_vm11, %v8220_v3, 0.0  ;;  %vm1062_vm14 = vcmp.eq.s32.totalorder %v8254_v23, %v8197_v30  ;;  %vm1360_vm7 = vcmp.eq.s32.totalorder %v8254_v23, %v8258_v7  ;;  %v8260_v37 = vld [vmem:[#allocation41_spill] sm:$0xff] }
 0x25e   : > { %v2110_v9 = vsel %vm1959_vm0, %v8219_v2, %v1812_v14  ;;  %v1213_v32 = vsel %vm1062_vm14, %v8209_v35, %v915_v61  ;;  %vm1658_vm8 = vcmp.eq.s32.totalorder %v8254_v23, %v8198_v39  ;;  %vm1956_vm12 = vcmp.eq.s32.totalorder %v8254_v23, %v8210_v6  ;;  %v8261_v2 = vld [vmem:[#allocation50_spill] sm:$0xff] }
 0x25f   : > { %v2408_v57 = vsel %vm2257_vm4, %v8259_v58, %v2110_v9  ;;  %v1511_v3 = vsel %vm1360_vm7, %v8261_v2, %v1213_v32  ;;  %vm2254_vm2 = vcmp.eq.s32.totalorder %v8254_v23, %v8199_v0  ;;  %vm2552_vm1 = vcmp.eq.s32.totalorder %v8254_v23, %v8188_v1 }
 0x260   : > { %v2706_v14 = vsel %vm2555_vm15, %v8260_v37, %v2408_v57  ;;  %v1809_v61 = vsel %vm1658_vm8, %v8251_v28, %v1511_v3  ;;  %vm2850_vm3 = vcmp.eq.s32.totalorder %v8254_v23, %v8201_v38  ;;  %vm767_vm5 = vcmp.eq.s32.totalorder %v8254_v23, %v4160_v56  ;;  %v8262_v28 = vld [vmem:[#allocation65_spill] sm:$0xff] }
 0x261   : > { %v3004_v9 = vsel %vm2853_vm9, %v8250_v36, %v2706_v14  ;;  %v2107_v57 = vsel %vm1956_vm12, %v8202_v13, %v1809_v61  ;;  %v917_v32 = vsel %vm767_vm5, %v8252_v49, 0.0  ;;  %vm1064_vm6 = vcmp.eq.s32.totalorder %v8254_v23, %v8253_v34 }
 0x262   : > { %3185 = vmatprep.subr.mxu1 %v3004_v9  ;;  %vm1362_vm10 = vcmp.eq.s32.totalorder %v8254_v23, %v8028_v50  ;;  %v2405_v14 = vsel %vm2254_vm2, %v8149_v5, %v2107_v57  ;;  %v1215_v3 = vsel %vm1064_vm6, %v8242_v47, %v917_v32  ;;  %vm1660_vm13 = vcmp.eq.s32.totalorder %v8254_v23, %v8262_v28  ;;  %v8263_v28 = vld [vmem:[#allocation18_spill] sm:$0xff] }
 0x263   : > { %vm1958_vm0 = vcmp.eq.s32.totalorder %v8254_v23, %v8193_v21  ;;  %v2703_v9 = vsel %vm2552_vm1, %v8150_v52, %v2405_v14  ;;  %v1513_v61 = vsel %vm1362_vm10, %v8194_v53, %v1215_v3  ;;  %vm2256_vm4 = vcmp.eq.s32.totalorder %v8254_v23, %v8244_v29 }
 0x264   : > { %vm2554_vm15 = vcmp.eq.s32.totalorder %v8254_v23, %v8245_v17  ;;  %v3001_v57 = vsel %vm2850_vm3, %v4156_v42, %v2703_v9  ;;  %v1811_v32 = vsel %vm1660_vm13, %v8170_v44, %v1513_v61  ;;  %vm2852_vm9 = vcmp.eq.s32.totalorder %v8254_v23, %v8143_v62 }
 0x265   : > { %vm762_vm11 = vcmp.eq.s32.totalorder %v8263_v28, %v3941_v24  ;;  %3115 = vmatpush2.msra.mxu0 %v3001_v57  ;;  %v2109_v14 = vsel %vm1958_vm0, %v4212_v33, %v1811_v32  ;;  %vm1059_vm14 = vcmp.eq.s32.totalorder %v8263_v28, %v3944_v25  ;;  %vm1357_vm7 = vcmp.eq.s32.totalorder %v8263_v28, %v3947_v26  ;;  %v8264_v57 = vld [vmem:[#allocation19_spill] sm:$0xff] }
 0x266   : > { %v912_v3 = vsel %vm762_vm11, %v8185_v20, 0.0  ;;  %v2407_v9 = vsel %vm2256_vm4, %v4223_v15, %v2109_v14  ;;  %vm1655_vm8 = vcmp.eq.s32.totalorder %v8263_v28, %v3950_v27  ;;  %vm1953_vm12 = vcmp.eq.s32.totalorder %v8263_v28, %v8162_v4  ;;  %v8265_v20 = vld [vmem:[#allocation20_spill] sm:$0xff] }
 0x267   : > { %v1210_v61 = vsel %vm1059_vm14, %v8133_v10, %v912_v3  ;;  %v2705_v23 = vsel %vm2554_vm15, %v8122_v8, %v2407_v9  ;;  %vm2251_vm2 = vcmp.eq.s32.totalorder %v8263_v28, %v8093_v18  ;;  %vm2549_vm1 = vcmp.eq.s32.totalorder %v8263_v28, %v8173_v45 }
 0x268   : > { %v1508_v32 = vsel %vm1357_vm7, %v8264_v57, %v1210_v61  ;;  %v3003_v14 = vsel %vm2852_vm9, %v8123_v60, %v2705_v23  ;;  %vm2847_vm3 = vcmp.eq.s32.totalorder %v8263_v28, %v4006_v12  ;;  %vm764_vm5 = vcmp.eq.s32.totalorder %v8263_v28, %v8153_v59 }
 0x269   : > { %v1806_v3 = vsel %vm1655_vm8, %v8265_v20, %v1508_v32  ;;  %3186 = vmatpush2.msra.mxu1 %v3003_v14  ;;  %v914_v61 = vsel %vm764_vm5, %v8255_v40, 0.0  ;;  %vm1061_vm6 = vcmp.eq.s32.totalorder %v8263_v28, %v8256_v54  ;;  %vm1359_vm10 = vcmp.eq.s32.totalorder %v8263_v28, %v8224_v41  ;;  %v8267_v41 = vld [vmem:[#allocation29_spill] sm:$0xff] }
 0x26a   : > { %v2104_v9 = vsel %vm1953_vm12, %v8238_v16, %v1806_v3  ;;  %v1212_v32 = vsel %vm1061_vm6, %v8226_v31, %v914_v61  ;;  %vm1657_vm13 = vcmp.eq.s32.totalorder %v8263_v28, %v8257_v51  ;;  %vm1955_vm0 = vcmp.eq.s32.totalorder %v8263_v28, %v8155_v46  ;;  %v8266_v16 = vld [vmem:[#allocation38_spill] sm:$0xff] }
 0x26b   : > { %v2402_v23 = vsel %vm2251_vm2, %v8225_v55, %v2104_v9  ;;  %v1510_v3 = vsel %vm1359_vm10, %v8228_v22, %v1212_v32  ;;  %vm2253_vm4 = vcmp.eq.s32.totalorder %v8263_v28, %v8266_v16  ;;  %vm2551_vm15 = vcmp.eq.s32.totalorder %v8263_v28, %v8248_v11  ;;  %v8269_v32 = vld [vmem:[#allocation46_spill] sm:$0xff] }
 0x26c   : > { %v2700_v14 = vsel %vm2549_vm1, %v8227_v48, %v2402_v23  ;;  %v1808_v61 = vsel %vm1657_vm13, %v8217_v19, %v1510_v3  ;;  %vm2849_vm9 = vcmp.eq.s32.totalorder %v8263_v28, %v8218_v63  ;;  %vm761_vm11 = vcmp.eq.s32.totalorder %v8263_v28, %v8249_v43  ;;  %v8268_v23 = vld [vmem:[#allocation37_spill] sm:$0xff] }
 0x26d   : > { %v2998_v9 = vsel %vm2847_vm3, %v8267_v41, %v2700_v14  ;;  %v2106_v48 = vsel %vm1955_vm0, %v8268_v23, %v1808_v61  ;;  %v911_v22 = vsel %vm761_vm11, %v8269_v32, 0.0  ;;  %vm1058_vm14 = vcmp.eq.s32.totalorder %v8263_v28, %v8197_v30 }
 0x26e   : > { %3116 = vmatprep.subr.mxu0 %v2998_v9  ;;  %vm1356_vm7 = vcmp.eq.s32.totalorder %v8263_v28, %v8258_v7  ;;  %v2404_v14 = vsel %vm2253_vm4, %v8259_v58, %v2106_v48  ;;  %v1209_v3 = vsel %vm1058_vm14, %v8209_v35, %v911_v22  ;;  %vm1654_vm8 = vcmp.eq.s32.totalorder %v8263_v28, %v8198_v39  ;;  %v8270_v22 = vld [vmem:[#allocation52_spill] sm:$0xff] }
 0x26f   : > { %vm1952_vm12 = vcmp.eq.s32.totalorder %v8263_v28, %v8210_v6  ;;  %v2702_v9 = vsel %vm2551_vm15, %v8260_v37, %v2404_v14  ;;  %v1507_v61 = vsel %vm1356_vm7, %v8261_v2, %v1209_v3  ;;  %vm2250_vm2 = vcmp.eq.s32.totalorder %v8263_v28, %v8199_v0 }
 0x270   : > { %vm2548_vm1 = vcmp.eq.s32.totalorder %v8263_v28, %v8188_v1  ;;  %v3000_v48 = vsel %vm2849_vm9, %v8250_v36, %v2702_v9  ;;  %v1805_v35 = vsel %vm1654_vm8, %v8270_v22, %v1507_v61  ;;  %vm2846_vm3 = vcmp.eq.s32.totalorder %v8263_v28, %v8201_v38  ;;  %v8271_v22 = vld [vmem:[#allocation65_spill] sm:$0xff] }
 0x271   : > { %vm763_vm5 = vcmp.eq.s32.totalorder %v8263_v28, %v4160_v56  ;;  %3187 = vmatprep.subr.mxu1 %v3000_v48  ;;  %v2103_v14 = vsel %vm1952_vm12, %v8202_v13, %v1805_v35  ;;  %vm1060_vm6 = vcmp.eq.s32.totalorder %v8263_v28, %v8253_v34  ;;  %vm1358_vm10 = vcmp.eq.s32.totalorder %v8263_v28, %v8028_v50  ;;  %v7331_v48 = vld [vmem:[%s3713_s6] sm:$0xff] }
 0x272   : > { %v913_v3 = vsel %vm763_vm5, %v8252_v49, 0.0  ;;  %v2401_v9 = vsel %vm2250_vm2, %v8149_v5, %v2103_v14  ;;  %vm1656_vm13 = vcmp.eq.s32.totalorder %v8263_v28, %v8271_v22  ;;  %vm1954_vm0 = vcmp.eq.s32.totalorder %v8263_v28, %v8193_v21  ;;  %8272 = vst [vmem:[#allocation71_spill] sm:$0xff] %v7331_v48 }
 0x273   : > { %v1211_v61 = vsel %vm1060_vm6, %v8242_v47, %v913_v3  ;;  %v2699_v35 = vsel %vm2548_vm1, %v8150_v52, %v2401_v9  ;;  %vm2252_vm4 = vcmp.eq.s32.totalorder %v8263_v28, %v8244_v29  ;;  %vm2550_vm15 = vcmp.eq.s32.totalorder %v8263_v28, %v8245_v17  ;;  %v8273_v3 = vld [vmem:[#allocation16_spill] sm:$0xff] }
 0x274   : > { %v1509_v49 = vsel %vm1358_vm10, %v8194_v53, %v1211_v61  ;;  %v2997_v50 = vsel %vm2846_vm3, %v4156_v42, %v2699_v35  ;;  %v7342_v22 = vadd.s32 136, %v8273_v3  ;;  %vm2848_vm9 = vcmp.eq.s32.totalorder %v8263_v28, %v8143_v62  ;;  %v8274_v28 = vld [vmem:[#allocation17_spill] sm:$0xff] }
 0x275   : > { %v1807_v14 = vsel %vm1656_vm13, %v8170_v44, %v1509_v49  ;;  %3117 = vmatpush2.msra.mxu0 %v2997_v50  ;;  %v7348_v9 = vadd.s32 128, %v8273_v3  ;;  %v3056_v61 = vcombine.high %v7331_v48, %v7331_v48  ;;  %v8277_v48 = vld [vmem:[#allocation33_spill] sm:$0xff] }
 0x276   : > { %v2105_v21 = vsel %vm1954_vm0, %v4212_v33, %v1807_v14  ;;  %vm758_vm11 = vcmp.eq.s32.totalorder %v7342_v22, %v3941_v24  ;;  %vm1055_vm14 = vcmp.eq.s32.totalorder %v7342_v22, %v3944_v25  ;;  %vm1353_vm7 = vcmp.eq.s32.totalorder %v7342_v22, %v3947_v26 }
 0x277   : > { %v2403_v49 = vsel %vm2252_vm4, %v4223_v15, %v2105_v21  ;;  %v908_v35 = vsel %vm758_vm11, %v8274_v28, 0.0  ;;  %vm1651_vm8 = vcmp.eq.s32.totalorder %v7342_v22, %v3950_v27  ;;  %vm1949_vm12 = vcmp.eq.s32.totalorder %v7342_v22, %v8162_v4  ;;  %3122 = vmatprep.mubr.f32.mxu0 %v3056_v61  ;;  %3193 = vmatprep.mubr.f32.mxu1 %v3056_v61 }
 0x278   : > { %v2701_v50 = vsel %vm2550_vm15, %v8122_v8, %v2403_v49  ;;  %v1206_v14 = vsel %vm1055_vm14, %v8133_v10, %v908_v35  ;;  %vm2247_vm2 = vcmp.eq.s32.totalorder %v7342_v22, %v8093_v18  ;;  %vm2545_vm1 = vcmp.eq.s32.totalorder %v7342_v22, %v8173_v45  ;;  %v8276_v35 = vld [vmem:[#allocation21_spill] sm:$0xff] }
 0x279   : > { %v2999_v21 = vsel %vm2848_vm9, %v8123_v60, %v2701_v50  ;;  %v1504_v3 = vsel %vm1353_vm7, %v8264_v57, %v1206_v14  ;;  %vm2843_vm3 = vcmp.eq.s32.totalorder %v7342_v22, %v4006_v12  ;;  %vm760_vm5 = vcmp.eq.s32.totalorder %v7342_v22, %v8153_v59  ;;  %v8275_v50 = vld [vmem:[#allocation32_spill] sm:$0xff] }
 0x27a   : > { %3188 = vmatpush2.msra.mxu1 %v2999_v21  ;;  %vm1057_vm6 = vcmp.eq.s32.totalorder %v7342_v22, %v8256_v54  ;;  %v1802_v61 = vsel %vm1651_vm8, %v8265_v20, %v1504_v3  ;;  %v910_v49 = vsel %vm760_vm5, %v8255_v40, 0.0  ;;  %vm1355_vm10 = vcmp.eq.s32.totalorder %v7342_v22, %v8275_v50 }
 0x27b   : > { %vm1653_vm13 = vcmp.eq.s32.totalorder %v7342_v22, %v8257_v51  ;;  %v2100_v21 = vsel %vm1949_vm12, %v8276_v35, %v1802_v61  ;;  %v1208_v14 = vsel %vm1057_vm6, %v8226_v31, %v910_v49  ;;  %vm1951_vm0 = vcmp.eq.s32.totalorder %v7342_v22, %v8155_v46  ;;  %v8278_v51 = vld [vmem:[#allocation28_spill] sm:$0xff] }
 0x27c   : > { %vm2249_vm4 = vcmp.eq.s32.totalorder %v7342_v22, %v8266_v16  ;;  %v2398_v3 = vsel %vm2247_vm2, %v8225_v55, %v2100_v21  ;;  %v1506_v50 = vsel %vm1355_vm10, %v8277_v48, %v1208_v14  ;;  %vm2547_vm15 = vcmp.eq.s32.totalorder %v7342_v22, %v8248_v11 }
 0x27d   : > { %vm2845_vm9 = vcmp.eq.s32.totalorder %v7342_v22, %v8218_v63  ;;  %v2696_v61 = vsel %vm2545_vm1, %v8278_v51, %v2398_v3  ;;  %v1804_v49 = vsel %vm1653_vm13, %v8217_v19, %v1506_v50  ;;  %vm757_vm11 = vcmp.eq.s32.totalorder %v7342_v22, %v8249_v43  ;;  %v8279_v3 = vld [vmem:[#allocation48_spill] sm:$0xff] }
 0x27e   : > { %vm1054_vm14 = vcmp.eq.s32.totalorder %v7342_v22, %v8197_v30  ;;  %v2994_v21 = vsel %vm2843_vm3, %v8267_v41, %v2696_v61  ;;  %v2102_v14 = vsel %vm1951_vm0, %v8268_v23, %v1804_v49  ;;  %v907_v11 = vsel %vm757_vm11, %v8269_v32, 0.0 }
 0x27f   : > { %vm1352_vm7 = vcmp.eq.s32.totalorder %v7342_v22, %v8258_v7  ;;  %3118 = vmatprep.subr.mxu0 %v2994_v21  ;;  %v2400_v50 = vsel %vm2249_vm4, %v8259_v58, %v2102_v14  ;;  %v1205_v43 = vsel %vm1054_vm14, %v8279_v3, %v907_v11  ;;  %vm1650_vm8 = vcmp.eq.s32.totalorder %v7342_v22, %v8198_v39  ;;  %v8280_v21 = vld [vmem:[#allocation52_spill] sm:$0xff] }
 0x280   : > { %vm1948_vm12 = vcmp.eq.s32.totalorder %v7342_v22, %v8210_v6  ;;  %v2698_v61 = vsel %vm2547_vm15, %v8260_v37, %v2400_v50  ;;  %v1503_v49 = vsel %vm1352_vm7, %v8261_v2, %v1205_v43  ;;  %vm2246_vm2 = vcmp.eq.s32.totalorder %v7342_v22, %v8199_v0  ;;  %v8281_v50 = vld [vmem:[#allocation60_spill] sm:$0xff] }
 0x281   : > { %vm2544_vm1 = vcmp.eq.s32.totalorder %v7342_v22, %v8188_v1  ;;  %v2996_v11 = vsel %vm2845_vm9, %v8250_v36, %v2698_v61  ;;  %v1801_v14 = vsel %vm1650_vm8, %v8280_v21, %v1503_v49  ;;  %vm2842_vm3 = vcmp.eq.s32.totalorder %v7342_v22, %v8201_v38  ;;  %v8282_v1 = vld [vmem:[#allocation63_spill] sm:$0xff]  ;;  %v8283_v21 = vld [vmem:[#allocation65_spill] sm:$0xff] }
 0x282   : > { %vm759_vm5 = vcmp.eq.s32.totalorder %v7342_v22, %v4160_v56  ;;  %3189 = vmatprep.subr.mxu1 %v2996_v11  ;;  %v2099_v43 = vsel %vm1948_vm12, %v8202_v13, %v1801_v14  ;;  %vm1056_vm6 = vcmp.eq.s32.totalorder %v7342_v22, %v8253_v34  ;;  %vm1354_vm10 = vcmp.eq.s32.totalorder %v7342_v22, %v8282_v1  ;;  %v8284_v38 = vld [vmem:[#allocation67_spill] sm:$0xff] }
 0x283   : > { %v909_v0 = vsel %vm759_vm5, %v8281_v50, 0.0  ;;  %v2397_v61 = vsel %vm2246_vm2, %v8149_v5, %v2099_v43  ;;  %vm1652_vm13 = vcmp.eq.s32.totalorder %v7342_v22, %v8283_v21  ;;  %vm1950_vm0 = vcmp.eq.s32.totalorder %v7342_v22, %v8284_v38 }
 0x284   : > { %v1207_v49 = vsel %vm1056_vm6, %v8242_v47, %v909_v0  ;;  %v2695_v11 = vsel %vm2544_vm1, %v8150_v52, %v2397_v61  ;;  %vm2248_vm4 = vcmp.eq.s32.totalorder %v7342_v22, %v8244_v29  ;;  %vm2546_vm15 = vcmp.eq.s32.totalorder %v7342_v22, %v8245_v17 }
 0x285   : > { %v1505_v14 = vsel %vm1354_vm10, %v8194_v53, %v1207_v49  ;;  %v2993_v43 = vsel %vm2842_vm3, %v4156_v42, %v2695_v11  ;;  %vm2844_vm9 = vcmp.eq.s32.totalorder %v7342_v22, %v8143_v62  ;;  %vm754_vm11 = vcmp.eq.s32.totalorder %v7348_v9, %v3941_v24 }
 0x286   : > { %v1803_v0 = vsel %vm1652_vm13, %v8170_v44, %v1505_v14  ;;  %3119 = vmatpush2.msra.mxu0 %v2993_v43  ;;  %v904_v49 = vsel %vm754_vm11, %v8274_v28, 0.0  ;;  %vm1051_vm14 = vcmp.eq.s32.totalorder %v7348_v9, %v3944_v25  ;;  %vm1349_vm7 = vcmp.eq.s32.totalorder %v7348_v9, %v3947_v26 }
 0x287   : > { %v2101_v61 = vsel %vm1950_vm0, %v4212_v33, %v1803_v0  ;;  %v1202_v14 = vsel %vm1051_vm14, %v8133_v10, %v904_v49  ;;  %vm1647_vm8 = vcmp.eq.s32.totalorder %v7348_v9, %v3950_v27  ;;  %vm1945_vm12 = vcmp.eq.s32.totalorder %v7348_v9, %v8162_v4 }
 0x288   : > { %v2399_v11 = vsel %vm2248_vm4, %v4223_v15, %v2101_v61  ;;  %v1500_v22 = vsel %vm1349_vm7, %v8264_v57, %v1202_v14  ;;  %vm2243_vm2 = vcmp.eq.s32.totalorder %v7348_v9, %v8093_v18  ;;  %vm2541_vm1 = vcmp.eq.s32.totalorder %v7348_v9, %v8173_v45  ;;  %v8285_v18 = vld [vmem:[#allocation32_spill] sm:$0xff]  ;;  %v8289_v57 = vld [vmem:[#allocation55_spill] sm:$0xff] }
 0x289   : > { %v2697_v24 = vsel %vm2546_vm15, %v8122_v8, %v2399_v11  ;;  %v1798_v26 = vsel %vm1647_vm8, %v8265_v20, %v1500_v22  ;;  %vm2839_vm3 = vcmp.eq.s32.totalorder %v7348_v9, %v4006_v12  ;;  %vm756_vm5 = vcmp.eq.s32.totalorder %v7348_v9, %v8153_v59  ;;  %v8286_v20 = vld [vmem:[#allocation34_spill] sm:$0xff] }
 0x28a   : > { %v2995_v25 = vsel %vm2844_vm9, %v8123_v60, %v2697_v24  ;;  %v2096_v27 = vsel %vm1945_vm12, %v8276_v35, %v1798_v26  ;;  %v906_v10 = vsel %vm756_vm5, %v8255_v40, 0.0  ;;  %vm1053_vm6 = vcmp.eq.s32.totalorder %v7348_v9, %v8256_v54  ;;  %v8287_v54 = vld [vmem:[#allocation40_spill] sm:$0xff]  ;;  %v8288_v40 = vld [vmem:[#allocation45_spill] sm:$0xff] }
 0x28b   : > { %3190 = vmatpush2.msra.mxu1 %v2995_v25  ;;  %vm1351_vm10 = vcmp.eq.s32.totalorder %v7348_v9, %v8285_v18  ;;  %v2394_v4 = vsel %vm2243_vm2, %v8225_v55, %v2096_v27  ;;  %v1204_v45 = vsel %vm1053_vm6, %v8226_v31, %v906_v10  ;;  %vm1649_vm13 = vcmp.eq.s32.totalorder %v7348_v9, %v8286_v20 }
 0x28c   : > { %vm1947_vm0 = vcmp.eq.s32.totalorder %v7348_v9, %v8155_v46  ;;  %v2692_v12 = vsel %vm2541_vm1, %v8278_v51, %v2394_v4  ;;  %v1502_v59 = vsel %vm1351_vm10, %v8277_v48, %v1204_v45  ;;  %vm2245_vm4 = vcmp.eq.s32.totalorder %v7348_v9, %v8266_v16  ;;  %v3054_v48 = vld [vmem:[#allocation2 + $0x8] sm:$0xff] }
 0x28d   : > { %vm2543_vm15 = vcmp.eq.s32.totalorder %v7348_v9, %v8287_v54  ;;  %v2990_v55 = vsel %vm2839_vm3, %v8267_v41, %v2692_v12  ;;  %v1800_v31 = vsel %vm1649_vm13, %v8217_v19, %v1502_v59  ;;  %vm2841_vm9 = vcmp.eq.s32.totalorder %v7348_v9, %v8218_v63 }
 0x28e   : > { %vm753_vm11 = vcmp.eq.s32.totalorder %v7348_v9, %v8288_v40  ;;  %3120 = vmatprep.subr.mxu0 %v2990_v55  ;;  %v2098_v46 = vsel %vm1947_vm0, %v8268_v23, %v1800_v31  ;;  %vm1050_vm14 = vcmp.eq.s32.totalorder %v7348_v9, %v8197_v30  ;;  %vm1348_vm7 = vcmp.eq.s32.totalorder %v7348_v9, %v8258_v7  ;;  %v8290_v30 = vld [vmem:[#allocation57_spill] sm:$0xff] }
 0x28f   : > { %v903_v51 = vsel %vm753_vm11, %v8269_v32, 0.0  ;;  %v2396_v41 = vsel %vm2245_vm4, %v8259_v58, %v2098_v46  ;;  %vm1646_vm8 = vcmp.eq.s32.totalorder %v7348_v9, %v8198_v39  ;;  %vm1944_vm12 = vcmp.eq.s32.totalorder %v7348_v9, %v8210_v6  ;;  %v8291_v58 = vld [vmem:[#allocation52_spill] sm:$0xff]  ;;  %v8292_v32 = vld [vmem:[#allocation59_spill] sm:$0xff] }
 0x290   : > { %v1201_v19 = vsel %vm1050_vm14, %v8279_v3, %v903_v51  ;;  %v2694_v63 = vsel %vm2543_vm15, %v8260_v37, %v2396_v41  ;;  %vm2242_vm2 = vcmp.eq.s32.totalorder %v7348_v9, %v8289_v57  ;;  %vm2540_vm1 = vcmp.eq.s32.totalorder %v7348_v9, %v8290_v30 }
 0x291   : > { %v1499_v16 = vsel %vm1348_vm7, %v8261_v2, %v1201_v19  ;;  %v2992_v7 = vsel %vm2841_vm9, %v8250_v36, %v2694_v63  ;;  %vm2838_vm3 = vcmp.eq.s32.totalorder %v7348_v9, %v8292_v32  ;;  %vm755_vm5 = vcmp.eq.s32.totalorder %v7348_v9, %v4160_v56 }
 0x292   : > { %v1797_v23 = vsel %vm1646_vm8, %v8291_v58, %v1499_v16  ;;  %3191 = vmatprep.subr.mxu1 %v2992_v7  ;;  %v905_v39 = vsel %vm755_vm5, %v8281_v50, 0.0  ;;  %vm1052_vm6 = vcmp.eq.s32.totalorder %v7348_v9, %v8253_v34  ;;  %vm1350_vm10 = vcmp.eq.s32.totalorder %v7348_v9, %v8282_v1 }
 0x293   : > { %v2095_v6 = vsel %vm1944_vm12, %v8202_v13, %v1797_v23  ;;  %v1203_v2 = vsel %vm1052_vm6, %v8242_v47, %v905_v39  ;;  %vm1648_vm13 = vcmp.eq.s32.totalorder %v7348_v9, %v8283_v21  ;;  %vm1946_vm0 = vcmp.eq.s32.totalorder %v7348_v9, %v8284_v38 }
 0x294   : > { %v2393_v36 = vsel %vm2242_vm2, %v8149_v5, %v2095_v6  ;;  %v1501_v13 = vsel %vm1350_vm10, %v8194_v53, %v1203_v2  ;;  %vm2244_vm4 = vcmp.eq.s32.totalorder %v7348_v9, %v8244_v29  ;;  %vm2542_vm15 = vcmp.eq.s32.totalorder %v7348_v9, %v8245_v17 }
 0x295   : > { %v2691_v56 = vsel %vm2540_vm1, %v8150_v52, %v2393_v36  ;;  %v1799_v1 = vsel %vm1648_vm13, %v8170_v44, %v1501_v13  ;;  %vm2840_vm9 = vcmp.eq.s32.totalorder %v7348_v9, %v8143_v62  ;;  %v8293_v52 = vld [vmem:[#allocation71_spill] sm:$0xff]  ;;  %v3053_v44 = vld [vmem:[#allocation2] sm:$0xff] }
 0x296   : > { %v2989_v34 = vsel %vm2838_vm3, %v4156_v42, %v2691_v56  ;;  %v2097_v5 = vsel %vm1946_vm0, %v4212_v33, %v1799_v1 }
 0x297   : > { %3121 = vmatpush2.msra.mxu0 %v2989_v34  ;;  %v2395_v38 = vsel %vm2244_vm4, %v4223_v15, %v2097_v5 }
 0x298   : > { %3123 = vmatmul.mubr.f32.vlgmr.msra.gmra.mxu0 %v8293_v52  ;;  %v2693_v53 = vsel %vm2542_vm15, %v8122_v8, %v2395_v38 }
 0x299   : > { %v2991_v29 = vsel %vm2840_vm9, %v8123_v60, %v2693_v53 }
 0x29a   : > { %3192 = vmatpush2.msra.mxu1 %v2991_v29 }
 0x29b   : > { %3194 = vmatmul.mubr.f32.vlgmr.msra.gmra.mxu1 %v8293_v52 }
 0x358   : > { %v3124_v42 = vpop.f32.mrf.mxu0 }
 0x35a   : > { %v3126_v17 = vpop.f32.mrf.mxu0 }
 0x35b   : > { %v3204_v47 = vcombine.low %v3124_v42, %v3126_v17  ;;  %v3195_v37 = vpop.f32.mrf.mxu1 }
 0x35d   : > { %v3208_v33 = vadd.f32 %v3204_v47, %v3053_v44  ;;  %v3197_v28 = vpop.f32.mrf.mxu1 }
 0x35e   : > { %v3205_v62 = vcombine.low %v3195_v37, %v3197_v28 }
 0x35f   : > { %3210 = vst [vmem:[#allocation2] sm:$0xff] %v3208_v33 }
 0x360   : > { %v3209_v15 = vadd.f32 %v3205_v62, %v3054_v48 }
 0x362   : > { %3211 = vst [vmem:[#allocation2 + $0x8] sm:$0xff] %v3209_v15 }
 0x363 PF: > { %p3379_p12 = scmp.ne.s32.totalorder %s3565_s29, 1 }
 0x365   : > { %3215 = sbr.rel (%p3379_p12) target bundleno = 876 (0x36c), region = 44 }
 0x36a   : > { %v3216_v60 = vld [vmem:[#allocation2] sm:$0xff]  ;;  %v3217_v8 = vld [vmem:[#allocation2 + $0x8] sm:$0xff] }
 0x36b   : > { %3218 = vst [vmem:[%s3715_s22] sm:$0xff] %v3216_v60  ;;  %3219 = vst [vmem:[%s3715_s22 + $0x8] sm:$0xff] %v3217_v8 }
 0x36c PF: > { %s3387_s6 = sshll.u32 %s3569_s30, 8  ;;  %s3237_s23 = sshll.u32 %s3715_s22, 4  ;;  %s3238_s23 = int_to_ptr.vmem [resolvable:$true] %s3237_s23 }
 0x36d   : > { %s3235_s21 = scalar_lea.hbm %s7615_s5, %s3387_s6  ;;  %s8294_s29 = sand.u32 1, %s3557_s27  }
 0x36e   : > { %s3221_s24 = scalar_lea.sflag [#allocation9], %s8294_s29  ;;  %s3487_s25 = scalar_lea.vmem %s3238_s23, 256 }
 0x36f   : > { %p3488_p0 = scmp.ne.s32.totalorder %s3238_s23, %s3487_s25  ;;  %s3586_s26 = smov [#allocation8]  }
 0x370   : > { %s3491_s0 = sshll.u32 %s3586_s26, 4  ;;  %s3492_s0 = int_to_ptr.vmem [resolvable:$false] %s3491_s0 }
 0x371   : > { %p3489_p1 = pnand %p3488_p0, %p3672_p13  ;;  %s3493_s9 = scalar_lea.vmem %s3492_s0, 512 }
 0x372   : > { %p3494_p3 = scmp.lt.s32.totalorder %s3238_s23, %s3492_s0  ;;  %p3495_p4 = scmp.lt.s32.totalorder %s3493_s9, %s3487_s25 }
 0x373   : > { %p3490_p2 = pneg %p3489_p1 }
 0x374   : > { %p3496_p6 = por %p3495_p4, %p3494_p3 }
 0x376   : > { %p3497_p7 = pnand %p3496_p6, %p3490_p2 }
 0x378   : > { %3500 = shalt.err (!%p3497_p7)
}
 0x379   : > { %s3501_s30 = scalar_lea.hbm %s3235_s21, 256  ;;  %s3505_s16 = scalar_lea.hbm %s7615_s5, 512 }
 0x37a   : > { %p3502_p8 = scmp.ne.s32.totalorder %s3235_s21, %s3501_s30  ;;  %p3506_p11 = scmp.lt.s32.totalorder %s3235_s21, %s7615_s5 }
 0x37b   : > { %p3507_p12 = scmp.lt.s32.totalorder %s3505_s16, %s3501_s30 }
 0x37c   : > { %p3503_p9 = pnand %p3502_p8, %p3672_p13 }
 0x37d   : > { %p3508_p0 = por %p3507_p12, %p3506_p11 }
 0x37e   : > { %p3504_p10 = pneg %p3503_p9 }
 0x380   : > { %p3509_p1 = pnand %p3508_p0, %p3504_p10 }
 0x382   : > { %3512 = shalt.err (!%p3509_p1)
}
 0x383   : > { %3388 = dma.vmem_to_hbm [thread:$0]  (%p3672_p13), %s3238_s23, 256, %s3235_s21, %s3221_s24  }
 0x384 PF: > { %p3394_p2 = scmp.ge.s32.totalorder %s3581_s8, 2  ;;  %s3249_s7 = sand.u32 1, %s3553_s1  }
 0x385   : > { %s3250_s11 = scalar_lea.sflag [#allocation9], %s3249_s7 }
 0x386   : > { %p3391_p3 = pnand %p3394_p2, %p3682_p5 }
 0x388   : > { %p3392_p4 = pneg %p3391_p3 }
 0x38a   : > { %3548 = dma.done.wait (%p3392_p4), %s3250_s11, 256  }
 0x38b   : > { %3550 = vsyncadd (%p3392_p4), %s3250_s11, 4294967040  ;;  %s28_s8 = sadd.s32 1, %s3581_s8   ;;  %s8295_s29 = sld [smem:[#allocation12_spill]] }
 0x38c   : > { %p25_p6 = scmp.ge.s32.totalorder %s28_s8, 6   ;;  %s8296_s30 = sld [smem:[#allocation13_spill]] }
 0x38d   : > { %s8297_s6 = sld [smem:[#allocation14_spill]]  ;;  %s8299_s1 = smov %s3557_s27 }
 0x38e   : > { %s8298_s7 = sld [smem:[#allocation15_spill]]  ;;  %s8300_s27 = smov %s3561_s28 }
 0x38f   : > { %s8301_s28 = smov %s3690_s17  ;;  %27 = sbr.rel (!%p25_p6) target bundleno = 30 (0x1e), region = 103 }
 0x394   :  { %3255 = vsyncpa [#allocation9], 1 }
 0x395   :  { %3257 = vsyncpa [#allocation9 + $0x1], 1 }

</bundles_post_ra>
